<compile_context>
chip_gen: v6e
topology: v6e:2x2x1
jax: 0.10.0
libtpu: 0.0.40
codegen_flags: <defaults>
</compile_context>

<pallas_src>
import jax
import jax.numpy as jnp
from jax.experimental import pallas as pl
from jax.experimental.pallas import tpu as pltpu

NUM_CLASSES = 10
LAYER_DIMS = [3072, 256, 512, 1024, 512, 256, NUM_CLASSES]
OUT_PAD = 128        # lane-dense padded width of the final layer
BIAS_ROWS = 8        # sublane-aligned packed-bias rows (6 layers, padded to 8)
BIAS_COLS = 1024     # widest layer output
SUBLANE = 16         # bf16 sublane packing -> batch tiles in multiples of 16
TM_CAP = 512         # fits under v7x's 64 MiB VMEM with the 48 MiB limit


def mlp_kernel(x_ref, w1, w2, w3, w4, w5, w6, bias_ref, o_ref):
    """x_ref: (TM, 3072) bf16, weights: (in, out) bf16, bias_ref: (8, 1024) f32,
    o_ref: (TM, 128) f32 (first NUM_CLASSES columns are real)."""
    bias = bias_ref[...]                       # (8, 1024) f32, single DMA
    h = x_ref[...]                             # bf16 streamed activations

    def layer(h, w_ref, row, out_dim, relu):
        # bf16 MXU inputs, f32 accumulation; bias add + ReLU in f32 on VPU.
        acc = jnp.dot(h.astype(jnp.bfloat16), w_ref[...],
                      preferred_element_type=jnp.float32)
        acc = acc + bias[row:row + 1, :out_dim]
        return jnp.maximum(acc, 0.0) if relu else acc

    h = layer(h, w1, 0, 256, True)
    h = layer(h, w2, 1, 512, True)
    h = layer(h, w3, 2, 1024, True)
    h = layer(h, w4, 3, 512, True)
    h = layer(h, w5, 4, 256, True)
    o_ref[...] = layer(h, w6, 5, OUT_PAD, False)   # final layer: no ReLU


def init_params(key):
    """PyTorch nn.Linear-style init. Weight stored transposed to (in, out),
    bias as (1, out); both f32 (quantization happens in prepare_params)."""
    params = []
    for i in range(6):
        fan_in, fan_out = LAYER_DIMS[i], LAYER_DIMS[i + 1]
        key, kw, kb = jax.random.split(key, 3)
        bound = 1.0 / jnp.sqrt(fan_in)
        w = jax.random.uniform(kw, (fan_out, fan_in), jnp.float32, -bound, bound).T
        b = jax.random.uniform(kb, (1, fan_out), jnp.float32, -bound, bound)
        params.append((w, b))
    return params


def prepare_params(params):
    """One-time prep (outside jit): cast weights to bf16, pad the final layer
    to 128 lanes, and pack all biases into a single (8, 1024) f32 array."""
    weights = []
    for i, (w, _) in enumerate(params):
        if i == 5:  # pad final weight (256, 10) -> (256, 128) with zeros
            w = jnp.pad(w, ((0, 0), (0, OUT_PAD - NUM_CLASSES)))
        weights.append(w.astype(jnp.bfloat16))
    bias_packed = jnp.zeros((BIAS_ROWS, BIAS_COLS), jnp.float32)
    for i, (_, b) in enumerate(params):
        bias_packed = bias_packed.at[i, :b.shape[-1]].set(b[0])
    return tuple(weights), bias_packed


def _round_up(n, m):
    return ((n + m - 1) // m) * m


def _device_tuning():
    """(vmem_limit_bytes, two_tensorcores) for the current TPU generation."""
    try:
        kind = jax.devices()[0].device_kind.lower()
    except Exception:
        kind = ""
    if "v7" in kind:
        return 48 << 20, True        # 64 MiB physical VMEM, 2 TensorCores
    if "v5" in kind or "v6" in kind:
        return 96 << 20, False       # 128 MiB physical VMEM, 1 TensorCore
    return 48 << 20, False           # conservative default


def _select_tiling(B, two_tc):
    """Pick (TM, padded_B). TM is a multiple of 16 (bf16 sublanes), capped at
    512; padding is minimized, and on 2-TC chips moderate batches get >=2
    tiles so the parallel grid axis shards across cores."""
    Bp = _round_up(max(B, SUBLANE), SUBLANE)
    if Bp > TM_CAP:
        best_tm, best_bp = None, None
        for tm in (512, 256, 128):
            padded = _round_up(Bp, tm)
            if best_bp is None or padded < best_bp:
                best_tm, best_bp = tm, padded
        return best_tm, best_bp
    if two_tc and Bp >= 2 * SUBLANE:
        tm = _round_up(Bp // 2, SUBLANE)
        return tm, 2 * tm
    return Bp, Bp


@jax.jit
def simple_neural_network(x_nchw, weights, bias_packed):
    B = x_nchw.shape[0]
    # nn.Flatten(): (B, C, H, W) -> (B, C*H*W), row-major, same as torch.
    # Stream the input as bf16 (kernel accumulates in f32 on the MXU).
    x = x_nchw.reshape(B, -1).astype(jnp.bfloat16)

    vmem_limit, two_tc = _device_tuning()
    TM, Bp = _select_tiling(B, two_tc)
    if Bp != B:
        x = jnp.pad(x, ((0, Bp - B), (0, 0)))
    grid = (Bp // TM,)

    # Weights/bias: constant index_map -> VMEM-resident across grid steps;
    # Buffered(1) drops the useless second buffer.
    resident = dict(pipeline_mode=pl.Buffered(1))
    x_spec = pl.BlockSpec((TM, LAYER_DIMS[0]), lambda i: (i, 0))
    w_specs = [pl.BlockSpec(w.shape, lambda i: (0, 0), **resident)
               for w in weights]
    b_spec = pl.BlockSpec((BIAS_ROWS, BIAS_COLS), lambda i: (0, 0), **resident)
    o_spec = pl.BlockSpec((TM, OUT_PAD), lambda i: (i, 0))

    out = pl.pallas_call(
        mlp_kernel,
        out_shape=jax.ShapeDtypeStruct((Bp, OUT_PAD), jnp.float32),
        grid=grid,
        in_specs=[x_spec] + w_specs + [b_spec],
        out_specs=o_spec,
        compiler_params=pltpu.CompilerParams(
            dimension_semantics=("parallel",),
            vmem_limit_bytes=vmem_limit,
        ),
    )(x, *weights, bias_packed)

    # Drop batch padding and the lane padding of the final layer.
    return out[:B, :NUM_CLASSES]


def reference_forward(x_nchw, weights, bias_packed):
    """Pure-JAX reference with the same bf16-in / f32-accumulate numerics."""
    h = x_nchw.reshape(x_nchw.shape[0], -1).astype(jnp.bfloat16)
    for i, w in enumerate(weights):
        b = bias_packed[i, :w.shape[1]]
        h = jnp.dot(h.astype(jnp.bfloat16), w,
                    preferred_element_type=jnp.float32) + b
        if i < 5:
            h = jnp.maximum(h, 0.0)
    return h[:, :NUM_CLASSES]


if __name__ == "__main__":
    key = jax.random.PRNGKey(0)
    key, kx = jax.random.split(key)
    # CIFAR-like input implied by in_features=3072 = 3*32*32, NCHW.
    x = jax.random.normal(kx, (2, 3, 32, 32), dtype=jnp.float32)
    params = init_params(key)
    weights, bias_packed = prepare_params(params)

    y = simple_neural_network(x, weights, bias_packed)
    jax.block_until_ready(y)
    assert y.shape == (2, NUM_CLASSES), y.shape
    assert y.dtype == jnp.float32, y.dtype

    y_ref = reference_forward(x, weights, bias_packed)
    assert jnp.allclose(y, y_ref, rtol=2e-2, atol=2e-2), (y, y_ref)
    print("KERNEL_OK")
</pallas_src>

<mosaic_0001>
module attributes {stable_mosaic.version = 11 : i64} {
  func.func @mlp_kernel(%arg0: i32, %arg1: memref<16x3072xbf16, #tpu.memory_space<vmem>>, %arg2: memref<3072x256xbf16, #tpu.memory_space<vmem>>, %arg3: memref<256x512xbf16, #tpu.memory_space<vmem>>, %arg4: memref<512x1024xbf16, #tpu.memory_space<vmem>>, %arg5: memref<1024x512xbf16, #tpu.memory_space<vmem>>, %arg6: memref<512x256xbf16, #tpu.memory_space<vmem>>, %arg7: memref<256x128xbf16, #tpu.memory_space<vmem>>, %arg8: memref<8x1024xf32, #tpu.memory_space<vmem>>, %arg9: memref<16x128xf32, #tpu.memory_space<vmem>>) attributes {dimension_semantics = [#tpu.dimension_semantics<parallel>], iteration_bounds = array<i64: 1>, scalar_prefetch = 0 : i64, scratch_operands = 0 : i64, tpu.core_type = #tpu.core_type<tc>, window_params = [{transform_indices = @transform_0, window_bounds = array<i64: 16, 3072>}, {pipeline_mode = #tpu.pipeline_mode<synchronous>, transform_indices = @transform_1, window_bounds = array<i64: 3072, 256>}, {pipeline_mode = #tpu.pipeline_mode<synchronous>, transform_indices = @transform_2, window_bounds = array<i64: 256, 512>}, {pipeline_mode = #tpu.pipeline_mode<synchronous>, transform_indices = @transform_3, window_bounds = array<i64: 512, 1024>}, {pipeline_mode = #tpu.pipeline_mode<synchronous>, transform_indices = @transform_4, window_bounds = array<i64: 1024, 512>}, {pipeline_mode = #tpu.pipeline_mode<synchronous>, transform_indices = @transform_5, window_bounds = array<i64: 512, 256>}, {pipeline_mode = #tpu.pipeline_mode<synchronous>, transform_indices = @transform_6, window_bounds = array<i64: 256, 128>}, {pipeline_mode = #tpu.pipeline_mode<synchronous>, transform_indices = @transform_7, window_bounds = array<i64: 8, 1024>}, {transform_indices = @transform_8, window_bounds = array<i64: 16, 128>}]} {
    %c0 = arith.constant 0 : index
    %c0_0 = arith.constant 0 : index
    %0 = vector.load %arg8[%c0, %c0_0] : memref<8x1024xf32, #tpu.memory_space<vmem>>, vector<8x1024xf32>
    %c0_1 = arith.constant 0 : index
    %c0_2 = arith.constant 0 : index
    %1 = vector.load %arg1[%c0_1, %c0_2] : memref<16x3072xbf16, #tpu.memory_space<vmem>>, vector<16x3072xbf16>
    %c0_3 = arith.constant 0 : index
    %c0_4 = arith.constant 0 : index
    %2 = vector.load %arg2[%c0_3, %c0_4] : memref<3072x256xbf16, #tpu.memory_space<vmem>>, vector<3072x256xbf16>
    %cst = arith.constant dense<0.000000e+00> : vector<16x256xf32>
    %3 = tpu.matmul %1, %2, %cst {dimension_numbers = #tpu.dot_dimension_numbers<[1], [0], [0], [1], [0, 0, 1, 1], [], []>} : vector<16x3072xbf16>, vector<3072x256xbf16>, vector<16x256xf32> -> vector<16x256xf32>
    %4 = vector.extract_strided_slice %0 {offsets = [0, 0], sizes = [1, 256], strides = [1, 1]} : vector<8x1024xf32> to vector<1x256xf32>
    %5 = vector.broadcast %4 : vector<1x256xf32> to vector<16x256xf32>
    %6 = arith.addf %3, %5 : vector<16x256xf32>
    %cst_5 = arith.constant 0.000000e+00 : f32
    %7 = vector.broadcast %cst_5 : f32 to vector<16x256xf32>
    %8 = arith.maximumf %6, %7 : vector<16x256xf32>
    %9 = arith.truncf %8 : vector<16x256xf32> to vector<16x256xbf16>
    %c0_6 = arith.constant 0 : index
    %c0_7 = arith.constant 0 : index
    %10 = vector.load %arg3[%c0_6, %c0_7] : memref<256x512xbf16, #tpu.memory_space<vmem>>, vector<256x512xbf16>
    %cst_8 = arith.constant dense<0.000000e+00> : vector<16x512xf32>
    %11 = tpu.matmul %9, %10, %cst_8 {dimension_numbers = #tpu.dot_dimension_numbers<[1], [0], [0], [1], [0, 0, 1, 1], [], []>} : vector<16x256xbf16>, vector<256x512xbf16>, vector<16x512xf32> -> vector<16x512xf32>
    %12 = vector.extract_strided_slice %0 {offsets = [1, 0], sizes = [1, 512], strides = [1, 1]} : vector<8x1024xf32> to vector<1x512xf32>
    %13 = vector.broadcast %12 : vector<1x512xf32> to vector<16x512xf32>
    %14 = arith.addf %11, %13 : vector<16x512xf32>
    %cst_9 = arith.constant 0.000000e+00 : f32
    %15 = vector.broadcast %cst_9 : f32 to vector<16x512xf32>
    %16 = arith.maximumf %14, %15 : vector<16x512xf32>
    %17 = arith.truncf %16 : vector<16x512xf32> to vector<16x512xbf16>
    %c0_10 = arith.constant 0 : index
    %c0_11 = arith.constant 0 : index
    %18 = vector.load %arg4[%c0_10, %c0_11] : memref<512x1024xbf16, #tpu.memory_space<vmem>>, vector<512x1024xbf16>
    %cst_12 = arith.constant dense<0.000000e+00> : vector<16x1024xf32>
    %19 = tpu.matmul %17, %18, %cst_12 {dimension_numbers = #tpu.dot_dimension_numbers<[1], [0], [0], [1], [0, 0, 1, 1], [], []>} : vector<16x512xbf16>, vector<512x1024xbf16>, vector<16x1024xf32> -> vector<16x1024xf32>
    %20 = vector.extract_strided_slice %0 {offsets = [2, 0], sizes = [1, 1024], strides = [1, 1]} : vector<8x1024xf32> to vector<1x1024xf32>
    %21 = vector.broadcast %20 : vector<1x1024xf32> to vector<16x1024xf32>
    %22 = arith.addf %19, %21 : vector<16x1024xf32>
    %cst_13 = arith.constant 0.000000e+00 : f32
    %23 = vector.broadcast %cst_13 : f32 to vector<16x1024xf32>
    %24 = arith.maximumf %22, %23 : vector<16x1024xf32>
    %25 = arith.truncf %24 : vector<16x1024xf32> to vector<16x1024xbf16>
    %c0_14 = arith.constant 0 : index
    %c0_15 = arith.constant 0 : index
    %26 = vector.load %arg5[%c0_14, %c0_15] : memref<1024x512xbf16, #tpu.memory_space<vmem>>, vector<1024x512xbf16>
    %cst_16 = arith.constant dense<0.000000e+00> : vector<16x512xf32>
    %27 = tpu.matmul %25, %26, %cst_16 {dimension_numbers = #tpu.dot_dimension_numbers<[1], [0], [0], [1], [0, 0, 1, 1], [], []>} : vector<16x1024xbf16>, vector<1024x512xbf16>, vector<16x512xf32> -> vector<16x512xf32>
    %28 = vector.extract_strided_slice %0 {offsets = [3, 0], sizes = [1, 512], strides = [1, 1]} : vector<8x1024xf32> to vector<1x512xf32>
    %29 = vector.broadcast %28 : vector<1x512xf32> to vector<16x512xf32>
    %30 = arith.addf %27, %29 : vector<16x512xf32>
    %cst_17 = arith.constant 0.000000e+00 : f32
    %31 = vector.broadcast %cst_17 : f32 to vector<16x512xf32>
    %32 = arith.maximumf %30, %31 : vector<16x512xf32>
    %33 = arith.truncf %32 : vector<16x512xf32> to vector<16x512xbf16>
    %c0_18 = arith.constant 0 : index
    %c0_19 = arith.constant 0 : index
    %34 = vector.load %arg6[%c0_18, %c0_19] : memref<512x256xbf16, #tpu.memory_space<vmem>>, vector<512x256xbf16>
    %cst_20 = arith.constant dense<0.000000e+00> : vector<16x256xf32>
    %35 = tpu.matmul %33, %34, %cst_20 {dimension_numbers = #tpu.dot_dimension_numbers<[1], [0], [0], [1], [0, 0, 1, 1], [], []>} : vector<16x512xbf16>, vector<512x256xbf16>, vector<16x256xf32> -> vector<16x256xf32>
    %36 = vector.extract_strided_slice %0 {offsets = [4, 0], sizes = [1, 256], strides = [1, 1]} : vector<8x1024xf32> to vector<1x256xf32>
    %37 = vector.broadcast %36 : vector<1x256xf32> to vector<16x256xf32>
    %38 = arith.addf %35, %37 : vector<16x256xf32>
    %cst_21 = arith.constant 0.000000e+00 : f32
    %39 = vector.broadcast %cst_21 : f32 to vector<16x256xf32>
    %40 = arith.maximumf %38, %39 : vector<16x256xf32>
    %41 = arith.truncf %40 : vector<16x256xf32> to vector<16x256xbf16>
    %c0_22 = arith.constant 0 : index
    %c0_23 = arith.constant 0 : index
    %42 = vector.load %arg7[%c0_22, %c0_23] : memref<256x128xbf16, #tpu.memory_space<vmem>>, vector<256x128xbf16>
    %cst_24 = arith.constant dense<0.000000e+00> : vector<16x128xf32>
    %43 = tpu.matmul %41, %42, %cst_24 {dimension_numbers = #tpu.dot_dimension_numbers<[1], [0], [0], [1], [0, 0, 1, 1], [], []>} : vector<16x256xbf16>, vector<256x128xbf16>, vector<16x128xf32> -> vector<16x128xf32>
    %44 = vector.extract_strided_slice %0 {offsets = [5, 0], sizes = [1, 128], strides = [1, 1]} : vector<8x1024xf32> to vector<1x128xf32>
    %45 = vector.broadcast %44 : vector<1x128xf32> to vector<16x128xf32>
    %46 = arith.addf %43, %45 : vector<16x128xf32>
    %c0_25 = arith.constant 0 : index
    %c0_26 = arith.constant 0 : index
    %47 = vector.load %arg9[%c0_25, %c0_26] : memref<16x128xf32, #tpu.memory_space<vmem>>, vector<16x128xf32>
    tpu.vector_store %arg9[%c0_25, %c0_26], %46 {strides = array<i32>} : memref<16x128xf32, #tpu.memory_space<vmem>>, vector<16x128xf32>,
    return
  }
  func.func @transform_0(%arg0: i32) -> (i32, i32) {
    %c0_i32 = arith.constant 0 : i32
    %c0_i32_0 = arith.constant 0 : i32
    return %arg0, %c0_i32 : i32, i32
  }
  func.func @transform_1(%arg0: i32) -> (i32, i32) {
    %c0_i32 = arith.constant 0 : i32
    %c0_i32_0 = arith.constant 0 : i32
    %c0_i32_1 = arith.constant 0 : i32
    return %c0_i32, %c0_i32_0 : i32, i32
  }
  func.func @transform_2(%arg0: i32) -> (i32, i32) {
    %c0_i32 = arith.constant 0 : i32
    %c0_i32_0 = arith.constant 0 : i32
    %c0_i32_1 = arith.constant 0 : i32
    return %c0_i32, %c0_i32_0 : i32, i32
  }
  func.func @transform_3(%arg0: i32) -> (i32, i32) {
    %c0_i32 = arith.constant 0 : i32
    %c0_i32_0 = arith.constant 0 : i32
    %c0_i32_1 = arith.constant 0 : i32
    return %c0_i32, %c0_i32_0 : i32, i32
  }
  func.func @transform_4(%arg0: i32) -> (i32, i32) {
    %c0_i32 = arith.constant 0 : i32
    %c0_i32_0 = arith.constant 0 : i32
    %c0_i32_1 = arith.constant 0 : i32
    return %c0_i32, %c0_i32_0 : i32, i32
  }
  func.func @transform_5(%arg0: i32) -> (i32, i32) {
    %c0_i32 = arith.constant 0 : i32
    %c0_i32_0 = arith.constant 0 : i32
    %c0_i32_1 = arith.constant 0 : i32
    return %c0_i32, %c0_i32_0 : i32, i32
  }
  func.func @transform_6(%arg0: i32) -> (i32, i32) {
    %c0_i32 = arith.constant 0 : i32
    %c0_i32_0 = arith.constant 0 : i32
    %c0_i32_1 = arith.constant 0 : i32
    return %c0_i32, %c0_i32_0 : i32, i32
  }
  func.func @transform_7(%arg0: i32) -> (i32, i32) {
    %c0_i32 = arith.constant 0 : i32
    %c0_i32_0 = arith.constant 0 : i32
    %c0_i32_1 = arith.constant 0 : i32
    return %c0_i32, %c0_i32_0 : i32, i32
  }
  func.func @transform_8(%arg0: i32) -> (i32, i32) {
    %c0_i32 = arith.constant 0 : i32
    %c0_i32_0 = arith.constant 0 : i32
    return %arg0, %c0_i32 : i32, i32
  }
}

</mosaic_0001>

<bundles_post_ra>
// kernel: simple_neural_network.1
= control target key start
LH: loop header
LB: loop body
LE: loop exit
PB: predicated region body
PF: predicated region fallthrough
CT: control target
= control target key end

     0   :  { %13 = vsyncpa [#allocation3], 0  ;;  %s10919_s0 = inlined_call_operand.vmem [shape: bf16[16,3072], index: 0, kind: input, shape index: {}]   ;;  %s10920_s1 = inlined_call_operand.hbm [shape: bf16[3072,256], index: 1, kind: input, shape index: {}]   ;;  %s10921_s2 = inlined_call_operand.hbm [shape: bf16[256,512], index: 2, kind: input, shape index: {}]   ;;  %s10922_s3 = inlined_call_operand.hbm [shape: bf16[512,1024], index: 3, kind: input, shape index: {}]   ;;  %s10923_s4 = inlined_call_operand.hbm [shape: bf16[1024,512], index: 4, kind: input, shape index: {}]   ;;  %s10924_s5 = inlined_call_operand.hbm [shape: bf16[512,256], index: 5, kind: input, shape index: {}]   ;;  %s10925_s6 = inlined_call_operand.hbm [shape: bf16[256,128], index: 6, kind: input, shape index: {}]   ;;  %s10926_s7 = inlined_call_operand.hbm [shape: f32[8,1024], index: 7, kind: input, shape index: {}]   ;;  %s10927_s8 = inlined_call_operand.vmem [shape: f32[16,128], index: 8, kind: output, shape index: {}]  }
   0x1   :  { %14 = vsyncpa [#allocation5], 0 }
   0x2   :  { %15 = vsyncpa [#allocation8], 0 }
   0x3   :  { %16 = vsyncpa [#allocation11], 0  ;;  %s10543_s27 = smov [#allocation4]  }
   0x4   :  { %s36_s28 = sshll.u32 %s10543_s27, 4  ;;  %s37_s28 = int_to_ptr.vmem [resolvable:$true] %s36_s28 }
   0x5   :  { %s10403_s29 = scalar_lea.vmem %s37_s28, 8192  ;;  %p10408_p1 = scmp.lt.s32.totalorder %s37_s28, %s37_s28 }
   0x6   :  { %p10404_p0 = scmp.ne.s32.totalorder %s37_s28, %s10403_s29  ;;  %p10409_p2 = scmp.lt.s32.totalorder %s10403_s29, %s10403_s29 }
   0x8   :  { %p10410_p3 = por %p10409_p2, %p10408_p1 }
   0xa   :  { %p10411_p4 = pnand %p10410_p3, %p10404_p0 }
   0xc   :  { %10414 = shalt.err (!%p10411_p4)
}
   0xd   :  { %s10544_s30 = smov 256   ;;  %s10545_s9 = smov 16  }
   0xe   :  { %42 = dma.hbm_to_vmem [thread:$0]  %s10921_s2, 8192, %s37_s28, [#allocation5], %s10544_s30, %s10544_s30, %s10545_s9  }
   0xf   :  { %s10546_s12 = smov [#allocation7]   ;;  %s10547_s14 = smov [#allocation10]  }
  0x10   :  { %s60_s13 = sshll.u32 %s10546_s12, 4  ;;  %s84_s15 = sshll.u32 %s10547_s14, 4  ;;  %s61_s13 = int_to_ptr.vmem [resolvable:$true] %s60_s13  ;;  %s85_s15 = int_to_ptr.vmem [resolvable:$true] %s84_s15 }
  0x11   :  { %s10423_s16 = scalar_lea.vmem %s61_s13, 32768  ;;  %p10428_p6 = scmp.lt.s32.totalorder %s61_s13, %s61_s13 }
  0x12   :  { %p10424_p5 = scmp.ne.s32.totalorder %s61_s13, %s10423_s16  ;;  %p10429_p7 = scmp.lt.s32.totalorder %s10423_s16, %s10423_s16 }
  0x14   :  { %p10430_p8 = por %p10429_p7, %p10428_p6 }
  0x16   :  { %p10431_p9 = pnand %p10430_p8, %p10424_p5 }
  0x18   :  { %10434 = shalt.err (!%p10431_p9)
}
  0x19   :  { %66 = dma.hbm_to_vmem [thread:$0]  %s10923_s4, 32768, %s61_s13, [#allocation8], %s10544_s30, %s10544_s30, %s10545_s9  }
  0x1a   :  { %s10443_s19 = scalar_lea.vmem %s85_s15, 2048  ;;  %p10448_p11 = scmp.lt.s32.totalorder %s85_s15, %s85_s15 }
  0x1b   :  { %p10444_p10 = scmp.ne.s32.totalorder %s85_s15, %s10443_s19  ;;  %p10449_p12 = scmp.lt.s32.totalorder %s10443_s19, %s10443_s19 }
  0x1d   :  { %p10450_p13 = por %p10449_p12, %p10448_p11 }
  0x1f   :  { %p10451_p0 = pnand %p10450_p13, %p10444_p10 }
  0x21   :  { %10454 = shalt.err (!%p10451_p0)
}
  0x22   :  { %s10548_s2 = smov 64   ;;  %s10549_s20 = smov 4  }
  0x23   :  { %90 = dma.hbm_to_vmem [thread:$0]  %s10925_s6, 2048, %s85_s15, [#allocation11], %s10548_s2, %s10548_s2, %s10549_s20  }
  0x24   :  { %s10550_s23 = smov [#allocation2]  }
  0x25   :  { %s24_s24 = sshll.u32 %s10550_s23, 4  ;;  %s25_s24 = int_to_ptr.vmem [resolvable:$true] %s24_s24 }
  0x26   :  { %s10463_s25 = scalar_lea.vmem %s25_s24, 49152  ;;  %p10468_p2 = scmp.lt.s32.totalorder %s25_s24, %s25_s24 }
  0x27   :  { %p10464_p1 = scmp.ne.s32.totalorder %s25_s24, %s10463_s25  ;;  %p10469_p3 = scmp.lt.s32.totalorder %s10463_s25, %s10463_s25 }
  0x29   :  { %p10470_p4 = por %p10469_p3, %p10468_p2 }
  0x2b   :  { %p10471_p5 = pnand %p10470_p4, %p10464_p1 }
  0x2d   :  { %10474 = shalt.err (!%p10471_p5)
}
  0x2e   :  { %s10551_s4 = smov 128   ;;  %s10552_s26 = smov 8  }
  0x2f   :  { %30 = dma.hbm_to_vmem [thread:$0]  %s10920_s1, 49152, %s25_s24, [#allocation3], %s10551_s4, %s10551_s4, %s10552_s26  }
  0x30   :  { %s10553_s6 = smov [#allocation6]  }
  0x31   :  { %s48_s29 = sshll.u32 %s10553_s6, 4  ;;  %s49_s29 = int_to_ptr.vmem [resolvable:$true] %s48_s29 }
  0x32   :  { %s10483_s30 = scalar_lea.vmem %s49_s29, 32768  ;;  %p10488_p7 = scmp.lt.s32.totalorder %s49_s29, %s49_s29 }
  0x33   :  { %p10484_p6 = scmp.ne.s32.totalorder %s49_s29, %s10483_s30  ;;  %p10489_p8 = scmp.lt.s32.totalorder %s10483_s30, %s10483_s30 }
  0x35   :  { %p10490_p9 = por %p10489_p8, %p10488_p7 }
  0x37   :  { %p10491_p10 = pnand %p10490_p9, %p10484_p6 }
  0x39   :  { %10494 = shalt.err (!%p10491_p10)
}
  0x3a   :  { %s10554_s9 = smov 512   ;;  %s10555_s10 = smov 32  }
  0x3b   :  { %54 = dma.hbm_to_vmem [thread:$0]  %s10922_s3, 32768, %s49_s29, [#allocation5], %s10554_s9, %s10554_s9, %s10555_s10  }
  0x3c   :  { %s10556_s13 = smov [#allocation9]   ;;  %s10557_s1 = smov [#allocation12]  }
  0x3d   :  { %s72_s14 = sshll.u32 %s10556_s13, 4  ;;  %s97_s15 = sshll.u32 %s10557_s1, 4  ;;  %s73_s14 = int_to_ptr.vmem [resolvable:$true] %s72_s14  ;;  %s98_s15 = int_to_ptr.vmem [resolvable:$true] %s97_s15 }
  0x3e   :  { %s10503_s16 = scalar_lea.vmem %s73_s14, 8192  ;;  %p10508_p12 = scmp.lt.s32.totalorder %s73_s14, %s73_s14 }
  0x3f   :  { %p10504_p11 = scmp.ne.s32.totalorder %s73_s14, %s10503_s16  ;;  %p10509_p13 = scmp.lt.s32.totalorder %s10503_s16, %s10503_s16 }
  0x41   :  { %p10510_p0 = por %p10509_p13, %p10508_p12 }
  0x43   :  { %p10511_p1 = pnand %p10510_p0, %p10504_p11 }
  0x45   :  { %10514 = shalt.err (!%p10511_p1)
}
  0x46   :  { %78 = dma.hbm_to_vmem [thread:$0]  %s10924_s5, 8192, %s73_s14, [#allocation8], %s10551_s4, %s10551_s4, %s10552_s26  }
  0x47   :  { %s10523_s3 = scalar_lea.vmem %s98_s15, 1024  ;;  %p10528_p3 = scmp.lt.s32.totalorder %s98_s15, %s98_s15 }
  0x48   :  { %p10524_p2 = scmp.ne.s32.totalorder %s98_s15, %s10523_s3  ;;  %p10529_p4 = scmp.lt.s32.totalorder %s10523_s3, %s10523_s3 }
  0x4a   :  { %p10530_p5 = por %p10529_p4, %p10528_p3 }
  0x4c   :  { %p10531_p6 = pnand %p10530_p5, %p10524_p2 }
  0x4e   :  { %10534 = shalt.err (!%p10531_p6)
}
  0x4f   :  { %100 = dma.hbm_to_vmem [thread:$0]  %s10926_s7, 1024, %s98_s15, [#allocation11]  }
  0x50   :  { %10535 = dma.done.wait [#allocation3], 49152  }
  0x51   :  { %10536 = vsyncadd [#allocation3], 4294918144 }
  0x52   :  { %10537 = dma.done.wait [#allocation5], 40960  }
  0x53   :  { %10538 = vsyncadd [#allocation5], 4294926336 }
  0x54   :  { %10539 = dma.done.wait [#allocation8], 40960  }
  0x55   :  { %10540 = vsyncadd [#allocation8], 4294926336 }
  0x56   :  { %10541 = dma.done.wait [#allocation11], 3072  }
  0x57   :  { %10542 = vsyncadd [#allocation11], 4294964224  ;;  %v9219_v0 = vld [vmem:[#allocation2 + $0x74] ss:$8 sps:$4 sm:$0xff]   ;;  %v9223_v2 = vld [vmem:[#allocation2 + $0x70] ss:$8 sps:$4 sm:$0xff]  }
  0x58   :  { %v9221_v1 = vld [vmem:[#allocation2 + $0x174] ss:$8 sps:$4 sm:$0xff]   ;;  %2587 = vmatprep.subr.bf16.mxu0 %v9219_v0  ;;  %v9224_v3 = vld [vmem:[#allocation2 + $0x170] ss:$8 sps:$4 sm:$0xff]   ;;  %v9225_v4 = vld [vmem:[#allocation2 + $0x64] ss:$8 sps:$4 sm:$0xff]  }
  0x59   :  { %2630 = vmatprep.subr.bf16.mxu1 %v9221_v1  ;;  %2588 = vmatpush1.bf16.msra.mxu0 %v9223_v2  ;;  %v9227_v5 = vld [vmem:[#allocation2 + $0x164] ss:$8 sps:$4 sm:$0xff]   ;;  %v9229_v6 = vld [vmem:[#allocation2 + $0x60] ss:$8 sps:$4 sm:$0xff]   ;;  %v9231_v8 = vld [vmem:[#allocation2 + $0x54] ss:$8 sps:$4 sm:$0xff]  }
  0x5a   :  { %2631 = vmatpush1.bf16.msra.mxu1 %v9224_v3  ;;  %2589 = vmatprep.subr.bf16.mxu0 %v9225_v4  ;;  %v9230_v7 = vld [vmem:[#allocation2 + $0x160] ss:$8 sps:$4 sm:$0xff]   ;;  %v9233_v9 = vld [vmem:[#allocation2 + $0x154] ss:$8 sps:$4 sm:$0xff]   ;;  %v9235_v10 = vld [vmem:[#allocation2 + $0x50] ss:$8 sps:$4 sm:$0xff]  }
  0x5b   :  { %2632 = vmatprep.subr.bf16.mxu1 %v9227_v5  ;;  %v9236_v11 = vld [vmem:[#allocation2 + $0x150] ss:$8 sps:$4 sm:$0xff]   ;;  %v9237_v12 = vld [vmem:[#allocation2 + $0x44] ss:$8 sps:$4 sm:$0xff]   ;;  %v9241_v14 = vld [vmem:[#allocation2 + $0x40] ss:$8 sps:$4 sm:$0xff]  }
  0x5c   :  { %v9239_v13 = vld [vmem:[#allocation2 + $0x144] ss:$8 sps:$4 sm:$0xff]   ;;  %v9242_v15 = vld [vmem:[#allocation2 + $0x140] ss:$8 sps:$4 sm:$0xff]   ;;  %v9243_v16 = vld [vmem:[#allocation2 + $0x34] ss:$8 sps:$4 sm:$0xff]  }
  0x5d   :  { %2590 = vmatpush1.bf16.msra.mxu0 %v9229_v6  ;;  %v9245_v17 = vld [vmem:[#allocation2 + $0x134] ss:$8 sps:$4 sm:$0xff]   ;;  %v9247_v18 = vld [vmem:[#allocation2 + $0x30] ss:$8 sps:$4 sm:$0xff]   ;;  %v9249_v20 = vld [vmem:[#allocation2 + $0x24] ss:$8 sps:$4 sm:$0xff]  }
  0x5e   :  { %2633 = vmatpush1.bf16.msra.mxu1 %v9230_v7  ;;  %2591 = vmatprep.subr.bf16.mxu0 %v9231_v8  ;;  %v9248_v19 = vld [vmem:[#allocation2 + $0x130] ss:$8 sps:$4 sm:$0xff]   ;;  %v9251_v21 = vld [vmem:[#allocation2 + $0x124] ss:$8 sps:$4 sm:$0xff]   ;;  %v9253_v22 = vld [vmem:[#allocation2 + $0x20] ss:$8 sps:$4 sm:$0xff]  }
  0x5f   :  { %2634 = vmatprep.subr.bf16.mxu1 %v9233_v9  ;;  %v9254_v23 = vld [vmem:[#allocation2 + $0x120] ss:$8 sps:$4 sm:$0xff]   ;;  %v9255_v24 = vld [vmem:[#allocation2 + $0x14] ss:$8 sps:$4 sm:$0xff]   ;;  %v9259_v26 = vld [vmem:[#allocation2 + $0x10] ss:$8 sps:$4 sm:$0xff]  }
  0x60   :  { %v9257_v25 = vld [vmem:[#allocation2 + $0x114] ss:$8 sps:$4 sm:$0xff]   ;;  %v9260_v27 = vld [vmem:[#allocation2 + $0x110] ss:$8 sps:$4 sm:$0xff]   ;;  %v9261_v28 = vld [vmem:[#allocation2 + $0x4] ss:$8 sps:$4 sm:$0xff]  }
  0x61   :  { %2592 = vmatpush1.bf16.msra.mxu0 %v9235_v10  ;;  %v9263_v29 = vld [vmem:[#allocation2 + $0x104] ss:$8 sps:$4 sm:$0xff]   ;;  %v9265_v30 = vld [vmem:[#allocation2] ss:$8 sps:$4 sm:$0xff]   ;;  %v9267_v32 = vld [vmem:[#allocation2 + $0xf4] ss:$8 sps:$4 sm:$0xff]  }
  0x62   :  { %2635 = vmatpush1.bf16.msra.mxu1 %v9236_v11  ;;  %2593 = vmatprep.subr.bf16.mxu0 %v9237_v12  ;;  %v9266_v31 = vld [vmem:[#allocation2 + $0x100] ss:$8 sps:$4 sm:$0xff]   ;;  %v9269_v33 = vld [vmem:[#allocation2 + $0x1f4] ss:$8 sps:$4 sm:$0xff]   ;;  %v9271_v34 = vld [vmem:[#allocation2 + $0xf0] ss:$8 sps:$4 sm:$0xff]  }
  0x63   :  { %2636 = vmatprep.subr.bf16.mxu1 %v9239_v13  ;;  %v9272_v35 = vld [vmem:[#allocation2 + $0x1f0] ss:$8 sps:$4 sm:$0xff]   ;;  %v9273_v36 = vld [vmem:[#allocation2 + $0xe4] ss:$8 sps:$4 sm:$0xff]   ;;  %v9277_v38 = vld [vmem:[#allocation2 + $0xe0] ss:$8 sps:$4 sm:$0xff]  }
  0x64   :  { %v9275_v37 = vld [vmem:[#allocation2 + $0x1e4] ss:$8 sps:$4 sm:$0xff]   ;;  %v9278_v39 = vld [vmem:[#allocation2 + $0x1e0] ss:$8 sps:$4 sm:$0xff]   ;;  %v9279_v40 = vld [vmem:[#allocation2 + $0xd4] ss:$8 sps:$4 sm:$0xff]  }
  0x65   :  { %2594 = vmatpush1.bf16.msra.mxu0 %v9241_v14  ;;  %v9281_v41 = vld [vmem:[#allocation2 + $0x1d4] ss:$8 sps:$4 sm:$0xff]   ;;  %v9283_v42 = vld [vmem:[#allocation2 + $0xd0] ss:$8 sps:$4 sm:$0xff]   ;;  %v9285_v44 = vld [vmem:[#allocation2 + $0xc4] ss:$8 sps:$4 sm:$0xff]  }
  0x66   :  { %2637 = vmatpush1.bf16.msra.mxu1 %v9242_v15  ;;  %2595 = vmatprep.subr.bf16.mxu0 %v9243_v16  ;;  %v9284_v43 = vld [vmem:[#allocation2 + $0x1d0] ss:$8 sps:$4 sm:$0xff]   ;;  %v9287_v45 = vld [vmem:[#allocation2 + $0x1c4] ss:$8 sps:$4 sm:$0xff]   ;;  %v9289_v46 = vld [vmem:[#allocation2 + $0xc0] ss:$8 sps:$4 sm:$0xff]  }
  0x67   :  { %2638 = vmatprep.subr.bf16.mxu1 %v9245_v17  ;;  %v9290_v47 = vld [vmem:[#allocation2 + $0x1c0] ss:$8 sps:$4 sm:$0xff]   ;;  %v9291_v52 = vld [vmem:[#allocation2 + $0xb4] ss:$8 sps:$4 sm:$0xff]   ;;  %v9295_v56 = vld [vmem:[#allocation2 + $0xb0] ss:$8 sps:$4 sm:$0xff]  }
  0x68   :  { %v131_v48 = vld [vmem:[%s10919_s0] sm:$0xff]  ;;  %v132_v50 = vld [vmem:[%s10919_s0 + $0x8] sm:$0xff]  ;;  %v9293_v54 = vld [vmem:[#allocation2 + $0x1b4] ss:$8 sps:$4 sm:$0xff]  }
  0x69   :  { %2596 = vmatpush1.bf16.msra.mxu0 %v9247_v18  ;;  %v143_v49 = vld [vmem:[%s10919_s0 + $0x60] sm:$0xff]  ;;  %v144_v51 = vld [vmem:[%s10919_s0 + $0x68] sm:$0xff]  ;;  %v9296_v57 = vld [vmem:[#allocation2 + $0x1b0] ss:$8 sps:$4 sm:$0xff]  }
  0x6a   :  { %2639 = vmatpush1.bf16.msra.mxu1 %v9248_v19  ;;  %2597 = vmatprep.subr.bf16.mxu0 %v9249_v20  ;;  %v8119_v53 = vcombine.high %v131_v48, %v143_v49  ;;  %v8121_v55 = vcombine.high %v132_v50, %v144_v51  ;;  %v9297_v58 = vld [vmem:[#allocation2 + $0xa4] ss:$8 sps:$4 sm:$0xff]   ;;  %v9301_v60 = vld [vmem:[#allocation2 + $0xa0] ss:$8 sps:$4 sm:$0xff]   ;;  %v9303_v62 = vld [vmem:[#allocation2 + $0x94] ss:$8 sps:$4 sm:$0xff]   ;;  %v8118_v8 = vcombine.low %v131_v48, %v143_v49 }
  0x6b   :  { %2640 = vmatprep.subr.bf16.mxu1 %v9251_v21  ;;  %v9299_v59 = vld [vmem:[#allocation2 + $0x1a4] ss:$8 sps:$4 sm:$0xff]   ;;  %v9302_v61 = vld [vmem:[#allocation2 + $0x1a0] ss:$8 sps:$4 sm:$0xff]   ;;  %v9305_v63 = vld [vmem:[#allocation2 + $0x194] ss:$8 sps:$4 sm:$0xff]   ;;  %v8120_v9 = vcombine.low %v132_v50, %v144_v51 }
  0x6c   :  { %2619 = vmatprep.mubr.bf16.mxu0 %v8119_v53  ;;  %2662 = vmatprep.mubr.bf16.mxu1 %v8121_v55  ;;  %v9307_v0 = vld [vmem:[#allocation2 + $0x90] ss:$8 sps:$4 sm:$0xff]   ;;  %v9309_v2 = vld [vmem:[#allocation2 + $0x84] ss:$8 sps:$4 sm:$0xff]   ;;  %v9313_v4 = vld [vmem:[#allocation2 + $0x80] ss:$8 sps:$4 sm:$0xff]  }
  0x6d   :  { %2598 = vmatpush1.bf16.msra.mxu0 %v9253_v22  ;;  %v9308_v1 = vld [vmem:[#allocation2 + $0x190] ss:$8 sps:$4 sm:$0xff]   ;;  %v9311_v3 = vld [vmem:[#allocation2 + $0x184] ss:$8 sps:$4 sm:$0xff]   ;;  %v9314_v5 = vld [vmem:[#allocation2 + $0x180] ss:$8 sps:$4 sm:$0xff]  }
  0x6e   :  { %2641 = vmatpush1.bf16.msra.mxu1 %v9254_v23  ;;  %2599 = vmatprep.subr.bf16.mxu0 %v9255_v24  ;;  %v9317_v6 = vld [vmem:[#allocation2 + $0x274] ss:$8 sps:$4 sm:$0xff]   ;;  %v9315_v10 = vld [vmem:[#allocation2 + $0x270] ss:$8 sps:$4 sm:$0xff]   ;;  %v9323_v12 = vld [vmem:[#allocation2 + $0x264] ss:$8 sps:$4 sm:$0xff]  }
  0x6f   :  { %2642 = vmatprep.subr.bf16.mxu1 %v9257_v25  ;;  %v9320_v7 = vld [vmem:[#allocation2 + $0x374] ss:$8 sps:$4 sm:$0xff]   ;;  %v9318_v11 = vld [vmem:[#allocation2 + $0x370] ss:$8 sps:$4 sm:$0xff]   ;;  %v9326_v13 = vld [vmem:[#allocation2 + $0x364] ss:$8 sps:$4 sm:$0xff]  }
  0x70   :  { %v9321_v14 = vld [vmem:[#allocation2 + $0x260] ss:$8 sps:$4 sm:$0xff]   ;;  %v9329_v16 = vld [vmem:[#allocation2 + $0x254] ss:$8 sps:$4 sm:$0xff]   ;;  %v9327_v18 = vld [vmem:[#allocation2 + $0x250] ss:$8 sps:$4 sm:$0xff]  }
  0x71   :  { %2600 = vmatpush1.bf16.msra.mxu0 %v9259_v26  ;;  %v9324_v15 = vld [vmem:[#allocation2 + $0x360] ss:$8 sps:$4 sm:$0xff]   ;;  %v9332_v17 = vld [vmem:[#allocation2 + $0x354] ss:$8 sps:$4 sm:$0xff]   ;;  %v9330_v19 = vld [vmem:[#allocation2 + $0x350] ss:$8 sps:$4 sm:$0xff]  }
  0x72   :  { %2643 = vmatpush1.bf16.msra.mxu1 %v9260_v27  ;;  %2601 = vmatprep.subr.bf16.mxu0 %v9261_v28  ;;  %v9335_v20 = vld [vmem:[#allocation2 + $0x244] ss:$8 sps:$4 sm:$0xff]   ;;  %v9333_v22 = vld [vmem:[#allocation2 + $0x240] ss:$8 sps:$4 sm:$0xff]   ;;  %v9341_v24 = vld [vmem:[#allocation2 + $0x234] ss:$8 sps:$4 sm:$0xff]  }
  0x73   :  { %2644 = vmatprep.subr.bf16.mxu1 %v9263_v29  ;;  %v9338_v21 = vld [vmem:[#allocation2 + $0x344] ss:$8 sps:$4 sm:$0xff]   ;;  %v9336_v23 = vld [vmem:[#allocation2 + $0x340] ss:$8 sps:$4 sm:$0xff]   ;;  %v9344_v25 = vld [vmem:[#allocation2 + $0x334] ss:$8 sps:$4 sm:$0xff]  }
  0x74   :  { %v9339_v26 = vld [vmem:[#allocation2 + $0x230] ss:$8 sps:$4 sm:$0xff]   ;;  %v9347_v28 = vld [vmem:[#allocation2 + $0x224] ss:$8 sps:$4 sm:$0xff]   ;;  %v9372_v53 = vld [vmem:[#allocation2 + $0x3e0] ss:$8 sps:$4 sm:$0xff]  }
  0x75   :  { %2602 = vmatpush1.bf16.msra.mxu0 %v9265_v30  ;;  %v9342_v27 = vld [vmem:[#allocation2 + $0x330] ss:$8 sps:$4 sm:$0xff]   ;;  %v9350_v29 = vld [vmem:[#allocation2 + $0x324] ss:$8 sps:$4 sm:$0xff]   ;;  %v9345_v30 = vld [vmem:[#allocation2 + $0x220] ss:$8 sps:$4 sm:$0xff]  }
  0x76   :  { %2645 = vmatpush1.bf16.msra.mxu1 %v9266_v31  ;;  %2603 = vmatprep.subr.bf16.mxu0 %v9267_v32  ;;  %v9348_v31 = vld [vmem:[#allocation2 + $0x320] ss:$8 sps:$4 sm:$0xff]   ;;  %v9353_v32 = vld [vmem:[#allocation2 + $0x214] ss:$8 sps:$4 sm:$0xff]   ;;  %v9363_v48 = vld [vmem:[#allocation2 + $0x2f0] ss:$8 sps:$4 sm:$0xff]  }
  0x77   :  { %2646 = vmatprep.subr.bf16.mxu1 %v9269_v33  ;;  %v9356_v33 = vld [vmem:[#allocation2 + $0x314] ss:$8 sps:$4 sm:$0xff]   ;;  %v9366_v49 = vld [vmem:[#allocation2 + $0x3f0] ss:$8 sps:$4 sm:$0xff]   ;;  %v9371_v50 = vld [vmem:[#allocation2 + $0x2e4] ss:$8 sps:$4 sm:$0xff]  }
  0x78   :  { %v9374_v51 = vld [vmem:[#allocation2 + $0x3e4] ss:$8 sps:$4 sm:$0xff]   ;;  %v9380_v55 = vld [vmem:[#allocation2 + $0x3d4] ss:$8 sps:$4 sm:$0xff]  }
  0x79   :  { %2604 = vmatpush2.bf16.msra.mxu0 %v9271_v34  ;;  %v9351_v34 = vld [vmem:[#allocation2 + $0x210] ss:$8 sps:$4 sm:$0xff]  }
  0x7a   :  { %2647 = vmatpush2.bf16.msra.mxu1 %v9272_v35  ;;  %2605 = vmatprep.subr.bf16.mxu0 %v9273_v36  ;;  %v9354_v35 = vld [vmem:[#allocation2 + $0x310] ss:$8 sps:$4 sm:$0xff]  }
  0x7b   :  { %2648 = vmatprep.subr.bf16.mxu1 %v9275_v37  ;;  %v10645_v36 = vld [vmem:[%s10919_s0 + $0x10] sm:$0xff] }
  0x7c   :  { %v10650_v37 = vld [vmem:[%s10919_s0 + $0x70] sm:$0xff] }
  0x7d   :  { %2606 = vmatpush2.bf16.msra.mxu0 %v9277_v38  ;;  %v10655_v38 = vld [vmem:[%s10919_s0 + $0x18] sm:$0xff] }
  0x7e   :  { %2649 = vmatpush2.bf16.msra.mxu1 %v9278_v39  ;;  %2607 = vmatprep.subr.bf16.mxu0 %v9279_v40  ;;  %v10660_v39 = vld [vmem:[%s10919_s0 + $0x78] sm:$0xff]  ;;  %v9359_v40 = vld [vmem:[#allocation2 + $0x204] ss:$8 sps:$4 sm:$0xff]  }
  0x7f   :  { %2650 = vmatprep.subr.bf16.mxu1 %v9281_v41  ;;  %v8123_v41 = vcombine.high %v10645_v36, %v10650_v37 }
  0x81   :  { %2608 = vmatpush2.bf16.msra.mxu0 %v9283_v42  ;;  %v9362_v42 = vld [vmem:[#allocation2 + $0x304] ss:$8 sps:$4 sm:$0xff]  }
  0x82   :  { %2651 = vmatpush2.bf16.msra.mxu1 %v9284_v43  ;;  %2609 = vmatprep.subr.bf16.mxu0 %v9285_v44  ;;  %v8125_v43 = vcombine.high %v10655_v38, %v10660_v39  ;;  %v9357_v44 = vld [vmem:[#allocation2 + $0x200] ss:$8 sps:$4 sm:$0xff]  }
  0x83   :  { %2652 = vmatprep.subr.bf16.mxu1 %v9287_v45  ;;  %v9360_v45 = vld [vmem:[#allocation2 + $0x300] ss:$8 sps:$4 sm:$0xff]  }
  0x85   :  { %2610 = vmatpush2.bf16.msra.mxu0 %v9289_v46  ;;  %v9365_v46 = vld [vmem:[#allocation2 + $0x2f4] ss:$8 sps:$4 sm:$0xff]  }
  0x86   :  { %2653 = vmatpush2.bf16.msra.mxu1 %v9290_v47  ;;  %2611 = vmatprep.subr.bf16.mxu0 %v9291_v52  ;;  %v9368_v47 = vld [vmem:[#allocation2 + $0x3f4] ss:$8 sps:$4 sm:$0xff]   ;;  %v9369_v52 = vld [vmem:[#allocation2 + $0x2e0] ss:$8 sps:$4 sm:$0xff]  }
  0x87   :  { %2654 = vmatprep.subr.bf16.mxu1 %v9293_v54  ;;  %v9377_v54 = vld [vmem:[#allocation2 + $0x2d4] ss:$8 sps:$4 sm:$0xff]  }
  0x89   :  { %2612 = vmatpush2.bf16.msra.mxu0 %v9295_v56  ;;  %v9375_v56 = vld [vmem:[#allocation2 + $0x2d0] ss:$8 sps:$4 sm:$0xff]  }
  0x8a   :  { %2655 = vmatpush2.bf16.msra.mxu1 %v9296_v57  ;;  %2613 = vmatprep.subr.bf16.mxu0 %v9297_v58  ;;  %v9378_v57 = vld [vmem:[#allocation2 + $0x3d0] ss:$8 sps:$4 sm:$0xff]   ;;  %v9383_v58 = vld [vmem:[#allocation2 + $0x2c4] ss:$8 sps:$4 sm:$0xff]  }
  0x8b   :  { %2656 = vmatprep.subr.bf16.mxu1 %v9299_v59  ;;  %v9386_v59 = vld [vmem:[#allocation2 + $0x3c4] ss:$8 sps:$4 sm:$0xff]  }
  0x8d   :  { %2614 = vmatpush2.bf16.msra.mxu0 %v9301_v60  ;;  %v9381_v60 = vld [vmem:[#allocation2 + $0x2c0] ss:$8 sps:$4 sm:$0xff]  }
  0x8e   :  { %2657 = vmatpush2.bf16.msra.mxu1 %v9302_v61  ;;  %2615 = vmatprep.subr.bf16.mxu0 %v9303_v62  ;;  %v9384_v61 = vld [vmem:[#allocation2 + $0x3c0] ss:$8 sps:$4 sm:$0xff]   ;;  %v9389_v62 = vld [vmem:[#allocation2 + $0x2b4] ss:$8 sps:$4 sm:$0xff]  }
  0x8f   :  { %2658 = vmatprep.subr.bf16.mxu1 %v9305_v63  ;;  %v9392_v63 = vld [vmem:[#allocation2 + $0x3b4] ss:$8 sps:$4 sm:$0xff]  }
  0x91   :  { %2616 = vmatpush2.bf16.msra.mxu0 %v9307_v0  ;;  %v9387_v0 = vld [vmem:[#allocation2 + $0x2b0] ss:$8 sps:$4 sm:$0xff]  }
  0x92   :  { %2659 = vmatpush2.bf16.msra.mxu1 %v9308_v1  ;;  %2617 = vmatprep.subr.bf16.mxu0 %v9309_v2  ;;  %v9390_v1 = vld [vmem:[#allocation2 + $0x3b0] ss:$8 sps:$4 sm:$0xff]   ;;  %v9395_v2 = vld [vmem:[#allocation2 + $0x2a4] ss:$8 sps:$4 sm:$0xff]  }
  0x93   :  { %2660 = vmatprep.subr.bf16.mxu1 %v9311_v3  ;;  %v9398_v3 = vld [vmem:[#allocation2 + $0x3a4] ss:$8 sps:$4 sm:$0xff]  }
  0x95   :  { %2618 = vmatpush2.bf16.msra.mxu0 %v9313_v4  ;;  %v9393_v4 = vld [vmem:[#allocation2 + $0x2a0] ss:$8 sps:$4 sm:$0xff]  }
  0x96   :  { %2661 = vmatpush2.bf16.msra.mxu1 %v9314_v5  ;;  %2673 = vmatprep.subr.bf16.mxu0 %v9317_v6  ;;  %v9396_v5 = vld [vmem:[#allocation2 + $0x3a0] ss:$8 sps:$4 sm:$0xff]   ;;  %v9401_v6 = vld [vmem:[#allocation2 + $0x294] ss:$8 sps:$4 sm:$0xff]  }
  0x97   :  { %2716 = vmatprep.subr.bf16.mxu1 %v9320_v7  ;;  %v9404_v7 = vld [vmem:[#allocation2 + $0x394] ss:$8 sps:$4 sm:$0xff]  }
  0x98   :  { %2620 = vmatmul.mubr.bf16.vlgmr.msra.gmra.mxu0 %v8118_v8  ;;  %v9399_v8 = vld [vmem:[#allocation2 + $0x290] ss:$8 sps:$4 sm:$0xff]  }
  0x99   :  { %2663 = vmatmul.mubr.bf16.vlgmr.msra.gmra.mxu1 %v8120_v9  ;;  %2674 = vmatpush1.bf16.msra.mxu0 %v9315_v10  ;;  %v9402_v9 = vld [vmem:[#allocation2 + $0x390] ss:$8 sps:$4 sm:$0xff]   ;;  %v9407_v10 = vld [vmem:[#allocation2 + $0x284] ss:$8 sps:$4 sm:$0xff]  }
  0x9a   :  { %2717 = vmatpush1.bf16.msra.mxu1 %v9318_v11  ;;  %2675 = vmatprep.subr.bf16.mxu0 %v9323_v12  ;;  %v9410_v11 = vld [vmem:[#allocation2 + $0x384] ss:$8 sps:$4 sm:$0xff]   ;;  %v9405_v12 = vld [vmem:[#allocation2 + $0x280] ss:$8 sps:$4 sm:$0xff]  }
  0x9b   :  { %2718 = vmatprep.subr.bf16.mxu1 %v9326_v13  ;;  %2705 = vmatprep.mubr.bf16.mxu0 %v8123_v41  ;;  %v9408_v13 = vld [vmem:[#allocation2 + $0x380] ss:$8 sps:$4 sm:$0xff]   ;;  %v9438_v41 = vld [vmem:[#allocation2 + $0x530] ss:$8 sps:$4 sm:$0xff]  }
  0x9c   :  { %2748 = vmatprep.mubr.bf16.mxu1 %v8125_v43  ;;  %v9446_v43 = vld [vmem:[#allocation2 + $0x524] ss:$8 sps:$4 sm:$0xff]  }
  0x9d   :  { %2676 = vmatpush1.bf16.msra.mxu0 %v9321_v14  ;;  %v9413_v14 = vld [vmem:[#allocation2 + $0x474] ss:$8 sps:$4 sm:$0xff]  }
  0x9e   :  { %2719 = vmatpush1.bf16.msra.mxu1 %v9324_v15  ;;  %2677 = vmatprep.subr.bf16.mxu0 %v9329_v16  ;;  %v9416_v15 = vld [vmem:[#allocation2 + $0x574] ss:$8 sps:$4 sm:$0xff]   ;;  %v8122_v16 = vcombine.low %v10645_v36, %v10650_v37  ;;  %v9429_v36 = vld [vmem:[#allocation2 + $0x440] ss:$8 sps:$4 sm:$0xff]  }
  0x9f   :  { %2720 = vmatprep.subr.bf16.mxu1 %v9332_v17  ;;  %v8124_v17 = vcombine.low %v10655_v38, %v10660_v39  ;;  %v9432_v37 = vld [vmem:[#allocation2 + $0x540] ss:$8 sps:$4 sm:$0xff]   ;;  %v9437_v38 = vld [vmem:[#allocation2 + $0x434] ss:$8 sps:$4 sm:$0xff]  }
  0xa0   :  { %v9440_v39 = vld [vmem:[#allocation2 + $0x534] ss:$8 sps:$4 sm:$0xff]  }
  0xa1   :  { %2678 = vmatpush1.bf16.msra.mxu0 %v9327_v18  ;;  %v9411_v18 = vld [vmem:[#allocation2 + $0x470] ss:$8 sps:$4 sm:$0xff]  }
  0xa2   :  { %2721 = vmatpush1.bf16.msra.mxu1 %v9330_v19  ;;  %2679 = vmatprep.subr.bf16.mxu0 %v9335_v20  ;;  %v9414_v19 = vld [vmem:[#allocation2 + $0x570] ss:$8 sps:$4 sm:$0xff]   ;;  %v9419_v20 = vld [vmem:[#allocation2 + $0x464] ss:$8 sps:$4 sm:$0xff]  }
  0xa3   :  { %2722 = vmatprep.subr.bf16.mxu1 %v9338_v21  ;;  %v9422_v21 = vld [vmem:[#allocation2 + $0x564] ss:$8 sps:$4 sm:$0xff]  }
  0xa5   :  { %2680 = vmatpush1.bf16.msra.mxu0 %v9333_v22  ;;  %v9417_v22 = vld [vmem:[#allocation2 + $0x460] ss:$8 sps:$4 sm:$0xff]  }
  0xa6   :  { %2723 = vmatpush1.bf16.msra.mxu1 %v9336_v23  ;;  %2681 = vmatprep.subr.bf16.mxu0 %v9341_v24  ;;  %v9420_v23 = vld [vmem:[#allocation2 + $0x560] ss:$8 sps:$4 sm:$0xff]  }
  0xa7   :  { %2724 = vmatprep.subr.bf16.mxu1 %v9344_v25  ;;  %v10673_v24 = vld [vmem:[%s10919_s0 + $0x20] sm:$0xff] }
  0xa8   :  { %v10678_v25 = vld [vmem:[%s10919_s0 + $0x80] sm:$0xff] }
  0xa9   :  { %2682 = vmatpush1.bf16.msra.mxu0 %v9339_v26  ;;  %v10683_v26 = vld [vmem:[%s10919_s0 + $0x28] sm:$0xff] }
  0xaa   :  { %2725 = vmatpush1.bf16.msra.mxu1 %v9342_v27  ;;  %2683 = vmatprep.subr.bf16.mxu0 %v9347_v28  ;;  %v10688_v27 = vld [vmem:[%s10919_s0 + $0x88] sm:$0xff]  ;;  %v9425_v28 = vld [vmem:[#allocation2 + $0x454] ss:$8 sps:$4 sm:$0xff]  }
  0xab   :  { %2726 = vmatprep.subr.bf16.mxu1 %v9350_v29  ;;  %v8127_v29 = vcombine.high %v10673_v24, %v10678_v25 }
  0xad   :  { %2684 = vmatpush1.bf16.msra.mxu0 %v9345_v30  ;;  %v9428_v30 = vld [vmem:[#allocation2 + $0x554] ss:$8 sps:$4 sm:$0xff]  }
  0xae   :  { %2727 = vmatpush1.bf16.msra.mxu1 %v9348_v31  ;;  %2685 = vmatprep.subr.bf16.mxu0 %v9353_v32  ;;  %v8129_v31 = vcombine.high %v10683_v26, %v10688_v27  ;;  %v9423_v32 = vld [vmem:[#allocation2 + $0x450] ss:$8 sps:$4 sm:$0xff]  }
  0xaf   :  { %2728 = vmatprep.subr.bf16.mxu1 %v9356_v33  ;;  %v9426_v33 = vld [vmem:[#allocation2 + $0x550] ss:$8 sps:$4 sm:$0xff]  }
  0xb1   :  { %2686 = vmatpush1.bf16.msra.mxu0 %v9351_v34  ;;  %v9431_v34 = vld [vmem:[#allocation2 + $0x444] ss:$8 sps:$4 sm:$0xff]  }
  0xb2   :  { %2729 = vmatpush1.bf16.msra.mxu1 %v9354_v35  ;;  %2687 = vmatprep.subr.bf16.mxu0 %v9359_v40  ;;  %v9434_v35 = vld [vmem:[#allocation2 + $0x544] ss:$8 sps:$4 sm:$0xff]   ;;  %v9435_v40 = vld [vmem:[#allocation2 + $0x430] ss:$8 sps:$4 sm:$0xff]  }
  0xb3   :  { %2730 = vmatprep.subr.bf16.mxu1 %v9362_v42  ;;  %v9443_v42 = vld [vmem:[#allocation2 + $0x424] ss:$8 sps:$4 sm:$0xff]  }
  0xb5   :  { %2688 = vmatpush1.bf16.msra.mxu0 %v9357_v44  ;;  %v9441_v44 = vld [vmem:[#allocation2 + $0x420] ss:$8 sps:$4 sm:$0xff]  }
  0xb6   :  { %2731 = vmatpush1.bf16.msra.mxu1 %v9360_v45  ;;  %2689 = vmatprep.subr.bf16.mxu0 %v9365_v46  ;;  %v9444_v45 = vld [vmem:[#allocation2 + $0x520] ss:$8 sps:$4 sm:$0xff]   ;;  %v9449_v46 = vld [vmem:[#allocation2 + $0x414] ss:$8 sps:$4 sm:$0xff]  }
  0xb7   :  { %2732 = vmatprep.subr.bf16.mxu1 %v9368_v47  ;;  %v9452_v47 = vld [vmem:[#allocation2 + $0x514] ss:$8 sps:$4 sm:$0xff]  }
  0xb9   :  { %2690 = vmatpush2.bf16.msra.mxu0 %v9363_v48  ;;  %v9447_v48 = vld [vmem:[#allocation2 + $0x410] ss:$8 sps:$4 sm:$0xff]  }
  0xba   :  { %2733 = vmatpush2.bf16.msra.mxu1 %v9366_v49  ;;  %2691 = vmatprep.subr.bf16.mxu0 %v9371_v50  ;;  %v9450_v49 = vld [vmem:[#allocation2 + $0x510] ss:$8 sps:$4 sm:$0xff]   ;;  %v9455_v50 = vld [vmem:[#allocation2 + $0x404] ss:$8 sps:$4 sm:$0xff]  }
  0xbb   :  { %2734 = vmatprep.subr.bf16.mxu1 %v9374_v51  ;;  %v9458_v51 = vld [vmem:[#allocation2 + $0x504] ss:$8 sps:$4 sm:$0xff]  }
  0xbd   :  { %2692 = vmatpush2.bf16.msra.mxu0 %v9369_v52  ;;  %v9453_v52 = vld [vmem:[#allocation2 + $0x400] ss:$8 sps:$4 sm:$0xff]  }
  0xbe   :  { %2735 = vmatpush2.bf16.msra.mxu1 %v9372_v53  ;;  %2693 = vmatprep.subr.bf16.mxu0 %v9377_v54  ;;  %v9456_v53 = vld [vmem:[#allocation2 + $0x500] ss:$8 sps:$4 sm:$0xff]   ;;  %v9461_v54 = vld [vmem:[#allocation2 + $0x4f4] ss:$8 sps:$4 sm:$0xff]  }
  0xbf   :  { %2736 = vmatprep.subr.bf16.mxu1 %v9380_v55  ;;  %v9464_v55 = vld [vmem:[#allocation2 + $0x5f4] ss:$8 sps:$4 sm:$0xff]  }
  0xc1   :  { %2694 = vmatpush2.bf16.msra.mxu0 %v9375_v56  ;;  %v9459_v56 = vld [vmem:[#allocation2 + $0x4f0] ss:$8 sps:$4 sm:$0xff]  }
  0xc2   :  { %2737 = vmatpush2.bf16.msra.mxu1 %v9378_v57  ;;  %2695 = vmatprep.subr.bf16.mxu0 %v9383_v58  ;;  %v9462_v57 = vld [vmem:[#allocation2 + $0x5f0] ss:$8 sps:$4 sm:$0xff]   ;;  %v9467_v58 = vld [vmem:[#allocation2 + $0x4e4] ss:$8 sps:$4 sm:$0xff]  }
  0xc3   :  { %2738 = vmatprep.subr.bf16.mxu1 %v9386_v59  ;;  %v9470_v59 = vld [vmem:[#allocation2 + $0x5e4] ss:$8 sps:$4 sm:$0xff]  }
  0xc5   :  { %2696 = vmatpush2.bf16.msra.mxu0 %v9381_v60  ;;  %v9465_v60 = vld [vmem:[#allocation2 + $0x4e0] ss:$8 sps:$4 sm:$0xff]  }
  0xc6   :  { %2739 = vmatpush2.bf16.msra.mxu1 %v9384_v61  ;;  %2697 = vmatprep.subr.bf16.mxu0 %v9389_v62  ;;  %v9468_v61 = vld [vmem:[#allocation2 + $0x5e0] ss:$8 sps:$4 sm:$0xff]   ;;  %v9473_v62 = vld [vmem:[#allocation2 + $0x4d4] ss:$8 sps:$4 sm:$0xff]  }
  0xc7   :  { %2740 = vmatprep.subr.bf16.mxu1 %v9392_v63  ;;  %v9476_v63 = vld [vmem:[#allocation2 + $0x5d4] ss:$8 sps:$4 sm:$0xff]  }
  0xc9   :  { %2698 = vmatpush2.bf16.msra.mxu0 %v9387_v0  ;;  %v9471_v0 = vld [vmem:[#allocation2 + $0x4d0] ss:$8 sps:$4 sm:$0xff]  }
  0xca   :  { %2741 = vmatpush2.bf16.msra.mxu1 %v9390_v1  ;;  %2699 = vmatprep.subr.bf16.mxu0 %v9395_v2  ;;  %v9474_v1 = vld [vmem:[#allocation2 + $0x5d0] ss:$8 sps:$4 sm:$0xff]   ;;  %v9479_v2 = vld [vmem:[#allocation2 + $0x4c4] ss:$8 sps:$4 sm:$0xff]  }
  0xcb   :  { %2742 = vmatprep.subr.bf16.mxu1 %v9398_v3  ;;  %v9482_v3 = vld [vmem:[#allocation2 + $0x5c4] ss:$8 sps:$4 sm:$0xff]  }
  0xcd   :  { %2700 = vmatpush2.bf16.msra.mxu0 %v9393_v4  ;;  %v9477_v4 = vld [vmem:[#allocation2 + $0x4c0] ss:$8 sps:$4 sm:$0xff]  }
  0xce   :  { %2743 = vmatpush2.bf16.msra.mxu1 %v9396_v5  ;;  %2701 = vmatprep.subr.bf16.mxu0 %v9401_v6  ;;  %v9480_v5 = vld [vmem:[#allocation2 + $0x5c0] ss:$8 sps:$4 sm:$0xff]   ;;  %v9485_v6 = vld [vmem:[#allocation2 + $0x4b4] ss:$8 sps:$4 sm:$0xff]  }
  0xcf   :  { %2744 = vmatprep.subr.bf16.mxu1 %v9404_v7  ;;  %v9488_v7 = vld [vmem:[#allocation2 + $0x5b4] ss:$8 sps:$4 sm:$0xff]  }
  0xd1   :  { %2702 = vmatpush2.bf16.msra.mxu0 %v9399_v8  ;;  %v9483_v8 = vld [vmem:[#allocation2 + $0x4b0] ss:$8 sps:$4 sm:$0xff]  }
  0xd2   :  { %2745 = vmatpush2.bf16.msra.mxu1 %v9402_v9  ;;  %2703 = vmatprep.subr.bf16.mxu0 %v9407_v10  ;;  %v9486_v9 = vld [vmem:[#allocation2 + $0x5b0] ss:$8 sps:$4 sm:$0xff]   ;;  %v9491_v10 = vld [vmem:[#allocation2 + $0x4a4] ss:$8 sps:$4 sm:$0xff]  }
  0xd3   :  { %2746 = vmatprep.subr.bf16.mxu1 %v9410_v11  ;;  %v9494_v11 = vld [vmem:[#allocation2 + $0x5a4] ss:$8 sps:$4 sm:$0xff]  }
  0xd5   :  { %2704 = vmatpush2.bf16.msra.mxu0 %v9405_v12  ;;  %v9489_v12 = vld [vmem:[#allocation2 + $0x4a0] ss:$8 sps:$4 sm:$0xff]  }
  0xd6   :  { %2747 = vmatpush2.bf16.msra.mxu1 %v9408_v13  ;;  %2759 = vmatprep.subr.bf16.mxu0 %v9413_v14  ;;  %v9492_v13 = vld [vmem:[#allocation2 + $0x5a0] ss:$8 sps:$4 sm:$0xff]   ;;  %v9497_v14 = vld [vmem:[#allocation2 + $0x494] ss:$8 sps:$4 sm:$0xff]  }
  0xd7   :  { %2802 = vmatprep.subr.bf16.mxu1 %v9416_v15  ;;  %v9500_v15 = vld [vmem:[#allocation2 + $0x594] ss:$8 sps:$4 sm:$0xff]  }
  0xd8   :  { %2706 = vmatmul.mubr.bf16.vlgmr.msra.gmra.mxu0 %v8122_v16  ;;  %v9495_v16 = vld [vmem:[#allocation2 + $0x490] ss:$8 sps:$4 sm:$0xff]  }
  0xd9   :  { %2749 = vmatmul.mubr.bf16.vlgmr.msra.gmra.mxu1 %v8124_v17  ;;  %2760 = vmatpush1.bf16.msra.mxu0 %v9411_v18  ;;  %v9498_v17 = vld [vmem:[#allocation2 + $0x590] ss:$8 sps:$4 sm:$0xff]   ;;  %v9503_v18 = vld [vmem:[#allocation2 + $0x484] ss:$8 sps:$4 sm:$0xff]  }
  0xda   :  { %2803 = vmatpush1.bf16.msra.mxu1 %v9414_v19  ;;  %2761 = vmatprep.subr.bf16.mxu0 %v9419_v20  ;;  %v9506_v19 = vld [vmem:[#allocation2 + $0x584] ss:$8 sps:$4 sm:$0xff]   ;;  %v9501_v20 = vld [vmem:[#allocation2 + $0x480] ss:$8 sps:$4 sm:$0xff]  }
  0xdb   :  { %2804 = vmatprep.subr.bf16.mxu1 %v9422_v21  ;;  %2791 = vmatprep.mubr.bf16.mxu0 %v8127_v29  ;;  %v9504_v21 = vld [vmem:[#allocation2 + $0x580] ss:$8 sps:$4 sm:$0xff]   ;;  %v10702_v29 = vld [vmem:[%s10919_s0 + $0x90] sm:$0xff] }
  0xdc   :  { %2834 = vmatprep.mubr.bf16.mxu1 %v8129_v31  ;;  %v8126_v31 = vcombine.low %v10673_v24, %v10678_v25  ;;  %v9513_v25 = vld [vmem:[#allocation2 + $0x660] ss:$8 sps:$4 sm:$0xff]  }
  0xdd   :  { %2762 = vmatpush1.bf16.msra.mxu0 %v9417_v22  ;;  %v9509_v22 = vld [vmem:[#allocation2 + $0x674] ss:$8 sps:$4 sm:$0xff]  }
  0xde   :  { %2805 = vmatpush1.bf16.msra.mxu1 %v9420_v23  ;;  %2763 = vmatprep.subr.bf16.mxu0 %v9425_v28  ;;  %v9512_v23 = vld [vmem:[#allocation2 + $0x774] ss:$8 sps:$4 sm:$0xff]  }
  0xdf   :  { %2806 = vmatprep.subr.bf16.mxu1 %v9428_v30  ;;  %v10697_v28 = vld [vmem:[%s10919_s0 + $0x30] sm:$0xff]  ;;  %v10707_v30 = vld [vmem:[%s10919_s0 + $0x38] sm:$0xff] }
  0xe1   :  { %2764 = vmatpush1.bf16.msra.mxu0 %v9423_v32  ;;  %v8128_v32 = vcombine.low %v10683_v26, %v10688_v27  ;;  %v9516_v26 = vld [vmem:[#allocation2 + $0x760] ss:$8 sps:$4 sm:$0xff]   ;;  %v9521_v27 = vld [vmem:[#allocation2 + $0x654] ss:$8 sps:$4 sm:$0xff]  }
  0xe2   :  { %2807 = vmatpush1.bf16.msra.mxu1 %v9426_v33  ;;  %2765 = vmatprep.subr.bf16.mxu0 %v9431_v34  ;;  %v10716_v33 = vld [vmem:[%s10919_s0 + $0x98] sm:$0xff] }
  0xe3   :  { %2808 = vmatprep.subr.bf16.mxu1 %v9434_v35  ;;  %v9507_v34 = vld [vmem:[#allocation2 + $0x670] ss:$8 sps:$4 sm:$0xff]   ;;  %v8133_v24 = vcombine.high %v10707_v30, %v10716_v33 }
  0xe4   :  { %v9510_v35 = vld [vmem:[#allocation2 + $0x770] ss:$8 sps:$4 sm:$0xff]  }
  0xe5   :  { %2766 = vmatpush1.bf16.msra.mxu0 %v9429_v36  ;;  %v9515_v36 = vld [vmem:[#allocation2 + $0x664] ss:$8 sps:$4 sm:$0xff]  }
  0xe6   :  { %2809 = vmatpush1.bf16.msra.mxu1 %v9432_v37  ;;  %2767 = vmatprep.subr.bf16.mxu0 %v9437_v38  ;;  %v9518_v37 = vld [vmem:[#allocation2 + $0x764] ss:$8 sps:$4 sm:$0xff]   ;;  %v8131_v38 = vcombine.high %v10697_v28, %v10702_v29 }
  0xe7   :  { %2810 = vmatprep.subr.bf16.mxu1 %v9440_v39  ;;  %v9524_v39 = vld [vmem:[#allocation2 + $0x754] ss:$8 sps:$4 sm:$0xff]  }
  0xe9   :  { %2768 = vmatpush1.bf16.msra.mxu0 %v9435_v40  ;;  %v9519_v40 = vld [vmem:[#allocation2 + $0x650] ss:$8 sps:$4 sm:$0xff]  }
  0xea   :  { %2811 = vmatpush1.bf16.msra.mxu1 %v9438_v41  ;;  %2769 = vmatprep.subr.bf16.mxu0 %v9443_v42  ;;  %v9522_v41 = vld [vmem:[#allocation2 + $0x750] ss:$8 sps:$4 sm:$0xff]   ;;  %v9527_v42 = vld [vmem:[#allocation2 + $0x644] ss:$8 sps:$4 sm:$0xff]  }
  0xeb   :  { %2812 = vmatprep.subr.bf16.mxu1 %v9446_v43  ;;  %v9530_v43 = vld [vmem:[#allocation2 + $0x744] ss:$8 sps:$4 sm:$0xff]  }
  0xed   :  { %2770 = vmatpush1.bf16.msra.mxu0 %v9441_v44  ;;  %v9525_v44 = vld [vmem:[#allocation2 + $0x640] ss:$8 sps:$4 sm:$0xff]  }
  0xee   :  { %2813 = vmatpush1.bf16.msra.mxu1 %v9444_v45  ;;  %2771 = vmatprep.subr.bf16.mxu0 %v9449_v46  ;;  %v9528_v45 = vld [vmem:[#allocation2 + $0x740] ss:$8 sps:$4 sm:$0xff]   ;;  %v9533_v46 = vld [vmem:[#allocation2 + $0x634] ss:$8 sps:$4 sm:$0xff]  }
  0xef   :  { %2814 = vmatprep.subr.bf16.mxu1 %v9452_v47  ;;  %v9536_v47 = vld [vmem:[#allocation2 + $0x734] ss:$8 sps:$4 sm:$0xff]  }
  0xf1   :  { %2772 = vmatpush1.bf16.msra.mxu0 %v9447_v48  ;;  %v9531_v48 = vld [vmem:[#allocation2 + $0x630] ss:$8 sps:$4 sm:$0xff]  }
  0xf2   :  { %2815 = vmatpush1.bf16.msra.mxu1 %v9450_v49  ;;  %2773 = vmatprep.subr.bf16.mxu0 %v9455_v50  ;;  %v9534_v49 = vld [vmem:[#allocation2 + $0x730] ss:$8 sps:$4 sm:$0xff]   ;;  %v9539_v50 = vld [vmem:[#allocation2 + $0x624] ss:$8 sps:$4 sm:$0xff]  }
  0xf3   :  { %2816 = vmatprep.subr.bf16.mxu1 %v9458_v51  ;;  %v9542_v51 = vld [vmem:[#allocation2 + $0x724] ss:$8 sps:$4 sm:$0xff]  }
  0xf5   :  { %2774 = vmatpush1.bf16.msra.mxu0 %v9453_v52  ;;  %v9537_v52 = vld [vmem:[#allocation2 + $0x620] ss:$8 sps:$4 sm:$0xff]  }
  0xf6   :  { %2817 = vmatpush1.bf16.msra.mxu1 %v9456_v53  ;;  %2775 = vmatprep.subr.bf16.mxu0 %v9461_v54  ;;  %v9540_v53 = vld [vmem:[#allocation2 + $0x720] ss:$8 sps:$4 sm:$0xff]   ;;  %v9545_v54 = vld [vmem:[#allocation2 + $0x614] ss:$8 sps:$4 sm:$0xff]  }
  0xf7   :  { %2818 = vmatprep.subr.bf16.mxu1 %v9464_v55  ;;  %v9548_v55 = vld [vmem:[#allocation2 + $0x714] ss:$8 sps:$4 sm:$0xff]  }
  0xf9   :  { %2776 = vmatpush2.bf16.msra.mxu0 %v9459_v56  ;;  %v9543_v56 = vld [vmem:[#allocation2 + $0x610] ss:$8 sps:$4 sm:$0xff]  }
  0xfa   :  { %2819 = vmatpush2.bf16.msra.mxu1 %v9462_v57  ;;  %2777 = vmatprep.subr.bf16.mxu0 %v9467_v58  ;;  %v9546_v57 = vld [vmem:[#allocation2 + $0x710] ss:$8 sps:$4 sm:$0xff]   ;;  %v9551_v58 = vld [vmem:[#allocation2 + $0x604] ss:$8 sps:$4 sm:$0xff]  }
  0xfb   :  { %2820 = vmatprep.subr.bf16.mxu1 %v9470_v59  ;;  %v9554_v59 = vld [vmem:[#allocation2 + $0x704] ss:$8 sps:$4 sm:$0xff]  }
  0xfd   :  { %2778 = vmatpush2.bf16.msra.mxu0 %v9465_v60  ;;  %v9549_v60 = vld [vmem:[#allocation2 + $0x600] ss:$8 sps:$4 sm:$0xff]  }
  0xfe   :  { %2821 = vmatpush2.bf16.msra.mxu1 %v9468_v61  ;;  %2779 = vmatprep.subr.bf16.mxu0 %v9473_v62  ;;  %v9552_v61 = vld [vmem:[#allocation2 + $0x700] ss:$8 sps:$4 sm:$0xff]   ;;  %v9557_v62 = vld [vmem:[#allocation2 + $0x6f4] ss:$8 sps:$4 sm:$0xff]  }
  0xff   :  { %2822 = vmatprep.subr.bf16.mxu1 %v9476_v63  ;;  %v9560_v63 = vld [vmem:[#allocation2 + $0x7f4] ss:$8 sps:$4 sm:$0xff]  }
 0x101   :  { %2780 = vmatpush2.bf16.msra.mxu0 %v9471_v0  ;;  %v9555_v0 = vld [vmem:[#allocation2 + $0x6f0] ss:$8 sps:$4 sm:$0xff]  }
 0x102   :  { %2823 = vmatpush2.bf16.msra.mxu1 %v9474_v1  ;;  %2781 = vmatprep.subr.bf16.mxu0 %v9479_v2  ;;  %v9558_v1 = vld [vmem:[#allocation2 + $0x7f0] ss:$8 sps:$4 sm:$0xff]   ;;  %v9563_v2 = vld [vmem:[#allocation2 + $0x6e4] ss:$8 sps:$4 sm:$0xff]  }
 0x103   :  { %2824 = vmatprep.subr.bf16.mxu1 %v9482_v3  ;;  %v9566_v3 = vld [vmem:[#allocation2 + $0x7e4] ss:$8 sps:$4 sm:$0xff]  }
 0x105   :  { %2782 = vmatpush2.bf16.msra.mxu0 %v9477_v4  ;;  %v9561_v4 = vld [vmem:[#allocation2 + $0x6e0] ss:$8 sps:$4 sm:$0xff]  }
 0x106   :  { %2825 = vmatpush2.bf16.msra.mxu1 %v9480_v5  ;;  %2783 = vmatprep.subr.bf16.mxu0 %v9485_v6  ;;  %v9564_v5 = vld [vmem:[#allocation2 + $0x7e0] ss:$8 sps:$4 sm:$0xff]   ;;  %v9569_v6 = vld [vmem:[#allocation2 + $0x6d4] ss:$8 sps:$4 sm:$0xff]  }
 0x107   :  { %2826 = vmatprep.subr.bf16.mxu1 %v9488_v7  ;;  %v9572_v7 = vld [vmem:[#allocation2 + $0x7d4] ss:$8 sps:$4 sm:$0xff]  }
 0x109   :  { %2784 = vmatpush2.bf16.msra.mxu0 %v9483_v8  ;;  %v9567_v8 = vld [vmem:[#allocation2 + $0x6d0] ss:$8 sps:$4 sm:$0xff]  }
 0x10a   :  { %2827 = vmatpush2.bf16.msra.mxu1 %v9486_v9  ;;  %2785 = vmatprep.subr.bf16.mxu0 %v9491_v10  ;;  %v9570_v9 = vld [vmem:[#allocation2 + $0x7d0] ss:$8 sps:$4 sm:$0xff]   ;;  %v9575_v10 = vld [vmem:[#allocation2 + $0x6c4] ss:$8 sps:$4 sm:$0xff]  }
 0x10b   :  { %2828 = vmatprep.subr.bf16.mxu1 %v9494_v11  ;;  %v9578_v11 = vld [vmem:[#allocation2 + $0x7c4] ss:$8 sps:$4 sm:$0xff]  }
 0x10d   :  { %2786 = vmatpush2.bf16.msra.mxu0 %v9489_v12  ;;  %v9573_v12 = vld [vmem:[#allocation2 + $0x6c0] ss:$8 sps:$4 sm:$0xff]  }
 0x10e   :  { %2829 = vmatpush2.bf16.msra.mxu1 %v9492_v13  ;;  %2787 = vmatprep.subr.bf16.mxu0 %v9497_v14  ;;  %v9576_v13 = vld [vmem:[#allocation2 + $0x7c0] ss:$8 sps:$4 sm:$0xff]   ;;  %v9581_v14 = vld [vmem:[#allocation2 + $0x6b4] ss:$8 sps:$4 sm:$0xff]  }
 0x10f   :  { %2830 = vmatprep.subr.bf16.mxu1 %v9500_v15  ;;  %v9584_v15 = vld [vmem:[#allocation2 + $0x7b4] ss:$8 sps:$4 sm:$0xff]  }
 0x111   :  { %2788 = vmatpush2.bf16.msra.mxu0 %v9495_v16  ;;  %v9579_v16 = vld [vmem:[#allocation2 + $0x6b0] ss:$8 sps:$4 sm:$0xff]  }
 0x112   :  { %2831 = vmatpush2.bf16.msra.mxu1 %v9498_v17  ;;  %2789 = vmatprep.subr.bf16.mxu0 %v9503_v18  ;;  %v9582_v17 = vld [vmem:[#allocation2 + $0x7b0] ss:$8 sps:$4 sm:$0xff]   ;;  %v9587_v18 = vld [vmem:[#allocation2 + $0x6a4] ss:$8 sps:$4 sm:$0xff]  }
 0x113   :  { %2832 = vmatprep.subr.bf16.mxu1 %v9506_v19  ;;  %v9590_v19 = vld [vmem:[#allocation2 + $0x7a4] ss:$8 sps:$4 sm:$0xff]  }
 0x115   :  { %2790 = vmatpush2.bf16.msra.mxu0 %v9501_v20  ;;  %v9585_v20 = vld [vmem:[#allocation2 + $0x6a0] ss:$8 sps:$4 sm:$0xff]  }
 0x116   :  { %2833 = vmatpush2.bf16.msra.mxu1 %v9504_v21  ;;  %2845 = vmatprep.subr.bf16.mxu0 %v9509_v22  ;;  %v9588_v21 = vld [vmem:[#allocation2 + $0x7a0] ss:$8 sps:$4 sm:$0xff]   ;;  %v9593_v22 = vld [vmem:[#allocation2 + $0x694] ss:$8 sps:$4 sm:$0xff]  }
 0x117   :  { %2888 = vmatprep.subr.bf16.mxu1 %v9512_v23  ;;  %v9596_v23 = vld [vmem:[#allocation2 + $0x794] ss:$8 sps:$4 sm:$0xff]  }
 0x118   :  { %2792 = vmatmul.mubr.bf16.vlgmr.msra.gmra.mxu0 %v8126_v31  ;;  %v9591_v31 = vld [vmem:[#allocation2 + $0x690] ss:$8 sps:$4 sm:$0xff]  }
 0x119   :  { %2835 = vmatmul.mubr.bf16.vlgmr.msra.gmra.mxu1 %v8128_v32  ;;  %2846 = vmatpush1.bf16.msra.mxu0 %v9507_v34  ;;  %v9594_v32 = vld [vmem:[#allocation2 + $0x790] ss:$8 sps:$4 sm:$0xff]   ;;  %v9599_v34 = vld [vmem:[#allocation2 + $0x684] ss:$8 sps:$4 sm:$0xff]  }
 0x11a   :  { %2889 = vmatpush1.bf16.msra.mxu1 %v9510_v35  ;;  %2847 = vmatprep.subr.bf16.mxu0 %v9515_v36  ;;  %v9602_v35 = vld [vmem:[#allocation2 + $0x784] ss:$8 sps:$4 sm:$0xff]   ;;  %v9597_v36 = vld [vmem:[#allocation2 + $0x680] ss:$8 sps:$4 sm:$0xff]  }
 0x11b   :  { %2890 = vmatprep.subr.bf16.mxu1 %v9518_v37  ;;  %2877 = vmatprep.mubr.bf16.mxu0 %v8131_v38  ;;  %v9600_v37 = vld [vmem:[#allocation2 + $0x780] ss:$8 sps:$4 sm:$0xff]   ;;  %v9605_v38 = vld [vmem:[#allocation2 + $0x874] ss:$8 sps:$4 sm:$0xff]  }
 0x11c   :  { %2920 = vmatprep.mubr.bf16.mxu1 %v8133_v24  ;;  %v9608_v24 = vld [vmem:[#allocation2 + $0x974] ss:$8 sps:$4 sm:$0xff]  }
 0x11d   :  { %2848 = vmatpush1.bf16.msra.mxu0 %v9513_v25  ;;  %v10725_v25 = vld [vmem:[%s10919_s0 + $0x40] sm:$0xff] }
 0x11e   :  { %2891 = vmatpush1.bf16.msra.mxu1 %v9516_v26  ;;  %2849 = vmatprep.subr.bf16.mxu0 %v9521_v27  ;;  %v10730_v26 = vld [vmem:[%s10919_s0 + $0xa0] sm:$0xff]  ;;  %v10735_v27 = vld [vmem:[%s10919_s0 + $0x48] sm:$0xff] }
 0x11f   :  { %2892 = vmatprep.subr.bf16.mxu1 %v9524_v39  ;;  %v8130_v39 = vcombine.low %v10697_v28, %v10702_v29  ;;  %v9609_v29 = vld [vmem:[#allocation2 + $0x860] ss:$8 sps:$4 sm:$0xff]  }
 0x121   :  { %2850 = vmatpush1.bf16.msra.mxu0 %v9519_v40  ;;  %v8132_v40 = vcombine.low %v10707_v30, %v10716_v33  ;;  %v9612_v30 = vld [vmem:[#allocation2 + $0x960] ss:$8 sps:$4 sm:$0xff]   ;;  %v9617_v33 = vld [vmem:[#allocation2 + $0x854] ss:$8 sps:$4 sm:$0xff]  }
 0x122   :  { %2893 = vmatpush1.bf16.msra.mxu1 %v9522_v41  ;;  %2851 = vmatprep.subr.bf16.mxu0 %v9527_v42  ;;  %v10744_v41 = vld [vmem:[%s10919_s0 + $0xa8] sm:$0xff]  ;;  %v9603_v42 = vld [vmem:[#allocation2 + $0x870] ss:$8 sps:$4 sm:$0xff]  }
 0x123   :  { %2894 = vmatprep.subr.bf16.mxu1 %v9530_v43  ;;  %v9606_v43 = vld [vmem:[#allocation2 + $0x970] ss:$8 sps:$4 sm:$0xff]   ;;  %v8137_v28 = vcombine.high %v10735_v27, %v10744_v41 }
 0x125   :  { %2852 = vmatpush1.bf16.msra.mxu0 %v9525_v44  ;;  %v9611_v44 = vld [vmem:[#allocation2 + $0x864] ss:$8 sps:$4 sm:$0xff]  }
 0x126   :  { %2895 = vmatpush1.bf16.msra.mxu1 %v9528_v45  ;;  %2853 = vmatprep.subr.bf16.mxu0 %v9533_v46  ;;  %v9614_v45 = vld [vmem:[#allocation2 + $0x964] ss:$8 sps:$4 sm:$0xff]   ;;  %v8135_v46 = vcombine.high %v10725_v25, %v10730_v26 }
 0x127   :  { %2896 = vmatprep.subr.bf16.mxu1 %v9536_v47  ;;  %v9620_v47 = vld [vmem:[#allocation2 + $0x954] ss:$8 sps:$4 sm:$0xff]  }
 0x129   :  { %2854 = vmatpush1.bf16.msra.mxu0 %v9531_v48  ;;  %v9615_v48 = vld [vmem:[#allocation2 + $0x850] ss:$8 sps:$4 sm:$0xff]  }
 0x12a   :  { %2897 = vmatpush1.bf16.msra.mxu1 %v9534_v49  ;;  %2855 = vmatprep.subr.bf16.mxu0 %v9539_v50  ;;  %v9618_v49 = vld [vmem:[#allocation2 + $0x950] ss:$8 sps:$4 sm:$0xff]   ;;  %v9623_v50 = vld [vmem:[#allocation2 + $0x844] ss:$8 sps:$4 sm:$0xff]  }
 0x12b   :  { %2898 = vmatprep.subr.bf16.mxu1 %v9542_v51  ;;  %v9626_v51 = vld [vmem:[#allocation2 + $0x944] ss:$8 sps:$4 sm:$0xff]  }
 0x12d   :  { %2856 = vmatpush1.bf16.msra.mxu0 %v9537_v52  ;;  %v9621_v52 = vld [vmem:[#allocation2 + $0x840] ss:$8 sps:$4 sm:$0xff]  }
 0x12e   :  { %2899 = vmatpush1.bf16.msra.mxu1 %v9540_v53  ;;  %2857 = vmatprep.subr.bf16.mxu0 %v9545_v54  ;;  %v9624_v53 = vld [vmem:[#allocation2 + $0x940] ss:$8 sps:$4 sm:$0xff]   ;;  %v9629_v54 = vld [vmem:[#allocation2 + $0x834] ss:$8 sps:$4 sm:$0xff]  }
 0x12f   :  { %2900 = vmatprep.subr.bf16.mxu1 %v9548_v55  ;;  %v9632_v55 = vld [vmem:[#allocation2 + $0x934] ss:$8 sps:$4 sm:$0xff]  }
 0x131   :  { %2858 = vmatpush1.bf16.msra.mxu0 %v9543_v56  ;;  %v9627_v56 = vld [vmem:[#allocation2 + $0x830] ss:$8 sps:$4 sm:$0xff]  }
 0x132   :  { %2901 = vmatpush1.bf16.msra.mxu1 %v9546_v57  ;;  %2859 = vmatprep.subr.bf16.mxu0 %v9551_v58  ;;  %v9630_v57 = vld [vmem:[#allocation2 + $0x930] ss:$8 sps:$4 sm:$0xff]   ;;  %v9635_v58 = vld [vmem:[#allocation2 + $0x824] ss:$8 sps:$4 sm:$0xff]  }
 0x133   :  { %2902 = vmatprep.subr.bf16.mxu1 %v9554_v59  ;;  %v9638_v59 = vld [vmem:[#allocation2 + $0x924] ss:$8 sps:$4 sm:$0xff]  }
 0x135   :  { %2860 = vmatpush1.bf16.msra.mxu0 %v9549_v60  ;;  %v9633_v60 = vld [vmem:[#allocation2 + $0x820] ss:$8 sps:$4 sm:$0xff]  }
 0x136   :  { %2903 = vmatpush1.bf16.msra.mxu1 %v9552_v61  ;;  %2861 = vmatprep.subr.bf16.mxu0 %v9557_v62  ;;  %v9636_v61 = vld [vmem:[#allocation2 + $0x920] ss:$8 sps:$4 sm:$0xff]   ;;  %v9641_v62 = vld [vmem:[#allocation2 + $0x814] ss:$8 sps:$4 sm:$0xff]  }
 0x137   :  { %2904 = vmatprep.subr.bf16.mxu1 %v9560_v63  ;;  %v9644_v63 = vld [vmem:[#allocation2 + $0x914] ss:$8 sps:$4 sm:$0xff]  }
 0x139   :  { %2862 = vmatpush2.bf16.msra.mxu0 %v9555_v0  ;;  %v9639_v0 = vld [vmem:[#allocation2 + $0x810] ss:$8 sps:$4 sm:$0xff]  }
 0x13a   :  { %2905 = vmatpush2.bf16.msra.mxu1 %v9558_v1  ;;  %2863 = vmatprep.subr.bf16.mxu0 %v9563_v2  ;;  %v9642_v1 = vld [vmem:[#allocation2 + $0x910] ss:$8 sps:$4 sm:$0xff]   ;;  %v9647_v2 = vld [vmem:[#allocation2 + $0x804] ss:$8 sps:$4 sm:$0xff]  }
 0x13b   :  { %2906 = vmatprep.subr.bf16.mxu1 %v9566_v3  ;;  %v9650_v3 = vld [vmem:[#allocation2 + $0x904] ss:$8 sps:$4 sm:$0xff]  }
 0x13d   :  { %2864 = vmatpush2.bf16.msra.mxu0 %v9561_v4  ;;  %v9645_v4 = vld [vmem:[#allocation2 + $0x800] ss:$8 sps:$4 sm:$0xff]  }
 0x13e   :  { %2907 = vmatpush2.bf16.msra.mxu1 %v9564_v5  ;;  %2865 = vmatprep.subr.bf16.mxu0 %v9569_v6  ;;  %v9648_v5 = vld [vmem:[#allocation2 + $0x900] ss:$8 sps:$4 sm:$0xff]   ;;  %v9653_v6 = vld [vmem:[#allocation2 + $0x8f4] ss:$8 sps:$4 sm:$0xff]  }
 0x13f   :  { %2908 = vmatprep.subr.bf16.mxu1 %v9572_v7  ;;  %v9656_v7 = vld [vmem:[#allocation2 + $0x9f4] ss:$8 sps:$4 sm:$0xff]  }
 0x141   :  { %2866 = vmatpush2.bf16.msra.mxu0 %v9567_v8  ;;  %v9651_v8 = vld [vmem:[#allocation2 + $0x8f0] ss:$8 sps:$4 sm:$0xff]  }
 0x142   :  { %2909 = vmatpush2.bf16.msra.mxu1 %v9570_v9  ;;  %2867 = vmatprep.subr.bf16.mxu0 %v9575_v10  ;;  %v9654_v9 = vld [vmem:[#allocation2 + $0x9f0] ss:$8 sps:$4 sm:$0xff]   ;;  %v9659_v10 = vld [vmem:[#allocation2 + $0x8e4] ss:$8 sps:$4 sm:$0xff]  }
 0x143   :  { %2910 = vmatprep.subr.bf16.mxu1 %v9578_v11  ;;  %v9662_v11 = vld [vmem:[#allocation2 + $0x9e4] ss:$8 sps:$4 sm:$0xff]  }
 0x145   :  { %2868 = vmatpush2.bf16.msra.mxu0 %v9573_v12  ;;  %v9657_v12 = vld [vmem:[#allocation2 + $0x8e0] ss:$8 sps:$4 sm:$0xff]  }
 0x146   :  { %2911 = vmatpush2.bf16.msra.mxu1 %v9576_v13  ;;  %2869 = vmatprep.subr.bf16.mxu0 %v9581_v14  ;;  %v9660_v13 = vld [vmem:[#allocation2 + $0x9e0] ss:$8 sps:$4 sm:$0xff]   ;;  %v9665_v14 = vld [vmem:[#allocation2 + $0x8d4] ss:$8 sps:$4 sm:$0xff]  }
 0x147   :  { %2912 = vmatprep.subr.bf16.mxu1 %v9584_v15  ;;  %v9668_v15 = vld [vmem:[#allocation2 + $0x9d4] ss:$8 sps:$4 sm:$0xff]  }
 0x149   :  { %2870 = vmatpush2.bf16.msra.mxu0 %v9579_v16  ;;  %v9663_v16 = vld [vmem:[#allocation2 + $0x8d0] ss:$8 sps:$4 sm:$0xff]  }
 0x14a   :  { %2913 = vmatpush2.bf16.msra.mxu1 %v9582_v17  ;;  %2871 = vmatprep.subr.bf16.mxu0 %v9587_v18  ;;  %v9666_v17 = vld [vmem:[#allocation2 + $0x9d0] ss:$8 sps:$4 sm:$0xff]   ;;  %v9671_v18 = vld [vmem:[#allocation2 + $0x8c4] ss:$8 sps:$4 sm:$0xff]  }
 0x14b   :  { %2914 = vmatprep.subr.bf16.mxu1 %v9590_v19  ;;  %v9674_v19 = vld [vmem:[#allocation2 + $0x9c4] ss:$8 sps:$4 sm:$0xff]  }
 0x14d   :  { %2872 = vmatpush2.bf16.msra.mxu0 %v9585_v20  ;;  %v9669_v20 = vld [vmem:[#allocation2 + $0x8c0] ss:$8 sps:$4 sm:$0xff]  }
 0x14e   :  { %2915 = vmatpush2.bf16.msra.mxu1 %v9588_v21  ;;  %2873 = vmatprep.subr.bf16.mxu0 %v9593_v22  ;;  %v9672_v21 = vld [vmem:[#allocation2 + $0x9c0] ss:$8 sps:$4 sm:$0xff]   ;;  %v9677_v22 = vld [vmem:[#allocation2 + $0x8b4] ss:$8 sps:$4 sm:$0xff]  }
 0x14f   :  { %2916 = vmatprep.subr.bf16.mxu1 %v9596_v23  ;;  %v9680_v23 = vld [vmem:[#allocation2 + $0x9b4] ss:$8 sps:$4 sm:$0xff]  }
 0x151   :  { %2874 = vmatpush2.bf16.msra.mxu0 %v9591_v31  ;;  %v9675_v31 = vld [vmem:[#allocation2 + $0x8b0] ss:$8 sps:$4 sm:$0xff]  }
 0x152   :  { %2917 = vmatpush2.bf16.msra.mxu1 %v9594_v32  ;;  %2875 = vmatprep.subr.bf16.mxu0 %v9599_v34  ;;  %v9678_v32 = vld [vmem:[#allocation2 + $0x9b0] ss:$8 sps:$4 sm:$0xff]   ;;  %v9683_v34 = vld [vmem:[#allocation2 + $0x8a4] ss:$8 sps:$4 sm:$0xff]  }
 0x153   :  { %2918 = vmatprep.subr.bf16.mxu1 %v9602_v35  ;;  %v9686_v35 = vld [vmem:[#allocation2 + $0x9a4] ss:$8 sps:$4 sm:$0xff]  }
 0x155   :  { %2876 = vmatpush2.bf16.msra.mxu0 %v9597_v36  ;;  %v9681_v36 = vld [vmem:[#allocation2 + $0x8a0] ss:$8 sps:$4 sm:$0xff]  }
 0x156   :  { %2919 = vmatpush2.bf16.msra.mxu1 %v9600_v37  ;;  %2931 = vmatprep.subr.bf16.mxu0 %v9605_v38  ;;  %v9684_v37 = vld [vmem:[#allocation2 + $0x9a0] ss:$8 sps:$4 sm:$0xff]   ;;  %v9689_v38 = vld [vmem:[#allocation2 + $0x894] ss:$8 sps:$4 sm:$0xff]  }
 0x157   :  { %2974 = vmatprep.subr.bf16.mxu1 %v9608_v24  ;;  %v9692_v24 = vld [vmem:[#allocation2 + $0x994] ss:$8 sps:$4 sm:$0xff]  }
 0x158   :  { %2878 = vmatmul.mubr.bf16.vlgmr.msra.gmra.mxu0 %v8130_v39  ;;  %v9687_v39 = vld [vmem:[#allocation2 + $0x890] ss:$8 sps:$4 sm:$0xff]  }
 0x159   :  { %2921 = vmatmul.mubr.bf16.vlgmr.msra.gmra.mxu1 %v8132_v40  ;;  %2932 = vmatpush1.bf16.msra.mxu0 %v9603_v42  ;;  %v9690_v40 = vld [vmem:[#allocation2 + $0x990] ss:$8 sps:$4 sm:$0xff]   ;;  %v9695_v42 = vld [vmem:[#allocation2 + $0x884] ss:$8 sps:$4 sm:$0xff]  }
 0x15a   :  { %2975 = vmatpush1.bf16.msra.mxu1 %v9606_v43  ;;  %2933 = vmatprep.subr.bf16.mxu0 %v9611_v44  ;;  %v9698_v43 = vld [vmem:[#allocation2 + $0x984] ss:$8 sps:$4 sm:$0xff]   ;;  %v9693_v44 = vld [vmem:[#allocation2 + $0x880] ss:$8 sps:$4 sm:$0xff]  }
 0x15b   :  { %2976 = vmatprep.subr.bf16.mxu1 %v9614_v45  ;;  %2963 = vmatprep.mubr.bf16.mxu0 %v8135_v46  ;;  %v9696_v45 = vld [vmem:[#allocation2 + $0x980] ss:$8 sps:$4 sm:$0xff]   ;;  %v9701_v46 = vld [vmem:[#allocation2 + $0xa74] ss:$8 sps:$4 sm:$0xff]  }
 0x15c   :  { %3006 = vmatprep.mubr.bf16.mxu1 %v8137_v28  ;;  %v9704_v28 = vld [vmem:[#allocation2 + $0xb74] ss:$8 sps:$4 sm:$0xff]  }
 0x15d   :  { %2934 = vmatpush1.bf16.msra.mxu0 %v9609_v29  ;;  %v10753_v29 = vld [vmem:[%s10919_s0 + $0x50] sm:$0xff] }
 0x15e   :  { %2977 = vmatpush1.bf16.msra.mxu1 %v9612_v30  ;;  %2935 = vmatprep.subr.bf16.mxu0 %v9617_v33  ;;  %v10758_v30 = vld [vmem:[%s10919_s0 + $0xb0] sm:$0xff]  ;;  %v10763_v33 = vld [vmem:[%s10919_s0 + $0x58] sm:$0xff] }
 0x15f   :  { %2978 = vmatprep.subr.bf16.mxu1 %v9620_v47  ;;  %v10768_v47 = vld [vmem:[%s10919_s0 + $0xb8] sm:$0xff] }
 0x161   :  { %2936 = vmatpush1.bf16.msra.mxu0 %v9615_v48  ;;  %v9699_v48 = vld [vmem:[#allocation2 + $0xa70] ss:$8 sps:$4 sm:$0xff]  }
 0x162   :  { %2979 = vmatpush1.bf16.msra.mxu1 %v9618_v49  ;;  %2937 = vmatprep.subr.bf16.mxu0 %v9623_v50  ;;  %v9702_v49 = vld [vmem:[#allocation2 + $0xb70] ss:$8 sps:$4 sm:$0xff]   ;;  %v8134_v50 = vcombine.low %v10725_v25, %v10730_v26  ;;  %v9713_v25 = vld [vmem:[#allocation2 + $0xa54] ss:$8 sps:$4 sm:$0xff]  }
 0x163   :  { %2980 = vmatprep.subr.bf16.mxu1 %v9626_v51  ;;  %v8136_v51 = vcombine.low %v10735_v27, %v10744_v41  ;;  %v9716_v26 = vld [vmem:[#allocation2 + $0xb54] ss:$8 sps:$4 sm:$0xff]   ;;  %v9711_v27 = vld [vmem:[#allocation2 + $0xa50] ss:$8 sps:$4 sm:$0xff]  }
 0x164   :  { %v9714_v41 = vld [vmem:[#allocation2 + $0xb50] ss:$8 sps:$4 sm:$0xff]  }
 0x165   :  { %2938 = vmatpush1.bf16.msra.mxu0 %v9621_v52  ;;  %v9707_v52 = vld [vmem:[#allocation2 + $0xa64] ss:$8 sps:$4 sm:$0xff]  }
 0x166   :  { %2981 = vmatpush1.bf16.msra.mxu1 %v9624_v53  ;;  %2939 = vmatprep.subr.bf16.mxu0 %v9629_v54  ;;  %v9710_v53 = vld [vmem:[#allocation2 + $0xb64] ss:$8 sps:$4 sm:$0xff]   ;;  %v9705_v54 = vld [vmem:[#allocation2 + $0xa60] ss:$8 sps:$4 sm:$0xff]  }
 0x167   :  { %2982 = vmatprep.subr.bf16.mxu1 %v9632_v55  ;;  %v9708_v55 = vld [vmem:[#allocation2 + $0xb60] ss:$8 sps:$4 sm:$0xff]  }
 0x169   :  { %2940 = vmatpush1.bf16.msra.mxu0 %v9627_v56  ;;  %v8139_v56 = vcombine.high %v10753_v29, %v10758_v30 }
 0x16a   :  { %2983 = vmatpush1.bf16.msra.mxu1 %v9630_v57  ;;  %2941 = vmatprep.subr.bf16.mxu0 %v9635_v58  ;;  %v8141_v57 = vcombine.high %v10763_v33, %v10768_v47  ;;  %v9719_v58 = vld [vmem:[#allocation2 + $0xa44] ss:$8 sps:$4 sm:$0xff]  }
 0x16b   :  { %2984 = vmatprep.subr.bf16.mxu1 %v9638_v59  ;;  %v9722_v59 = vld [vmem:[#allocation2 + $0xb44] ss:$8 sps:$4 sm:$0xff]  }
 0x16d   :  { %2942 = vmatpush1.bf16.msra.mxu0 %v9633_v60  ;;  %v9717_v60 = vld [vmem:[#allocation2 + $0xa40] ss:$8 sps:$4 sm:$0xff]  }
 0x16e   :  { %2985 = vmatpush1.bf16.msra.mxu1 %v9636_v61  ;;  %2943 = vmatprep.subr.bf16.mxu0 %v9641_v62  ;;  %v9720_v61 = vld [vmem:[#allocation2 + $0xb40] ss:$8 sps:$4 sm:$0xff]   ;;  %v9725_v62 = vld [vmem:[#allocation2 + $0xa34] ss:$8 sps:$4 sm:$0xff]  }
 0x16f   :  { %2986 = vmatprep.subr.bf16.mxu1 %v9644_v63  ;;  %v9728_v63 = vld [vmem:[#allocation2 + $0xb34] ss:$8 sps:$4 sm:$0xff]  }
 0x171   :  { %2944 = vmatpush1.bf16.msra.mxu0 %v9639_v0  ;;  %v9723_v0 = vld [vmem:[#allocation2 + $0xa30] ss:$8 sps:$4 sm:$0xff]  }
 0x172   :  { %2987 = vmatpush1.bf16.msra.mxu1 %v9642_v1  ;;  %2945 = vmatprep.subr.bf16.mxu0 %v9647_v2  ;;  %v9726_v1 = vld [vmem:[#allocation2 + $0xb30] ss:$8 sps:$4 sm:$0xff]   ;;  %v9731_v2 = vld [vmem:[#allocation2 + $0xa24] ss:$8 sps:$4 sm:$0xff]  }
 0x173   :  { %2988 = vmatprep.subr.bf16.mxu1 %v9650_v3  ;;  %v9734_v3 = vld [vmem:[#allocation2 + $0xb24] ss:$8 sps:$4 sm:$0xff]  }
 0x175   :  { %2946 = vmatpush1.bf16.msra.mxu0 %v9645_v4  ;;  %v9729_v4 = vld [vmem:[#allocation2 + $0xa20] ss:$8 sps:$4 sm:$0xff]  }
 0x176   :  { %2989 = vmatpush1.bf16.msra.mxu1 %v9648_v5  ;;  %2947 = vmatprep.subr.bf16.mxu0 %v9653_v6  ;;  %v9732_v5 = vld [vmem:[#allocation2 + $0xb20] ss:$8 sps:$4 sm:$0xff]   ;;  %v9737_v6 = vld [vmem:[#allocation2 + $0xa14] ss:$8 sps:$4 sm:$0xff]  }
 0x177   :  { %2990 = vmatprep.subr.bf16.mxu1 %v9656_v7  ;;  %v9740_v7 = vld [vmem:[#allocation2 + $0xb14] ss:$8 sps:$4 sm:$0xff]  }
 0x179   :  { %2948 = vmatpush2.bf16.msra.mxu0 %v9651_v8  ;;  %v9735_v8 = vld [vmem:[#allocation2 + $0xa10] ss:$8 sps:$4 sm:$0xff]  }
 0x17a   :  { %2991 = vmatpush2.bf16.msra.mxu1 %v9654_v9  ;;  %2949 = vmatprep.subr.bf16.mxu0 %v9659_v10  ;;  %v9738_v9 = vld [vmem:[#allocation2 + $0xb10] ss:$8 sps:$4 sm:$0xff]   ;;  %v9743_v10 = vld [vmem:[#allocation2 + $0xa04] ss:$8 sps:$4 sm:$0xff]  }
 0x17b   :  { %2992 = vmatprep.subr.bf16.mxu1 %v9662_v11  ;;  %v9746_v11 = vld [vmem:[#allocation2 + $0xb04] ss:$8 sps:$4 sm:$0xff]  }
 0x17d   :  { %2950 = vmatpush2.bf16.msra.mxu0 %v9657_v12  ;;  %v9741_v12 = vld [vmem:[#allocation2 + $0xa00] ss:$8 sps:$4 sm:$0xff]  }
 0x17e   :  { %2993 = vmatpush2.bf16.msra.mxu1 %v9660_v13  ;;  %2951 = vmatprep.subr.bf16.mxu0 %v9665_v14  ;;  %v9744_v13 = vld [vmem:[#allocation2 + $0xb00] ss:$8 sps:$4 sm:$0xff]   ;;  %v9749_v14 = vld [vmem:[#allocation2 + $0xaf4] ss:$8 sps:$4 sm:$0xff]  }
 0x17f   :  { %2994 = vmatprep.subr.bf16.mxu1 %v9668_v15  ;;  %v9752_v15 = vld [vmem:[#allocation2 + $0xbf4] ss:$8 sps:$4 sm:$0xff]  }
 0x181   :  { %2952 = vmatpush2.bf16.msra.mxu0 %v9663_v16  ;;  %v9747_v16 = vld [vmem:[#allocation2 + $0xaf0] ss:$8 sps:$4 sm:$0xff]  }
 0x182   :  { %2995 = vmatpush2.bf16.msra.mxu1 %v9666_v17  ;;  %2953 = vmatprep.subr.bf16.mxu0 %v9671_v18  ;;  %v9750_v17 = vld [vmem:[#allocation2 + $0xbf0] ss:$8 sps:$4 sm:$0xff]   ;;  %v9755_v18 = vld [vmem:[#allocation2 + $0xae4] ss:$8 sps:$4 sm:$0xff]  }
 0x183   :  { %2996 = vmatprep.subr.bf16.mxu1 %v9674_v19  ;;  %v9758_v19 = vld [vmem:[#allocation2 + $0xbe4] ss:$8 sps:$4 sm:$0xff]  }
 0x185   :  { %2954 = vmatpush2.bf16.msra.mxu0 %v9669_v20  ;;  %v9753_v20 = vld [vmem:[#allocation2 + $0xae0] ss:$8 sps:$4 sm:$0xff]  }
 0x186   :  { %2997 = vmatpush2.bf16.msra.mxu1 %v9672_v21  ;;  %2955 = vmatprep.subr.bf16.mxu0 %v9677_v22  ;;  %v9756_v21 = vld [vmem:[#allocation2 + $0xbe0] ss:$8 sps:$4 sm:$0xff]   ;;  %v9761_v22 = vld [vmem:[#allocation2 + $0xad4] ss:$8 sps:$4 sm:$0xff]  }
 0x187   :  { %2998 = vmatprep.subr.bf16.mxu1 %v9680_v23  ;;  %v9764_v23 = vld [vmem:[#allocation2 + $0xbd4] ss:$8 sps:$4 sm:$0xff]  }
 0x189   :  { %2956 = vmatpush2.bf16.msra.mxu0 %v9675_v31  ;;  %v9759_v31 = vld [vmem:[#allocation2 + $0xad0] ss:$8 sps:$4 sm:$0xff]  }
 0x18a   :  { %2999 = vmatpush2.bf16.msra.mxu1 %v9678_v32  ;;  %2957 = vmatprep.subr.bf16.mxu0 %v9683_v34  ;;  %v9762_v32 = vld [vmem:[#allocation2 + $0xbd0] ss:$8 sps:$4 sm:$0xff]   ;;  %v9767_v34 = vld [vmem:[#allocation2 + $0xac4] ss:$8 sps:$4 sm:$0xff]  }
 0x18b   :  { %3000 = vmatprep.subr.bf16.mxu1 %v9686_v35  ;;  %v9770_v35 = vld [vmem:[#allocation2 + $0xbc4] ss:$8 sps:$4 sm:$0xff]  }
 0x18d   :  { %2958 = vmatpush2.bf16.msra.mxu0 %v9681_v36  ;;  %v9765_v36 = vld [vmem:[#allocation2 + $0xac0] ss:$8 sps:$4 sm:$0xff]  }
 0x18e   :  { %3001 = vmatpush2.bf16.msra.mxu1 %v9684_v37  ;;  %2959 = vmatprep.subr.bf16.mxu0 %v9689_v38  ;;  %v9768_v37 = vld [vmem:[#allocation2 + $0xbc0] ss:$8 sps:$4 sm:$0xff]   ;;  %v9773_v38 = vld [vmem:[#allocation2 + $0xab4] ss:$8 sps:$4 sm:$0xff]  }
 0x18f   :  { %3002 = vmatprep.subr.bf16.mxu1 %v9692_v24  ;;  %v9776_v24 = vld [vmem:[#allocation2 + $0xbb4] ss:$8 sps:$4 sm:$0xff]  }
 0x191   :  { %2960 = vmatpush2.bf16.msra.mxu0 %v9687_v39  ;;  %v9771_v39 = vld [vmem:[#allocation2 + $0xab0] ss:$8 sps:$4 sm:$0xff]  }
 0x192   :  { %3003 = vmatpush2.bf16.msra.mxu1 %v9690_v40  ;;  %2961 = vmatprep.subr.bf16.mxu0 %v9695_v42  ;;  %v9774_v40 = vld [vmem:[#allocation2 + $0xbb0] ss:$8 sps:$4 sm:$0xff]   ;;  %v9779_v42 = vld [vmem:[#allocation2 + $0xaa4] ss:$8 sps:$4 sm:$0xff]  }
 0x193   :  { %3004 = vmatprep.subr.bf16.mxu1 %v9698_v43  ;;  %v9782_v43 = vld [vmem:[#allocation2 + $0xba4] ss:$8 sps:$4 sm:$0xff]  }
 0x195   :  { %2962 = vmatpush2.bf16.msra.mxu0 %v9693_v44  ;;  %v9777_v44 = vld [vmem:[#allocation2 + $0xaa0] ss:$8 sps:$4 sm:$0xff]  }
 0x196   :  { %3005 = vmatpush2.bf16.msra.mxu1 %v9696_v45  ;;  %3017 = vmatprep.subr.bf16.mxu0 %v9701_v46  ;;  %v9780_v45 = vld [vmem:[#allocation2 + $0xba0] ss:$8 sps:$4 sm:$0xff]   ;;  %v9785_v46 = vld [vmem:[#allocation2 + $0xa94] ss:$8 sps:$4 sm:$0xff]  }
 0x197   :  { %3060 = vmatprep.subr.bf16.mxu1 %v9704_v28  ;;  %v9788_v28 = vld [vmem:[#allocation2 + $0xb94] ss:$8 sps:$4 sm:$0xff]  }
 0x198   :  { %2964 = vmatmul.mubr.bf16.vlgmr.msra.gmra.mxu0 %v8134_v50  ;;  %v9791_v50 = vld [vmem:[#allocation2 + $0xa84] ss:$8 sps:$4 sm:$0xff]  }
 0x199   :  { %3007 = vmatmul.mubr.bf16.vlgmr.msra.gmra.mxu1 %v8136_v51  ;;  %3018 = vmatpush1.bf16.msra.mxu0 %v9699_v48  ;;  %v9783_v48 = vld [vmem:[#allocation2 + $0xa90] ss:$8 sps:$4 sm:$0xff]   ;;  %v9794_v51 = vld [vmem:[#allocation2 + $0xb84] ss:$8 sps:$4 sm:$0xff]  }
 0x19a   :  { %3061 = vmatpush1.bf16.msra.mxu1 %v9702_v49  ;;  %3019 = vmatprep.subr.bf16.mxu0 %v9707_v52  ;;  %v9786_v49 = vld [vmem:[#allocation2 + $0xb90] ss:$8 sps:$4 sm:$0xff]   ;;  %v9789_v52 = vld [vmem:[#allocation2 + $0xa80] ss:$8 sps:$4 sm:$0xff]  }
 0x19b   :  { %3062 = vmatprep.subr.bf16.mxu1 %v9710_v53  ;;  %3049 = vmatprep.mubr.bf16.mxu0 %v8139_v56  ;;  %v9792_v53 = vld [vmem:[#allocation2 + $0xb80] ss:$8 sps:$4 sm:$0xff]  }
 0x19c   :  { %3092 = vmatprep.mubr.bf16.mxu1 %v8141_v57  ;;  %v9795_v56 = vld [vmem:[#allocation4 + $0xe0] ss:$16 sps:$4 sm:$0xff]   ;;  %v9797_v57 = vld [vmem:[#allocation4 + $0xe4] ss:$16 sps:$4 sm:$0xff]  }
 0x19d   :  { %3020 = vmatpush1.bf16.msra.mxu0 %v9705_v54  ;;  %v8138_v54 = vcombine.low %v10753_v29, %v10758_v30  ;;  %v9804_v29 = vld [vmem:[#allocation4 + $0xc8] ss:$16 sps:$4 sm:$0xff]   ;;  %v9809_v30 = vld [vmem:[#allocation4 + $0xa4] ss:$16 sps:$4 sm:$0xff]  }
 0x19e   :  { %3063 = vmatpush1.bf16.msra.mxu1 %v9708_v55  ;;  %3021 = vmatprep.subr.bf16.mxu0 %v9713_v25  ;;  %v8140_v55 = vcombine.low %v10763_v33, %v10768_v47  ;;  %v9798_v25 = vld [vmem:[#allocation4 + $0xe8] ss:$16 sps:$4 sm:$0xff]   ;;  %v9812_v33 = vld [vmem:[#allocation4 + $0xac] ss:$16 sps:$4 sm:$0xff]   ;;  %v9807_v47 = vld [vmem:[#allocation4 + $0xa0] ss:$16 sps:$4 sm:$0xff]  }
 0x19f   :  { %3064 = vmatprep.subr.bf16.mxu1 %v9716_v26  ;;  %v9800_v26 = vld [vmem:[#allocation4 + $0xec] ss:$16 sps:$4 sm:$0xff]  }
 0x1a1   :  { %3022 = vmatpush1.bf16.msra.mxu0 %v9711_v27  ;;  %v9803_v27 = vld [vmem:[#allocation4 + $0xc4] ss:$16 sps:$4 sm:$0xff]  }
 0x1a2   :  { %3065 = vmatpush1.bf16.msra.mxu1 %v9714_v41  ;;  %3023 = vmatprep.subr.bf16.mxu0 %v9719_v58  ;;  %v9806_v41 = vld [vmem:[#allocation4 + $0xcc] ss:$16 sps:$4 sm:$0xff]   ;;  %v9801_v58 = vld [vmem:[#allocation4 + $0xc0] ss:$16 sps:$4 sm:$0xff]  }
 0x1a3   :  { %3066 = vmatprep.subr.bf16.mxu1 %v9722_v59  ;;  %v9810_v59 = vld [vmem:[#allocation4 + $0xa8] ss:$16 sps:$4 sm:$0xff]  }
 0x1a5   :  { %3024 = vmatpush1.bf16.msra.mxu0 %v9717_v60  ;;  %v9815_v60 = vld [vmem:[#allocation4 + $0x84] ss:$16 sps:$4 sm:$0xff]  }
 0x1a6   :  { %3067 = vmatpush1.bf16.msra.mxu1 %v9720_v61  ;;  %3025 = vmatprep.subr.bf16.mxu0 %v9725_v62  ;;  %v9818_v61 = vld [vmem:[#allocation4 + $0x8c] ss:$16 sps:$4 sm:$0xff]   ;;  %v9813_v62 = vld [vmem:[#allocation4 + $0x80] ss:$16 sps:$4 sm:$0xff]  }
 0x1a7   :  { %3068 = vmatprep.subr.bf16.mxu1 %v9728_v63  ;;  %v9816_v63 = vld [vmem:[#allocation4 + $0x88] ss:$16 sps:$4 sm:$0xff]  }
 0x1a9   :  { %3026 = vmatpush1.bf16.msra.mxu0 %v9723_v0  ;;  %v9821_v0 = vld [vmem:[#allocation4 + $0x64] ss:$16 sps:$4 sm:$0xff]  }
 0x1aa   :  { %3069 = vmatpush1.bf16.msra.mxu1 %v9726_v1  ;;  %3027 = vmatprep.subr.bf16.mxu0 %v9731_v2  ;;  %v9824_v1 = vld [vmem:[#allocation4 + $0x6c] ss:$16 sps:$4 sm:$0xff]   ;;  %v9819_v2 = vld [vmem:[#allocation4 + $0x60] ss:$16 sps:$4 sm:$0xff]  }
 0x1ab   :  { %3070 = vmatprep.subr.bf16.mxu1 %v9734_v3  ;;  %v9822_v3 = vld [vmem:[#allocation4 + $0x68] ss:$16 sps:$4 sm:$0xff]  }
 0x1ad   :  { %3028 = vmatpush1.bf16.msra.mxu0 %v9729_v4  ;;  %v9827_v4 = vld [vmem:[#allocation4 + $0x44] ss:$16 sps:$4 sm:$0xff]  }
 0x1ae   :  { %3071 = vmatpush1.bf16.msra.mxu1 %v9732_v5  ;;  %3029 = vmatprep.subr.bf16.mxu0 %v9737_v6  ;;  %v9830_v5 = vld [vmem:[#allocation4 + $0x4c] ss:$16 sps:$4 sm:$0xff]   ;;  %v9825_v6 = vld [vmem:[#allocation4 + $0x40] ss:$16 sps:$4 sm:$0xff]  }
 0x1af   :  { %3072 = vmatprep.subr.bf16.mxu1 %v9740_v7  ;;  %v9828_v7 = vld [vmem:[#allocation4 + $0x48] ss:$16 sps:$4 sm:$0xff]  }
 0x1b1   :  { %3030 = vmatpush1.bf16.msra.mxu0 %v9735_v8  ;;  %v9833_v8 = vld [vmem:[#allocation4 + $0x24] ss:$16 sps:$4 sm:$0xff]  }
 0x1b2   :  { %3073 = vmatpush1.bf16.msra.mxu1 %v9738_v9  ;;  %3031 = vmatprep.subr.bf16.mxu0 %v9743_v10  ;;  %v9836_v9 = vld [vmem:[#allocation4 + $0x2c] ss:$16 sps:$4 sm:$0xff]   ;;  %v9831_v10 = vld [vmem:[#allocation4 + $0x20] ss:$16 sps:$4 sm:$0xff]  }
 0x1b3   :  { %3074 = vmatprep.subr.bf16.mxu1 %v9746_v11  ;;  %v9834_v11 = vld [vmem:[#allocation4 + $0x28] ss:$16 sps:$4 sm:$0xff]  }
 0x1b5   :  { %3032 = vmatpush1.bf16.msra.mxu0 %v9741_v12  ;;  %v9839_v12 = vld [vmem:[#allocation4 + $0x4] ss:$16 sps:$4 sm:$0xff]  }
 0x1b6   :  { %3075 = vmatpush1.bf16.msra.mxu1 %v9744_v13  ;;  %3033 = vmatprep.subr.bf16.mxu0 %v9749_v14  ;;  %v9842_v13 = vld [vmem:[#allocation4 + $0xc] ss:$16 sps:$4 sm:$0xff]   ;;  %v9837_v14 = vld [vmem:[#allocation4] ss:$16 sps:$4 sm:$0xff]  }
 0x1b7   :  { %3076 = vmatprep.subr.bf16.mxu1 %v9752_v15  ;;  %v9840_v15 = vld [vmem:[#allocation4 + $0x8] ss:$16 sps:$4 sm:$0xff]  }
 0x1b9   :  { %3034 = vmatpush2.bf16.msra.mxu0 %v9747_v16  ;;  %v9845_v16 = vld [vmem:[#allocation4 + $0x1e4] ss:$16 sps:$4 sm:$0xff]  }
 0x1ba   :  { %3077 = vmatpush2.bf16.msra.mxu1 %v9750_v17  ;;  %3035 = vmatprep.subr.bf16.mxu0 %v9755_v18  ;;  %v9848_v17 = vld [vmem:[#allocation4 + $0x1ec] ss:$16 sps:$4 sm:$0xff]   ;;  %v9843_v18 = vld [vmem:[#allocation4 + $0x1e0] ss:$16 sps:$4 sm:$0xff]  }
 0x1bb   :  { %3078 = vmatprep.subr.bf16.mxu1 %v9758_v19  ;;  %v9846_v19 = vld [vmem:[#allocation4 + $0x1e8] ss:$16 sps:$4 sm:$0xff]  }
 0x1bd   :  { %3036 = vmatpush2.bf16.msra.mxu0 %v9753_v20  ;;  %v9851_v20 = vld [vmem:[#allocation4 + $0x1c4] ss:$16 sps:$4 sm:$0xff]  }
 0x1be   :  { %3079 = vmatpush2.bf16.msra.mxu1 %v9756_v21  ;;  %3037 = vmatprep.subr.bf16.mxu0 %v9761_v22  ;;  %v9854_v21 = vld [vmem:[#allocation4 + $0x1cc] ss:$16 sps:$4 sm:$0xff]   ;;  %v9849_v22 = vld [vmem:[#allocation4 + $0x1c0] ss:$16 sps:$4 sm:$0xff]  }
 0x1bf   :  { %3080 = vmatprep.subr.bf16.mxu1 %v9764_v23  ;;  %v9852_v23 = vld [vmem:[#allocation4 + $0x1c8] ss:$16 sps:$4 sm:$0xff]  }
 0x1c1   :  { %3038 = vmatpush2.bf16.msra.mxu0 %v9759_v31  ;;  %v9857_v31 = vld [vmem:[#allocation4 + $0x1a4] ss:$16 sps:$4 sm:$0xff]  }
 0x1c2   :  { %3081 = vmatpush2.bf16.msra.mxu1 %v9762_v32  ;;  %3039 = vmatprep.subr.bf16.mxu0 %v9767_v34  ;;  %v9860_v32 = vld [vmem:[#allocation4 + $0x1ac] ss:$16 sps:$4 sm:$0xff]   ;;  %v9855_v34 = vld [vmem:[#allocation4 + $0x1a0] ss:$16 sps:$4 sm:$0xff]  }
 0x1c3   :  { %3082 = vmatprep.subr.bf16.mxu1 %v9770_v35  ;;  %v9858_v35 = vld [vmem:[#allocation4 + $0x1a8] ss:$16 sps:$4 sm:$0xff]  }
 0x1c5   :  { %3040 = vmatpush2.bf16.msra.mxu0 %v9765_v36  ;;  %v9863_v36 = vld [vmem:[#allocation4 + $0x184] ss:$16 sps:$4 sm:$0xff]  }
 0x1c6   :  { %3083 = vmatpush2.bf16.msra.mxu1 %v9768_v37  ;;  %3041 = vmatprep.subr.bf16.mxu0 %v9773_v38  ;;  %v9866_v37 = vld [vmem:[#allocation4 + $0x18c] ss:$16 sps:$4 sm:$0xff]   ;;  %v9861_v38 = vld [vmem:[#allocation4 + $0x180] ss:$16 sps:$4 sm:$0xff]  }
 0x1c7   :  { %3084 = vmatprep.subr.bf16.mxu1 %v9776_v24  ;;  %v9864_v24 = vld [vmem:[#allocation4 + $0x188] ss:$16 sps:$4 sm:$0xff]  }
 0x1c9   :  { %3042 = vmatpush2.bf16.msra.mxu0 %v9771_v39  ;;  %v9869_v39 = vld [vmem:[#allocation4 + $0x164] ss:$16 sps:$4 sm:$0xff]  }
 0x1ca   :  { %3085 = vmatpush2.bf16.msra.mxu1 %v9774_v40  ;;  %3043 = vmatprep.subr.bf16.mxu0 %v9779_v42  ;;  %v9872_v40 = vld [vmem:[#allocation4 + $0x16c] ss:$16 sps:$4 sm:$0xff]   ;;  %v9867_v42 = vld [vmem:[#allocation4 + $0x160] ss:$16 sps:$4 sm:$0xff]  }
 0x1cb   :  { %3086 = vmatprep.subr.bf16.mxu1 %v9782_v43  ;;  %v9870_v43 = vld [vmem:[#allocation4 + $0x168] ss:$16 sps:$4 sm:$0xff]  }
 0x1cd   :  { %3044 = vmatpush2.bf16.msra.mxu0 %v9777_v44  ;;  %v9875_v44 = vld [vmem:[#allocation4 + $0x144] ss:$16 sps:$4 sm:$0xff]  }
 0x1ce   :  { %3087 = vmatpush2.bf16.msra.mxu1 %v9780_v45  ;;  %3045 = vmatprep.subr.bf16.mxu0 %v9785_v46  ;;  %v9878_v45 = vld [vmem:[#allocation4 + $0x14c] ss:$16 sps:$4 sm:$0xff]   ;;  %v9873_v46 = vld [vmem:[#allocation4 + $0x140] ss:$16 sps:$4 sm:$0xff]  }
 0x1cf   :  { %3088 = vmatprep.subr.bf16.mxu1 %v9788_v28  ;;  %v9876_v28 = vld [vmem:[#allocation4 + $0x148] ss:$16 sps:$4 sm:$0xff]  }
 0x1d1   :  { %3046 = vmatpush2.bf16.msra.mxu0 %v9783_v48  ;;  %v9881_v48 = vld [vmem:[#allocation4 + $0x124] ss:$16 sps:$4 sm:$0xff]  }
 0x1d2   :  { %3089 = vmatpush2.bf16.msra.mxu1 %v9786_v49  ;;  %3047 = vmatprep.subr.bf16.mxu0 %v9791_v50  ;;  %v9884_v49 = vld [vmem:[#allocation4 + $0x12c] ss:$16 sps:$4 sm:$0xff]   ;;  %v9879_v50 = vld [vmem:[#allocation4 + $0x120] ss:$16 sps:$4 sm:$0xff]  }
 0x1d3   :  { %3090 = vmatprep.subr.bf16.mxu1 %v9794_v51  ;;  %v9882_v51 = vld [vmem:[#allocation4 + $0x128] ss:$16 sps:$4 sm:$0xff]  }
 0x1d5   :  { %3048 = vmatpush2.bf16.msra.mxu0 %v9789_v52  ;;  %v9887_v52 = vld [vmem:[#allocation4 + $0x104] ss:$16 sps:$4 sm:$0xff]  }
 0x1d6   :  { %3091 = vmatpush2.bf16.msra.mxu1 %v9792_v53  ;;  %3509 = vmatprep.subr.bf16.mxu0 %v9797_v57  ;;  %v9890_v53 = vld [vmem:[#allocation4 + $0x10c] ss:$16 sps:$4 sm:$0xff]   ;;  %v10784_v57 = vld [vmem:[#allocation6 + $0x1e0] sm:$0xff] }
 0x1d7   :  { %3552 = vmatprep.subr.bf16.mxu1 %v9800_v26 }
 0x1d8   :  { %3050 = vmatmul.mubr.bf16.vlgmr.msra.gmra.mxu0 %v8138_v54  ;;  %v9885_v54 = vld [vmem:[#allocation4 + $0x100] ss:$16 sps:$4 sm:$0xff]  }
 0x1d9   :  { %3093 = vmatmul.mubr.bf16.vlgmr.msra.gmra.mxu1 %v8140_v55  ;;  %3510 = vmatpush1.bf16.msra.mxu0 %v9795_v56  ;;  %v9888_v55 = vld [vmem:[#allocation4 + $0x108] ss:$16 sps:$4 sm:$0xff]   ;;  %v10782_v56 = vld [vmem:[#allocation6 + $0x1c0] sm:$0xff] }
 0x1da   :  { %3553 = vmatpush1.bf16.msra.mxu1 %v9798_v25  ;;  %3511 = vmatprep.subr.bf16.mxu0 %v9803_v27  ;;  %v10786_v25 = vld [vmem:[#allocation6 + $0x5c0] sm:$0xff]  ;;  %v8646_v26 = vcombine.low %v10782_v56, %v10784_v57  ;;  %v8647_v27 = vcombine.high %v10782_v56, %v10784_v57 }
 0x1db   :  { %3554 = vmatprep.subr.bf16.mxu1 %v9806_v41  ;;  %v10792_v41 = vld [vmem:[#allocation6 + $0x5e0] sm:$0xff] }
 0x1dd   :  { %3512 = vmatpush1.bf16.msra.mxu0 %v9801_v58  ;;  %v8774_v58 = vcombine.low %v10786_v25, %v10792_v41 }
 0x1de   :  { %3555 = vmatpush1.bf16.msra.mxu1 %v9804_v29  ;;  %3513 = vmatprep.subr.bf16.mxu0 %v9809_v30  ;;  %v8775_v29 = vcombine.high %v10786_v25, %v10792_v41  ;;  %v2621_v30 = vpop.f32.mrf.mxu0  ;;  %v3631_v25 = vld [vmem:[#allocation6 + $0xc0] sm:$0xff] }
 0x1df   :  { %3556 = vmatprep.subr.bf16.mxu1 %v9812_v33  ;;  %v2664_v33 = vpop.f32.mrf.mxu1  ;;  %v3759_v41 = vld [vmem:[#allocation6 + $0x4c0] sm:$0xff] }
 0x1e1   :  { %3514 = vmatpush1.bf16.msra.mxu0 %v9807_v47  ;;  %v2623_v47 = vpop.f32.mrf.mxu0 }
 0x1e2   :  { %3557 = vmatpush1.bf16.msra.mxu1 %v9810_v59  ;;  %3515 = vmatprep.subr.bf16.mxu0 %v9815_v60  ;;  %v2666_v59 = vpop.f32.mrf.mxu1 }
 0x1e3   :  { %3558 = vmatprep.subr.bf16.mxu1 %v9818_v61  ;;  %v2625_v60 = vpop.f32.mrf.mxu0 }
 0x1e4   :  { %v2668_v61 = vpop.f32.mrf.mxu1 }
 0x1e5   :  { %3516 = vmatpush1.bf16.msra.mxu0 %v9813_v62  ;;  %v2627_v62 = vpop.f32.mrf.mxu0 }
 0x1e6   :  { %3559 = vmatpush1.bf16.msra.mxu1 %v9816_v63  ;;  %3517 = vmatprep.subr.bf16.mxu0 %v9821_v0  ;;  %v2670_v63 = vpop.f32.mrf.mxu1 }
 0x1e7   :  { %3560 = vmatprep.subr.bf16.mxu1 %v9824_v1  ;;  %v2707_v0 = vpop.f32.mrf.mxu0 }
 0x1e8   :  { %v2750_v1 = vpop.f32.mrf.mxu1 }
 0x1e9   :  { %3518 = vmatpush1.bf16.msra.mxu0 %v9819_v2  ;;  %v2709_v2 = vpop.f32.mrf.mxu0 }
 0x1ea   :  { %3561 = vmatpush1.bf16.msra.mxu1 %v9822_v3  ;;  %3519 = vmatprep.subr.bf16.mxu0 %v9827_v4  ;;  %v2752_v3 = vpop.f32.mrf.mxu1 }
 0x1eb   :  { %3562 = vmatprep.subr.bf16.mxu1 %v9830_v5  ;;  %v2711_v4 = vpop.f32.mrf.mxu0 }
 0x1ec   :  { %v2754_v5 = vpop.f32.mrf.mxu1 }
 0x1ed   :  { %3520 = vmatpush1.bf16.msra.mxu0 %v9825_v6  ;;  %v2713_v6 = vpop.f32.mrf.mxu0 }
 0x1ee   :  { %3563 = vmatpush1.bf16.msra.mxu1 %v9828_v7  ;;  %3521 = vmatprep.subr.bf16.mxu0 %v9833_v8  ;;  %v2756_v7 = vpop.f32.mrf.mxu1  ;;  %v539_v8 = vlaneseq }
 0x1ef   :  { %3564 = vmatprep.subr.bf16.mxu1 %v9836_v9  ;;  %v2793_v9 = vpop.f32.mrf.mxu0 }
 0x1f1   :  { %3522 = vmatpush1.bf16.msra.mxu0 %v9831_v10  ;;  %v2836_v10 = vpop.f32.mrf.mxu1 }
 0x1f2   :  { %3565 = vmatpush1.bf16.msra.mxu1 %v9834_v11  ;;  %3523 = vmatprep.subr.bf16.mxu0 %v9839_v12  ;;  %v10798_v11 = vshrl.u32 %v539_v8, 7  ;;  %v2795_v12 = vpop.f32.mrf.mxu0 }
 0x1f3   :  { %3566 = vmatprep.subr.bf16.mxu1 %v9842_v13  ;;  %v2838_v13 = vpop.f32.mrf.mxu1 }
 0x1f5   :  { %3524 = vmatpush1.bf16.msra.mxu0 %v9837_v14  ;;  %v541_v14 = vsub.s32 0, %v10798_v11 }
 0x1f6   :  { %3567 = vmatpush1.bf16.msra.mxu1 %v9840_v15  ;;  %3525 = vmatprep.subr.bf16.mxu0 %v9845_v16  ;;  %v10801_v15 = vld [vmem:[#allocation12 + $0x8] sm:$0xff]  ;;  %v2797_v16 = vpop.f32.mrf.mxu0 }
 0x1f7   :  { %3568 = vmatprep.subr.bf16.mxu1 %v9848_v17  ;;  %v2840_v17 = vpop.f32.mrf.mxu1 }
 0x1f9   :  { %3526 = vmatpush2.bf16.msra.mxu0 %v9843_v18  ;;  %v10803_v18 = vld [vmem:[#allocation12] sm:$0xff] }
 0x1fa   :  { %3569 = vmatpush2.bf16.msra.mxu1 %v9846_v19  ;;  %3527 = vmatprep.subr.bf16.mxu0 %v9851_v20  ;;  %v546_v19 = vrot.slane %v10801_v15, %v541_v14  ;;  %v542_v20 = vrot.slane %v10803_v18, %v541_v14 }
 0x1fb   :  { %3570 = vmatprep.subr.bf16.mxu1 %v9854_v21  ;;  %v2799_v21 = vpop.f32.mrf.mxu0 }
 0x1fd   :  { %3528 = vmatpush2.bf16.msra.mxu0 %v9849_v22  ;;  %v2842_v22 = vpop.f32.mrf.mxu1 }
 0x1fe   :  { %3571 = vmatpush2.bf16.msra.mxu1 %v9852_v23  ;;  %3529 = vmatprep.subr.bf16.mxu0 %v9857_v31 }
 0x1ff   :  { %3572 = vmatprep.subr.bf16.mxu1 %v9860_v32  ;;  %v2624_v32 = vadd.f32 %v2623_v47, %v546_v19 }
 0x201   :  { %3530 = vmatpush2.bf16.msra.mxu0 %v9855_v34  ;;  %v2622_v34 = vadd.f32 %v2621_v30, %v542_v20 }
 0x202   :  { %3573 = vmatpush2.bf16.msra.mxu1 %v9858_v35  ;;  %3531 = vmatprep.subr.bf16.mxu0 %v9863_v36  ;;  %v2626_v35 = vadd.f32 %v2625_v60, %v542_v20 }
 0x203   :  { %3574 = vmatprep.subr.bf16.mxu1 %v9866_v37 }
 0x205   :  { %3532 = vmatpush2.bf16.msra.mxu0 %v9861_v38  ;;  %v2667_v38 = vadd.f32 %v2666_v59, %v2624_v32 }
 0x206   :  { %3575 = vmatpush2.bf16.msra.mxu1 %v9864_v24  ;;  %3533 = vmatprep.subr.bf16.mxu0 %v9869_v39  ;;  %v2628_v24 = vadd.f32 %v2627_v62, %v546_v19  ;;  %v2665_v39 = vadd.f32 %v2664_v33, %v2622_v34 }
 0x207   :  { %3576 = vmatprep.subr.bf16.mxu1 %v9872_v40  ;;  %v2669_v40 = vadd.f32 %v2668_v61, %v2626_v35 }
 0x209   :  { %3534 = vmatpush2.bf16.msra.mxu0 %v9867_v42  ;;  %v2710_v42 = vadd.f32 %v2709_v2, %v2667_v38 }
 0x20a   :  { %3577 = vmatpush2.bf16.msra.mxu1 %v9870_v43  ;;  %3535 = vmatprep.subr.bf16.mxu0 %v9875_v44  ;;  %v2708_v43 = vadd.f32 %v2707_v0, %v2665_v39 }
 0x20b   :  { %3578 = vmatprep.subr.bf16.mxu1 %v9878_v45 }
 0x20d   :  { %3536 = vmatpush2.bf16.msra.mxu0 %v9873_v46  ;;  %v2671_v46 = vadd.f32 %v2670_v63, %v2628_v24 }
 0x20e   :  { %3579 = vmatpush2.bf16.msra.mxu1 %v9876_v28  ;;  %3537 = vmatprep.subr.bf16.mxu0 %v9881_v48  ;;  %v2712_v28 = vadd.f32 %v2711_v4, %v2669_v40  ;;  %v2753_v48 = vadd.f32 %v2752_v3, %v2710_v42 }
 0x20f   :  { %3580 = vmatprep.subr.bf16.mxu1 %v9884_v49  ;;  %v2714_v49 = vadd.f32 %v2713_v6, %v2671_v46 }
 0x211   :  { %3538 = vmatpush2.bf16.msra.mxu0 %v9879_v50  ;;  %v2751_v50 = vadd.f32 %v2750_v1, %v2708_v43  ;;  %v2757_v30 = vadd.f32 %v2756_v7, %v2714_v49  ;;  %v3655_v49 = vld [vmem:[#allocation6 + $0x180] sm:$0xff] }
 0x212   :  { %3581 = vmatpush2.bf16.msra.mxu1 %v9882_v51  ;;  %3539 = vmatprep.subr.bf16.mxu0 %v9887_v52 }
 0x213   :  { %3582 = vmatprep.subr.bf16.mxu1 %v9890_v53  ;;  %v2755_v53 = vadd.f32 %v2754_v5, %v2712_v28  ;;  %v2800_v59 = vadd.f32 %v2799_v21, %v2757_v30 }
 0x215   :  { %3540 = vmatpush2.bf16.msra.mxu0 %v9885_v54  ;;  %v2796_v54 = vadd.f32 %v2795_v12, %v2753_v48  ;;  %v2798_v47 = vadd.f32 %v2797_v16, %v2755_v53  ;;  %v2843_v3 = vadd.f32 %v2842_v22, %v2800_v59  ;;  %v3783_v53 = vld [vmem:[#allocation6 + $0x580] sm:$0xff] }
 0x216   :  { %3583 = vmatpush2.bf16.msra.mxu1 %v9888_v55  ;;  %5175 = vmatprep.subr.bf16.mxu0 %v8647_v27  ;;  %v2794_v55 = vadd.f32 %v2793_v9, %v2751_v50  ;;  %v3651_v59 = vld [vmem:[#allocation6 + $0x160] sm:$0xff] }
 0x217   :  { %5218 = vmatprep.subr.bf16.mxu1 %v8775_v29  ;;  %v2839_v33 = vadd.f32 %v2838_v13, %v2796_v54  ;;  %v2841_v0 = vadd.f32 %v2840_v17, %v2798_v47  ;;  %v3787_v54 = vld [vmem:[#allocation6 + $0x5a0] sm:$0xff] }
 0x218   :  { %v2879_v23 = vpop.f32.mrf.mxu0  ;;  %v2837_v60 = vadd.f32 %v2836_v10, %v2794_v55  ;;  %v8767_v47 = vcombine.high %v3783_v53, %v3787_v54 }
 0x219   :  { %v2922_v31 = vpop.f32.mrf.mxu1 }
 0x21a   :  { %v2881_v36 = vpop.f32.mrf.mxu0  ;;  %v2880_v2 = vadd.f32 %v2879_v23, %v2837_v60  ;;  %v3775_v60 = vld [vmem:[#allocation6 + $0x540] sm:$0xff] }
 0x21b   :  { %v2924_v37 = vpop.f32.mrf.mxu1  ;;  %v2882_v63 = vadd.f32 %v2881_v36, %v2839_v33  ;;  %v3647_v33 = vld [vmem:[#allocation6 + $0x140] sm:$0xff] }
 0x21c   :  { %v2883_v44 = vpop.f32.mrf.mxu0  ;;  %v2923_v12 = vadd.f32 %v2922_v31, %v2880_v2 }
 0x21d   :  { %v2926_v45 = vpop.f32.mrf.mxu1  ;;  %v2884_v4 = vadd.f32 %v2883_v44, %v2841_v0  ;;  %v2925_v8 = vadd.f32 %v2924_v37, %v2882_v63  ;;  %v8766_v0 = vcombine.low %v3783_v53, %v3787_v54  ;;  %v8631_v63 = vcombine.high %v3647_v33, %v3651_v59 }
 0x21e   :  { %v2885_v51 = vpop.f32.mrf.mxu0 }
 0x21f   :  { %v2928_v52 = vpop.f32.mrf.mxu1  ;;  %v2886_v5 = vadd.f32 %v2885_v51, %v2843_v3  ;;  %v2927_v9 = vadd.f32 %v2926_v45, %v2884_v4  ;;  %v3639_v3 = vld [vmem:[#allocation6 + $0x100] sm:$0xff] }
 0x220   :  { %v3643_v4 = vld [vmem:[#allocation6 + $0x120] sm:$0xff] }
 0x221   :  { %v2929_v13 = vadd.f32 %v2928_v52, %v2886_v5  ;;  %v3659_v52 = vld [vmem:[#allocation6 + $0x1a0] sm:$0xff]  ;;  %v8623_v56 = vcombine.high %v3639_v3, %v3643_v4 }
 0x222   :  { %v8639_v30 = vcombine.high %v3655_v49, %v3659_v52 }
 0x258   :  { %v2965_v27 = vpop.f32.mrf.mxu0 }
 0x259   :  { %v3008_v29 = vpop.f32.mrf.mxu1  ;;  %v2966_v19 = vadd.f32 %v2965_v27, %v2923_v12  ;;  %v8622_v12 = vcombine.low %v3639_v3, %v3643_v4 }
 0x25a   :  { %v2967_v61 = vpop.f32.mrf.mxu0 }
 0x25b   :  { %v3010_v62 = vpop.f32.mrf.mxu1  ;;  %v2968_v14 = vadd.f32 %v2967_v61, %v2925_v8  ;;  %v3009_v34 = vadd.f32 %v3008_v29, %v2966_v19  ;;  %v3779_v61 = vld [vmem:[#allocation6 + $0x560] sm:$0xff]  ;;  %v8630_v8 = vcombine.low %v3647_v33, %v3651_v59 }
 0x25c   :  { %v2969_v1 = vpop.f32.mrf.mxu0  ;;  %v8759_v2 = vcombine.high %v3775_v60, %v3779_v61  ;;  %v8758_v5 = vcombine.low %v3775_v60, %v3779_v61  ;;  %v3711_v61 = vld [vmem:[#allocation6 + $0x340] sm:$0xff] }
 0x25d   :  { %v3012_v6 = vpop.f32.mrf.mxu1  ;;  %v2970_v20 = vadd.f32 %v2969_v1, %v2927_v9  ;;  %v3011_v32 = vadd.f32 %v3010_v62, %v2968_v14  ;;  %v8638_v62 = vcombine.low %v3655_v49, %v3659_v52  ;;  %v3767_v1 = vld [vmem:[#allocation6 + $0x500] sm:$0xff] }
 0x25e   :  { %v2971_v7 = vpop.f32.mrf.mxu0  ;;  %v3855_v49 = vld [vmem:[#allocation6 + $0x7c0] sm:$0xff] }
 0x25f   :  { %v3014_v16 = vpop.f32.mrf.mxu1  ;;  %v2972_v17 = vadd.f32 %v2971_v7, %v2929_v13  ;;  %v3013_v35 = vadd.f32 %v3012_v6, %v2970_v20  ;;  %v3771_v6 = vld [vmem:[#allocation6 + $0x520] sm:$0xff] }
 0x260   :  { %v8751_v57 = vcombine.high %v3767_v1, %v3771_v6  ;;  %v8750_v9 = vcombine.low %v3767_v1, %v3771_v6  ;;  %v3623_v7 = vld [vmem:[#allocation6 + $0x80] sm:$0xff] }
 0x261   :  { %v3015_v31 = vadd.f32 %v3014_v16, %v2972_v17  ;;  %v3627_v16 = vld [vmem:[#allocation6 + $0xa0] sm:$0xff] }
 0x262   :  { %v3751_v13 = vld [vmem:[#allocation6 + $0x480] sm:$0xff] }
 0x263   :  { %v3755_v20 = vld [vmem:[#allocation6 + $0x4a0] sm:$0xff] }
 0x264   :  { %v8735_v17 = vcombine.high %v3751_v13, %v3755_v20  ;;  %v3703_v6 = vld [vmem:[#allocation6 + $0x300] sm:$0xff] }
 0x298   :  { %v3051_v10 = vpop.f32.mrf.mxu0 }
 0x299   :  { %v3094_v21 = vpop.f32.mrf.mxu1  ;;  %v3052_v38 = vadd.f32 %v3051_v10, %v3009_v34  ;;  %v3615_v34 = vld [vmem:[#allocation6 + $0x40] sm:$0xff] }
 0x29a   :  { %v3053_v23 = vpop.f32.mrf.mxu0 }
 0x29b   :  { %v3096_v22 = vpop.f32.mrf.mxu1  ;;  %v3054_v36 = vadd.f32 %v3053_v23, %v3011_v32  ;;  %v3095_v45 = vadd.f32 %v3094_v21, %v3052_v38  ;;  %v8607_v32 = vcombine.high %v3623_v7, %v3627_v16  ;;  %v3619_v23 = vld [vmem:[#allocation6 + $0x60] sm:$0xff]  ;;  %v8734_v38 = vcombine.low %v3751_v13, %v3755_v20 }
 0x29c   :  { %v3055_v37 = vpop.f32.mrf.mxu0 }
 0x29d   :  { %v3098_v24 = vpop.f32.mrf.mxu1  ;;  %v3056_v39 = vadd.f32 %v3055_v37, %v3013_v35  ;;  %v3097_v42 = vadd.f32 %v3096_v22, %v3054_v36  ;;  %v3103_v55 = vmax.f32 %v3095_v45, 0.0  ;;  %v3743_v22 = vld [vmem:[#allocation6 + $0x440] sm:$0xff]  ;;  %v8606_v36 = vcombine.low %v3623_v7, %v3627_v16 }
 0x29e   :  { %v3057_v40 = vpop.f32.mrf.mxu0  ;;  %v3747_v35 = vld [vmem:[#allocation6 + $0x460] sm:$0xff]  ;;  %v8599_v37 = vcombine.high %v3615_v34, %v3619_v23 }
 0x29f   :  { %v3099_v43 = vadd.f32 %v3098_v24, %v3056_v39  ;;  %v3058_v44 = vadd.f32 %v3057_v40, %v3015_v31  ;;  %v3100_v46 = vpop.f32.mrf.mxu1  ;;  %v3104_v50 = vmax.f32 %v3097_v42, 0.0  ;;  %v8727_v24 = vcombine.high %v3743_v22, %v3747_v35  ;;  %v3607_v31 = vld [vmem:[#allocation6] sm:$0xff] }
 0x2a0   :  { %v3611_v39 = vld [vmem:[#allocation6 + $0x20] sm:$0xff] }
 0x2a1   :  { %v3101_v28 = vadd.f32 %v3100_v46, %v3058_v44  ;;  %v3105_v48 = vmax.f32 %v3099_v43, 0.0  ;;  %v3735_v40 = vld [vmem:[#allocation6 + $0x400] sm:$0xff]  ;;  %v8598_v43 = vcombine.low %v3615_v34, %v3619_v23  ;;  %v8726_v44 = vcombine.low %v3743_v22, %v3747_v35 }
 0x2a2   :  { %v3739_v42 = vld [vmem:[#allocation6 + $0x420] sm:$0xff]  ;;  %v8591_v45 = vcombine.high %v3607_v31, %v3611_v39 }
 0x2a3   :  { %v3106_v51 = vmax.f32 %v3101_v28, 0.0  ;;  %v3107_v29 = vpack.c.bf16 %v3105_v48, %v3103_v55  ;;  %v8719_v46 = vcombine.high %v3735_v40, %v3739_v42  ;;  %v3727_v28 = vld [vmem:[#allocation6 + $0x3c0] sm:$0xff]  ;;  %v8718_v52 = vcombine.low %v3735_v40, %v3739_v42 }
 0x2a4   :  { %v3731_v48 = vld [vmem:[#allocation6 + $0x3e0] sm:$0xff] }
 0x2a5   :  { %v3108_v27 = vpack.c.bf16 %v3106_v51, %v3104_v50  ;;  %v3859_v50 = vld [vmem:[#allocation6 + $0x7e0] sm:$0xff]  ;;  %v8590_v51 = vcombine.low %v3607_v31, %v3611_v39  ;;  %v8711_v53 = vcombine.high %v3727_v28, %v3731_v48 }
 0x2a6   :  { %v8839_v54 = vcombine.high %v3855_v49, %v3859_v50  ;;  %v3719_v55 = vld [vmem:[#allocation6 + $0x380] sm:$0xff]  ;;  %v8838_v33 = vcombine.low %v3855_v49, %v3859_v50 }
 0x2a7   :  { %3541 = vmatprep.mubr.bf16.mxu0 %v3108_v27  ;;  %3584 = vmatprep.mubr.bf16.mxu1 %v3108_v27  ;;  %v3723_v27 = vld [vmem:[#allocation6 + $0x3a0] sm:$0xff] }
 0x2a8   :  { %3542 = vmatmul.mubr.bf16.vlgmr.msra.gmra.mxu0 %v3107_v29  ;;  %3585 = vmatmul.mubr.bf16.vlgmr.msra.gmra.mxu1 %v3107_v29  ;;  %v3847_v29 = vld [vmem:[#allocation6 + $0x780] sm:$0xff]  ;;  %v8703_v59 = vcombine.high %v3719_v55, %v3723_v27 }
 0x2a9   :  { %5176 = vmatpush1.bf16.msra.mxu0 %v8646_v26  ;;  %5219 = vmatpush1.bf16.msra.mxu1 %v8774_v58  ;;  %v3635_v26 = vld [vmem:[#allocation6 + $0xe0] sm:$0xff] }
 0x2aa   :  { %5177 = vmatprep.subr.bf16.mxu0 %v8639_v30  ;;  %5220 = vmatprep.subr.bf16.mxu1 %v8767_v47  ;;  %v3763_v58 = vld [vmem:[#allocation6 + $0x4e0] sm:$0xff]  ;;  %v8615_v14 = vcombine.high %v3631_v25, %v3635_v26  ;;  %v8614_v10 = vcombine.low %v3631_v25, %v3635_v26  ;;  %v8710_v47 = vcombine.low %v3727_v28, %v3731_v48 }
 0x2ab   :  { %v8743_v19 = vcombine.high %v3759_v41, %v3763_v58  ;;  %v8742_v21 = vcombine.low %v3759_v41, %v3763_v58  ;;  %v3851_v30 = vld [vmem:[#allocation6 + $0x7a0] sm:$0xff] }
 0x2ac   :  { %v8831_v60 = vcombine.high %v3847_v29, %v3851_v30  ;;  %v8830_v3 = vcombine.low %v3847_v29, %v3851_v30  ;;  %v3695_v58 = vld [vmem:[#allocation6 + $0x2c0] sm:$0xff] }
 0x2ad   :  { %5178 = vmatpush1.bf16.msra.mxu0 %v8638_v62  ;;  %5221 = vmatpush1.bf16.msra.mxu1 %v8766_v0  ;;  %v3715_v62 = vld [vmem:[#allocation6 + $0x360] sm:$0xff] }
 0x2ae   :  { %5179 = vmatprep.subr.bf16.mxu0 %v8631_v63  ;;  %5222 = vmatprep.subr.bf16.mxu1 %v8759_v2  ;;  %v3839_v0 = vld [vmem:[#allocation6 + $0x740] sm:$0xff]  ;;  %v8702_v2 = vcombine.low %v3719_v55, %v3723_v27  ;;  %v8695_v4 = vcombine.high %v3711_v61, %v3715_v62  ;;  %v3796_v27 = vld [vmem:[#allocation6 + $0x5e8] sm:$0xff] }
 0x2af   :  { %v3843_v63 = vld [vmem:[#allocation6 + $0x760] sm:$0xff] }
 0x2b0   :  { %v8823_v1 = vcombine.high %v3839_v0, %v3843_v63  ;;  %v8822_v25 = vcombine.low %v3839_v0, %v3843_v63  ;;  %v3815_v34 = vld [vmem:[#allocation6 + $0x680] sm:$0xff] }
 0x2b1   :  { %5180 = vmatpush1.bf16.msra.mxu0 %v8630_v8  ;;  %5223 = vmatpush1.bf16.msra.mxu1 %v8758_v5  ;;  %v3707_v8 = vld [vmem:[#allocation6 + $0x320] sm:$0xff] }
 0x2b2   :  { %5181 = vmatprep.subr.bf16.mxu0 %v8623_v56  ;;  %5224 = vmatprep.subr.bf16.mxu1 %v8751_v57  ;;  %v3831_v5 = vld [vmem:[#allocation6 + $0x700] sm:$0xff]  ;;  %v8694_v57 = vcombine.low %v3711_v61, %v3715_v62  ;;  %v8687_v26 = vcombine.high %v3703_v6, %v3707_v8 }
 0x2b3   :  { %v3835_v56 = vld [vmem:[#allocation6 + $0x720] sm:$0xff] }
 0x2b4   :  { %v8815_v41 = vcombine.high %v3831_v5, %v3835_v56  ;;  %v8814_v7 = vcombine.low %v3831_v5, %v3835_v56  ;;  %v3819_v23 = vld [vmem:[#allocation6 + $0x6a0] sm:$0xff] }
 0x2b5   :  { %5182 = vmatpush1.bf16.msra.mxu0 %v8622_v12  ;;  %5225 = vmatpush1.bf16.msra.mxu1 %v8750_v9  ;;  %v3699_v12 = vld [vmem:[#allocation6 + $0x2e0] sm:$0xff]  ;;  %v8798_v35 = vcombine.low %v3815_v34, %v3819_v23 }
 0x2b6   :  { %5183 = vmatprep.subr.bf16.mxu0 %v8615_v14  ;;  %5226 = vmatprep.subr.bf16.mxu1 %v8743_v19  ;;  %v3823_v9 = vld [vmem:[#allocation6 + $0x6c0] sm:$0xff]  ;;  %v8686_v19 = vcombine.low %v3703_v6, %v3707_v8  ;;  %v8679_v16 = vcombine.high %v3695_v58, %v3699_v12  ;;  %v8678_v20 = vcombine.low %v3695_v58, %v3699_v12 }
 0x2b7   :  { %v3827_v14 = vld [vmem:[#allocation6 + $0x6e0] sm:$0xff] }
 0x2b8   :  { %v8807_v13 = vcombine.high %v3823_v9, %v3827_v14  ;;  %v3811_v39 = vld [vmem:[#allocation6 + $0x660] sm:$0xff] }
 0x2b9   :  { %5184 = vmatpush1.bf16.msra.mxu0 %v8614_v10  ;;  %5227 = vmatpush1.bf16.msra.mxu1 %v8742_v21  ;;  %v8806_v10 = vcombine.low %v3823_v9, %v3827_v14  ;;  %v3687_v21 = vld [vmem:[#allocation6 + $0x280] sm:$0xff] }
 0x2ba   :  { %5185 = vmatprep.subr.bf16.mxu0 %v8607_v32  ;;  %5228 = vmatprep.subr.bf16.mxu1 %v8735_v17  ;;  %v3691_v32 = vld [vmem:[#allocation6 + $0x2a0] sm:$0xff] }
 0x2bb   :  { %v8671_v17 = vcombine.high %v3687_v21, %v3691_v32  ;;  %v8670_v22 = vcombine.low %v3687_v21, %v3691_v32  ;;  %v3803_v48 = vld [vmem:[#allocation6 + $0x620] sm:$0xff]  ;;  %v3660_v32 = vld [vmem:[#allocation6 + $0x1a8] sm:$0xff] }
 0x2bd   :  { %5186 = vmatpush1.bf16.msra.mxu0 %v8606_v36  ;;  %5229 = vmatpush1.bf16.msra.mxu1 %v8734_v38  ;;  %v8799_v36 = vcombine.high %v3815_v34, %v3819_v23  ;;  %v3679_v38 = vld [vmem:[#allocation6 + $0x240] sm:$0xff]  ;;  %v3788_v34 = vld [vmem:[#allocation6 + $0x5a8] sm:$0xff] }
 0x2be   :  { %5187 = vmatprep.subr.bf16.mxu0 %v8599_v37  ;;  %5230 = vmatprep.subr.bf16.mxu1 %v8727_v24  ;;  %v3683_v37 = vld [vmem:[#allocation6 + $0x260] sm:$0xff] }
 0x2bf   :  { %v3807_v24 = vld [vmem:[#allocation6 + $0x640] sm:$0xff]  ;;  %v8663_v31 = vcombine.high %v3679_v38, %v3683_v37  ;;  %v8662_v40 = vcombine.low %v3679_v38, %v3683_v37  ;;  %v3648_v38 = vld [vmem:[#allocation6 + $0x148] sm:$0xff] }
 0x2c0   :  { %v8790_v42 = vcombine.low %v3807_v24, %v3811_v39 }
 0x2c1   :  { %5188 = vmatpush1.bf16.msra.mxu0 %v8598_v43  ;;  %5231 = vmatpush1.bf16.msra.mxu1 %v8726_v44  ;;  %v8791_v43 = vcombine.high %v3807_v24, %v3811_v39  ;;  %v3671_v44 = vld [vmem:[#allocation6 + $0x200] sm:$0xff]  ;;  %v3776_v39 = vld [vmem:[#allocation6 + $0x548] sm:$0xff] }
 0x2c2   :  { %5189 = vmatprep.subr.bf16.mxu0 %v8591_v45  ;;  %5232 = vmatprep.subr.bf16.mxu1 %v8719_v46  ;;  %v3675_v45 = vld [vmem:[#allocation6 + $0x220] sm:$0xff] }
 0x2c3   :  { %v3799_v46 = vld [vmem:[#allocation6 + $0x600] sm:$0xff]  ;;  %v8655_v28 = vcombine.high %v3671_v44, %v3675_v45  ;;  %v8654_v49 = vcombine.low %v3671_v44, %v3675_v45 }
 0x2c4   :  { %v8782_v50 = vcombine.low %v3799_v46, %v3803_v48 }
 0x2c5   :  { %5190 = vmatpush1.bf16.msra.mxu0 %v8590_v51  ;;  %5233 = vmatpush1.bf16.msra.mxu1 %v8718_v52  ;;  %v8783_v51 = vcombine.high %v3799_v46, %v3803_v48  ;;  %v3664_v52 = vld [vmem:[#allocation6 + $0x1c8] sm:$0xff] }
 0x2c6   :  { %5191 = vmatprep.subr.bf16.mxu0 %v8711_v53  ;;  %5234 = vmatprep.subr.bf16.mxu1 %v8839_v54  ;;  %v3668_v53 = vld [vmem:[#allocation6 + $0x1e8] sm:$0xff] }
 0x2c7   :  { %v3792_v54 = vld [vmem:[#allocation6 + $0x5c8] sm:$0xff]  ;;  %v8649_v55 = vcombine.high %v3664_v52, %v3668_v53  ;;  %v8648_v29 = vcombine.low %v3664_v52, %v3668_v53 }
 0x2c8   :  { %v8776_v30 = vcombine.low %v3792_v54, %v3796_v27  ;;  %v3640_v46 = vld [vmem:[#allocation6 + $0x108] sm:$0xff] }
 0x2c9   :  { %5192 = vmatpush2.bf16.msra.mxu0 %v8710_v47  ;;  %5235 = vmatpush2.bf16.msra.mxu1 %v8838_v33  ;;  %v8777_v47 = vcombine.high %v3792_v54, %v3796_v27  ;;  %v3175_v33 = vsub.s32 1, %v10798_v11  ;;  %v3768_v48 = vld [vmem:[#allocation6 + $0x508] sm:$0xff] }
 0x2ca   :  { %5193 = vmatprep.subr.bf16.mxu0 %v8703_v59  ;;  %5236 = vmatprep.subr.bf16.mxu1 %v8831_v60  ;;  %v126_v59 = vld [vmem:[#allocation12 + $0x18] sm:$0xff]  ;;  %v125_v60 = vld [vmem:[#allocation12 + $0x10] sm:$0xff]  ;;  %v3632_v54 = vld [vmem:[#allocation6 + $0xc8] sm:$0xff] }
 0x2cb   :  { %v3180_v0 = vrot.slane %v10801_v15, %v3175_v33  ;;  %v3188_v63 = vrot.slane %v126_v59, %v3175_v33  ;;  %v3760_v27 = vld [vmem:[#allocation6 + $0x4c8] sm:$0xff] }
 0x2cd   :  { %5194 = vmatpush2.bf16.msra.mxu0 %v8702_v2  ;;  %5237 = vmatpush2.bf16.msra.mxu1 %v8830_v3  ;;  %v3176_v2 = vrot.slane %v10803_v18, %v3175_v33  ;;  %v3184_v3 = vrot.slane %v125_v60, %v3175_v33  ;;  %v3624_v60 = vld [vmem:[#allocation6 + $0x88] sm:$0xff] }
 0x2ce   :  { %5195 = vmatprep.subr.bf16.mxu0 %v8695_v4  ;;  %5238 = vmatprep.subr.bf16.mxu1 %v8823_v1 }
 0x2d1   :  { %5196 = vmatpush2.bf16.msra.mxu0 %v8694_v57  ;;  %5239 = vmatpush2.bf16.msra.mxu1 %v8822_v25 }
 0x2d2   :  { %5197 = vmatprep.subr.bf16.mxu0 %v8687_v26  ;;  %5240 = vmatprep.subr.bf16.mxu1 %v8815_v41 }
 0x2d5   :  { %5198 = vmatpush2.bf16.msra.mxu0 %v8686_v19  ;;  %5241 = vmatpush2.bf16.msra.mxu1 %v8814_v7 }
 0x2d6   :  { %5199 = vmatprep.subr.bf16.mxu0 %v8679_v16  ;;  %5242 = vmatprep.subr.bf16.mxu1 %v8807_v13 }
 0x2d9   :  { %5200 = vmatpush2.bf16.msra.mxu0 %v8678_v20  ;;  %5243 = vmatpush2.bf16.msra.mxu1 %v8806_v10  ;;  %v3656_v20 = vld [vmem:[#allocation6 + $0x188] sm:$0xff] }
 0x2da   :  { %5201 = vmatprep.subr.bf16.mxu0 %v8671_v17  ;;  %5244 = vmatprep.subr.bf16.mxu1 %v8799_v36  ;;  %v3784_v17 = vld [vmem:[#allocation6 + $0x588] sm:$0xff]  ;;  %v8641_v37 = vcombine.high %v3656_v20, %v3660_v32 }
 0x2db   :  { %v8769_v24 = vcombine.high %v3784_v17, %v3788_v34 }
 0x2dd   :  { %5202 = vmatpush2.bf16.msra.mxu0 %v8670_v22  ;;  %5245 = vmatpush2.bf16.msra.mxu1 %v8798_v35 }
 0x2de   :  { %5203 = vmatprep.subr.bf16.mxu0 %v8663_v31  ;;  %5246 = vmatprep.subr.bf16.mxu1 %v8791_v43  ;;  %v3652_v31 = vld [vmem:[#allocation6 + $0x168] sm:$0xff]  ;;  %v8768_v43 = vcombine.low %v3784_v17, %v3788_v34 }
 0x2df   :  { %v8633_v44 = vcombine.high %v3648_v38, %v3652_v31  ;;  %v3720_v34 = vld [vmem:[#allocation6 + $0x388] sm:$0xff] }
 0x2e1   :  { %5204 = vmatpush2.bf16.msra.mxu0 %v8662_v40  ;;  %5247 = vmatpush2.bf16.msra.mxu1 %v8790_v42  ;;  %v3780_v40 = vld [vmem:[#allocation6 + $0x568] sm:$0xff]  ;;  %v8640_v42 = vcombine.low %v3656_v20, %v3660_v32 }
 0x2e2   :  { %5205 = vmatprep.subr.bf16.mxu0 %v8655_v28  ;;  %5248 = vmatprep.subr.bf16.mxu1 %v8783_v51  ;;  %v8761_v45 = vcombine.high %v3776_v39, %v3780_v40  ;;  %v3644_v28 = vld [vmem:[#allocation6 + $0x128] sm:$0xff]  ;;  %v8760_v51 = vcombine.low %v3776_v39, %v3780_v40 }
 0x2e3   :  { %v8625_v52 = vcombine.high %v3640_v46, %v3644_v28  ;;  %v3860_v20 = vld [vmem:[#allocation6 + $0x7e8] sm:$0xff] }
 0x2e5   :  { %5206 = vmatpush2.bf16.msra.mxu0 %v8654_v49  ;;  %5249 = vmatpush2.bf16.msra.mxu1 %v8782_v50  ;;  %v3772_v49 = vld [vmem:[#allocation6 + $0x528] sm:$0xff]  ;;  %v8632_v50 = vcombine.low %v3648_v38, %v3652_v31 }
 0x2e6   :  { %5261 = vmatprep.subr.bf16.mxu0 %v8649_v55  ;;  %5304 = vmatprep.subr.bf16.mxu1 %v8777_v47  ;;  %v8753_v53 = vcombine.high %v3768_v48, %v3772_v49  ;;  %v3636_v55 = vld [vmem:[#allocation6 + $0xe8] sm:$0xff]  ;;  %v8752_v47 = vcombine.low %v3768_v48, %v3772_v49 }
 0x2e7   :  { %v8617_v33 = vcombine.high %v3632_v54, %v3636_v55  ;;  %v3724_v38 = vld [vmem:[#allocation6 + $0x3a8] sm:$0xff] }
 0x2e8   :  { %v8705_v40 = vcombine.high %v3720_v34, %v3724_v38 }
 0x368   :  { %v3543_v61 = vpop.f32.mrf.mxu0  ;;  %v3586_v62 = vpop.f32.mrf.mxu1 }
 0x369   :  { %v3544_v26 = vadd.f32 %v3543_v61, %v3176_v2  ;;  %v3587_v41 = vadd.f32 %v3586_v62, %v3184_v3  ;;  %v3628_v61 = vld [vmem:[#allocation6 + $0xa8] sm:$0xff] }
 0x36a   :  { %v3545_v4 = vpop.f32.mrf.mxu0  ;;  %v3588_v1 = vpop.f32.mrf.mxu1  ;;  %v3752_v62 = vld [vmem:[#allocation6 + $0x488] sm:$0xff] }
 0x36b   :  { %v3546_v5 = vadd.f32 %v3545_v4, %v3180_v0  ;;  %v3589_v56 = vadd.f32 %v3588_v1, %v3188_v63  ;;  %v3595_v10 = vmax.f32 %v3544_v26, 0.0  ;;  %v3597_v21 = vmax.f32 %v3587_v41, 0.0  ;;  %v3616_v1 = vld [vmem:[#allocation6 + $0x48] sm:$0xff] }
 0x36c   :  { %v3547_v6 = vpop.f32.mrf.mxu0  ;;  %v3590_v8 = vpop.f32.mrf.mxu1  ;;  %v3608_v41 = vld [vmem:[#allocation6 + $0x8] sm:$0xff] }
 0x36d   :  { %v3548_v57 = vadd.f32 %v3547_v6, %v3176_v2  ;;  %v3591_v25 = vadd.f32 %v3590_v8, %v3184_v3  ;;  %v3596_v7 = vmax.f32 %v3546_v5, 0.0  ;;  %v3598_v16 = vmax.f32 %v3589_v56, 0.0  ;;  %v3620_v6 = vld [vmem:[#allocation6 + $0x68] sm:$0xff] }
 0x36e   :  { %v3549_v58 = vpop.f32.mrf.mxu0  ;;  %v3592_v12 = vpop.f32.mrf.mxu1  ;;  %v8609_v3 = vcombine.high %v3624_v60, %v3628_v61  ;;  %v3744_v8 = vld [vmem:[#allocation6 + $0x448] sm:$0xff]  ;;  %v8608_v56 = vcombine.low %v3624_v60, %v3628_v61 }
 0x36f   :  { %v3550_v9 = vadd.f32 %v3549_v58, %v3180_v0  ;;  %v3593_v14 = vadd.f32 %v3592_v12, %v3188_v63  ;;  %v3599_v19 = vmax.f32 %v3548_v57, 0.0  ;;  %v3601_v15 = vmax.f32 %v3591_v25, 0.0  ;;  %v3756_v0 = vld [vmem:[#allocation6 + $0x4a8] sm:$0xff] }
 0x370   :  { %v8616_v63 = vcombine.low %v3632_v54, %v3636_v55  ;;  %v8737_v4 = vcombine.high %v3752_v62, %v3756_v0  ;;  %v3748_v5 = vld [vmem:[#allocation6 + $0x468] sm:$0xff]  ;;  %v8736_v57 = vcombine.low %v3752_v62, %v3756_v0  ;;  %v8601_v25 = vcombine.high %v3616_v1, %v3620_v6 }
 0x371   :  { %v3600_v18 = vmax.f32 %v3550_v9, 0.0  ;;  %v3602_v13 = vmax.f32 %v3593_v14, 0.0  ;;  %v10820_v35 = vpack.c.bf16 %v3599_v19, %v3595_v10  ;;  %v10822_v36 = vpack.c.bf16 %v3601_v15, %v3597_v21  ;;  %v3612_v58 = vld [vmem:[#allocation6 + $0x28] sm:$0xff] }
 0x372   :  { %v8729_v26 = vcombine.high %v3744_v8, %v3748_v5  ;;  %v3736_v12 = vld [vmem:[#allocation6 + $0x408] sm:$0xff]  ;;  %v8600_v14 = vcombine.low %v3616_v1, %v3620_v6  ;;  %v8728_v19 = vcombine.low %v3744_v8, %v3748_v5  ;;  %v8593_v15 = vcombine.high %v3608_v41, %v3612_v58 }
 0x373   :  { %v10816_v23 = vpack.c.bf16 %v3600_v18, %v3596_v7  ;;  %v10818_v22 = vpack.c.bf16 %v3602_v13, %v3598_v16  ;;  %v3740_v9 = vld [vmem:[#allocation6 + $0x428] sm:$0xff]  ;;  %v8592_v10 = vcombine.low %v3608_v41, %v3612_v58 }
 0x374   :  { %v8721_v7 = vcombine.high %v3736_v12, %v3740_v9  ;;  %v3728_v16 = vld [vmem:[#allocation6 + $0x3c8] sm:$0xff]  ;;  %v8720_v21 = vcombine.low %v3736_v12, %v3740_v9 }
 0x375   :  { %5207 = vmatprep.mubr.bf16.mxu0 %v10816_v23  ;;  %5250 = vmatprep.mubr.bf16.mxu1 %v10818_v22  ;;  %v3732_v18 = vld [vmem:[#allocation6 + $0x3e8] sm:$0xff] }
 0x376   :  { %5208 = vmatmul.mubr.bf16.vlgmr.msra.gmra.mxu0 %v10820_v35  ;;  %5251 = vmatmul.mubr.bf16.vlgmr.msra.gmra.mxu1 %v10822_v36  ;;  %v3856_v13 = vld [vmem:[#allocation6 + $0x7c8] sm:$0xff]  ;;  %v8713_v32 = vcombine.high %v3728_v16, %v3732_v18  ;;  %v8712_v31 = vcombine.low %v3728_v16, %v3732_v18 }
 0x377   :  { %5262 = vmatpush1.bf16.msra.mxu0 %v8648_v29  ;;  %5305 = vmatpush1.bf16.msra.mxu1 %v8776_v30  ;;  %v3764_v29 = vld [vmem:[#allocation6 + $0x4e8] sm:$0xff]  ;;  %v8624_v30 = vcombine.low %v3640_v46, %v3644_v28  ;;  %v8841_v17 = vcombine.high %v3856_v13, %v3860_v20  ;;  %v8840_v39 = vcombine.low %v3856_v13, %v3860_v20 }
 0x378   :  { %5293 = vmatprep.mubr.bf16.mxu0 %v10816_v23  ;;  %5336 = vmatprep.mubr.bf16.mxu1 %v10818_v22  ;;  %v8745_v59 = vcombine.high %v3760_v27, %v3764_v29  ;;  %v8744_v2 = vcombine.low %v3760_v27, %v3764_v29  ;;  %v3844_v46 = vld [vmem:[#allocation6 + $0x768] sm:$0xff]  ;;  %v8704_v28 = vcombine.low %v3720_v34, %v3724_v38  ;;  %v3797_v34 = vld [vmem:[#allocation6 + $0x5f0] sm:$0xff] }
 0x379   :  { %5263 = vmatprep.subr.bf16.mxu0 %v8641_v37  ;;  %5306 = vmatprep.subr.bf16.mxu1 %v8769_v24  ;;  %v3848_v37 = vld [vmem:[#allocation6 + $0x788] sm:$0xff] }
 0x37a   :  { %v3852_v24 = vld [vmem:[#allocation6 + $0x7a8] sm:$0xff] }
 0x37b   :  { %5264 = vmatpush1.bf16.msra.mxu0 %v8640_v42  ;;  %5307 = vmatpush1.bf16.msra.mxu1 %v8768_v43  ;;  %v8833_v42 = vcombine.high %v3848_v37, %v3852_v24  ;;  %v3712_v43 = vld [vmem:[#allocation6 + $0x348] sm:$0xff]  ;;  %v8832_v48 = vcombine.low %v3848_v37, %v3852_v24 }
 0x37c   :  { %5265 = vmatprep.subr.bf16.mxu0 %v8633_v44  ;;  %5308 = vmatprep.subr.bf16.mxu1 %v8761_v45  ;;  %v3716_v44 = vld [vmem:[#allocation6 + $0x368] sm:$0xff] }
 0x37d   :  { %v3840_v45 = vld [vmem:[#allocation6 + $0x748] sm:$0xff]  ;;  %v8697_v49 = vcombine.high %v3712_v43, %v3716_v44  ;;  %v8696_v55 = vcombine.low %v3712_v43, %v3716_v44  ;;  %v3789_v43 = vld [vmem:[#allocation6 + $0x5b0] sm:$0xff] }
 0x37e   :  { %v3836_v54 = vld [vmem:[#allocation6 + $0x728] sm:$0xff]  ;;  %v8824_v27 = vcombine.low %v3840_v45, %v3844_v46 }
 0x37f   :  { %5266 = vmatpush1.bf16.msra.mxu0 %v8632_v50  ;;  %5309 = vmatpush1.bf16.msra.mxu1 %v8760_v51  ;;  %v8825_v50 = vcombine.high %v3840_v45, %v3844_v46  ;;  %v3704_v51 = vld [vmem:[#allocation6 + $0x308] sm:$0xff] }
 0x380   :  { %5267 = vmatprep.subr.bf16.mxu0 %v8625_v52  ;;  %5310 = vmatprep.subr.bf16.mxu1 %v8753_v53  ;;  %v3708_v52 = vld [vmem:[#allocation6 + $0x328] sm:$0xff] }
 0x381   :  { %v3832_v53 = vld [vmem:[#allocation6 + $0x708] sm:$0xff]  ;;  %v8689_v29 = vcombine.high %v3704_v51, %v3708_v52  ;;  %v8688_v61 = vcombine.low %v3704_v51, %v3708_v52  ;;  %v3781_v51 = vld [vmem:[#allocation6 + $0x570] sm:$0xff] }
 0x382   :  { %v3828_v60 = vld [vmem:[#allocation6 + $0x6e8] sm:$0xff]  ;;  %v8816_v62 = vcombine.low %v3832_v53, %v3836_v54 }
 0x383   :  { %5268 = vmatpush1.bf16.msra.mxu0 %v8624_v30  ;;  %5311 = vmatpush1.bf16.msra.mxu1 %v8752_v47  ;;  %v8817_v30 = vcombine.high %v3832_v53, %v3836_v54  ;;  %v3696_v47 = vld [vmem:[#allocation6 + $0x2c8] sm:$0xff] }
 0x384   :  { %5269 = vmatprep.subr.bf16.mxu0 %v8617_v33  ;;  %5312 = vmatprep.subr.bf16.mxu1 %v8745_v59  ;;  %v3700_v33 = vld [vmem:[#allocation6 + $0x2e8] sm:$0xff] }
 0x385   :  { %v3824_v59 = vld [vmem:[#allocation6 + $0x6c8] sm:$0xff]  ;;  %v8681_v0 = vcombine.high %v3696_v47, %v3700_v33  ;;  %v8680_v6 = vcombine.low %v3696_v47, %v3700_v33  ;;  %v3773_v47 = vld [vmem:[#allocation6 + $0x530] sm:$0xff] }
 0x386   :  { %v3820_v1 = vld [vmem:[#allocation6 + $0x6a8] sm:$0xff]  ;;  %v8808_v8 = vcombine.low %v3824_v59, %v3828_v60 }
 0x387   :  { %5270 = vmatpush1.bf16.msra.mxu0 %v8616_v63  ;;  %5313 = vmatpush1.bf16.msra.mxu1 %v8744_v2  ;;  %v8809_v63 = vcombine.high %v3824_v59, %v3828_v60  ;;  %v3688_v2 = vld [vmem:[#allocation6 + $0x288] sm:$0xff] }
 0x388   :  { %5271 = vmatprep.subr.bf16.mxu0 %v8609_v3  ;;  %5314 = vmatprep.subr.bf16.mxu1 %v8737_v4  ;;  %v3692_v3 = vld [vmem:[#allocation6 + $0x2a8] sm:$0xff] }
 0x389   :  { %v3816_v4 = vld [vmem:[#allocation6 + $0x688] sm:$0xff]  ;;  %v8673_v5 = vcombine.high %v3688_v2, %v3692_v3  ;;  %v8672_v58 = vcombine.low %v3688_v2, %v3692_v3  ;;  %v3765_v2 = vld [vmem:[#allocation6 + $0x4f0] sm:$0xff] }
 0x38a   :  { %v3812_v41 = vld [vmem:[#allocation6 + $0x668] sm:$0xff]  ;;  %v8800_v12 = vcombine.low %v3816_v4, %v3820_v1 }
 0x38b   :  { %5272 = vmatpush1.bf16.msra.mxu0 %v8608_v56  ;;  %5315 = vmatpush1.bf16.msra.mxu1 %v8736_v57  ;;  %v8801_v56 = vcombine.high %v3816_v4, %v3820_v1  ;;  %v3680_v57 = vld [vmem:[#allocation6 + $0x248] sm:$0xff] }
 0x38c   :  { %5273 = vmatprep.subr.bf16.mxu0 %v8601_v25  ;;  %5316 = vmatprep.subr.bf16.mxu1 %v8729_v26  ;;  %v3684_v25 = vld [vmem:[#allocation6 + $0x268] sm:$0xff] }
 0x38d   :  { %v3808_v26 = vld [vmem:[#allocation6 + $0x648] sm:$0xff]  ;;  %v8665_v9 = vcombine.high %v3680_v57, %v3684_v25  ;;  %v8664_v18 = vcombine.low %v3680_v57, %v3684_v25  ;;  %v3757_v57 = vld [vmem:[#allocation6 + $0x4b0] sm:$0xff] }
 0x38e   :  { %v3804_v16 = vld [vmem:[#allocation6 + $0x628] sm:$0xff]  ;;  %v8792_v13 = vcombine.low %v3808_v26, %v3812_v41 }
 0x38f   :  { %5274 = vmatpush1.bf16.msra.mxu0 %v8600_v14  ;;  %5317 = vmatpush1.bf16.msra.mxu1 %v8728_v19  ;;  %v8793_v14 = vcombine.high %v3808_v26, %v3812_v41  ;;  %v3672_v19 = vld [vmem:[#allocation6 + $0x208] sm:$0xff] }
 0x390   :  { %5275 = vmatprep.subr.bf16.mxu0 %v8593_v15  ;;  %5318 = vmatprep.subr.bf16.mxu1 %v8721_v7  ;;  %v3676_v15 = vld [vmem:[#allocation6 + $0x228] sm:$0xff] }
 0x391   :  { %v3800_v7 = vld [vmem:[#allocation6 + $0x608] sm:$0xff]  ;;  %v8657_v20 = vcombine.high %v3672_v19, %v3676_v15  ;;  %v8656_v38 = vcombine.low %v3672_v19, %v3676_v15  ;;  %v3749_v19 = vld [vmem:[#allocation6 + $0x470] sm:$0xff] }
 0x392   :  { %v8784_v37 = vcombine.low %v3800_v7, %v3804_v16 }
 0x393   :  { %5276 = vmatpush1.bf16.msra.mxu0 %v8592_v10  ;;  %5319 = vmatpush1.bf16.msra.mxu1 %v8720_v21  ;;  %v8785_v10 = vcombine.high %v3800_v7, %v3804_v16  ;;  %v3665_v21 = vld [vmem:[#allocation6 + $0x1d0] sm:$0xff] }
 0x394   :  { %5277 = vmatprep.subr.bf16.mxu0 %v8713_v32  ;;  %5320 = vmatprep.subr.bf16.mxu1 %v8841_v17  ;;  %v3669_v32 = vld [vmem:[#allocation6 + $0x1f0] sm:$0xff] }
 0x395   :  { %v3793_v17 = vld [vmem:[#allocation6 + $0x5d0] sm:$0xff]  ;;  %v8651_v24 = vcombine.high %v3665_v21, %v3669_v32  ;;  %v8650_v44 = vcombine.low %v3665_v21, %v3669_v32 }
 0x396   :  { %v8778_v45 = vcombine.low %v3793_v17, %v3797_v34  ;;  %v3741_v21 = vld [vmem:[#allocation6 + $0x430] sm:$0xff] }
 0x397   :  { %5278 = vmatpush2.bf16.msra.mxu0 %v8712_v31  ;;  %5321 = vmatpush2.bf16.msra.mxu1 %v8840_v39  ;;  %v8779_v31 = vcombine.high %v3793_v17, %v3797_v34  ;;  %v3657_v39 = vld [vmem:[#allocation6 + $0x190] sm:$0xff] }
 0x398   :  { %5279 = vmatprep.subr.bf16.mxu0 %v8705_v40  ;;  %5322 = vmatprep.subr.bf16.mxu1 %v8833_v42  ;;  %v3661_v40 = vld [vmem:[#allocation6 + $0x1b0] sm:$0xff] }
 0x399   :  { %v3785_v42 = vld [vmem:[#allocation6 + $0x590] sm:$0xff]  ;;  %v8643_v46 = vcombine.high %v3657_v39, %v3661_v40  ;;  %v8642_v52 = vcombine.low %v3657_v39, %v3661_v40 }
 0x39a   :  { %v8770_v53 = vcombine.low %v3785_v42, %v3789_v43  ;;  %v3861_v39 = vld [vmem:[#allocation6 + $0x7f0] sm:$0xff] }
 0x39b   :  { %5280 = vmatpush2.bf16.msra.mxu0 %v8704_v28  ;;  %5323 = vmatpush2.bf16.msra.mxu1 %v8832_v48  ;;  %v8771_v28 = vcombine.high %v3785_v42, %v3789_v43  ;;  %v3649_v48 = vld [vmem:[#allocation6 + $0x150] sm:$0xff] }
 0x39c   :  { %5281 = vmatprep.subr.bf16.mxu0 %v8697_v49  ;;  %5324 = vmatprep.subr.bf16.mxu1 %v8825_v50  ;;  %v3653_v49 = vld [vmem:[#allocation6 + $0x170] sm:$0xff] }
 0x39d   :  { %v3777_v50 = vld [vmem:[#allocation6 + $0x550] sm:$0xff]  ;;  %v8635_v54 = vcombine.high %v3649_v48, %v3653_v49  ;;  %v8634_v33 = vcombine.low %v3649_v48, %v3653_v49 }
 0x39e   :  { %v8762_v59 = vcombine.low %v3777_v50, %v3781_v51  ;;  %v3853_v48 = vld [vmem:[#allocation6 + $0x7b0] sm:$0xff] }
 0x39f   :  { %5282 = vmatpush2.bf16.msra.mxu0 %v8696_v55  ;;  %5325 = vmatpush2.bf16.msra.mxu1 %v8824_v27  ;;  %v8763_v55 = vcombine.high %v3777_v50, %v3781_v51  ;;  %v3641_v27 = vld [vmem:[#allocation6 + $0x110] sm:$0xff] }
 0x3a0   :  { %5283 = vmatprep.subr.bf16.mxu0 %v8689_v29  ;;  %5326 = vmatprep.subr.bf16.mxu1 %v8817_v30  ;;  %v3645_v29 = vld [vmem:[#allocation6 + $0x130] sm:$0xff] }
 0x3a1   :  { %v3769_v30 = vld [vmem:[#allocation6 + $0x510] sm:$0xff]  ;;  %v8627_v60 = vcombine.high %v3641_v27, %v3645_v29  ;;  %v8626_v3 = vcombine.low %v3641_v27, %v3645_v29 }
 0x3a2   :  { %v8754_v4 = vcombine.low %v3769_v30, %v3773_v47  ;;  %v3845_v27 = vld [vmem:[#allocation6 + $0x770] sm:$0xff] }
 0x3a3   :  { %5284 = vmatpush2.bf16.msra.mxu0 %v8688_v61  ;;  %5327 = vmatpush2.bf16.msra.mxu1 %v8816_v62  ;;  %v8755_v61 = vcombine.high %v3769_v30, %v3773_v47  ;;  %v3633_v62 = vld [vmem:[#allocation6 + $0xd0] sm:$0xff] }
 0x3a4   :  { %5285 = vmatprep.subr.bf16.mxu0 %v8681_v0  ;;  %5328 = vmatprep.subr.bf16.mxu1 %v8809_v63  ;;  %v3637_v0 = vld [vmem:[#allocation6 + $0xf0] sm:$0xff] }
 0x3a5   :  { %v3761_v63 = vld [vmem:[#allocation6 + $0x4d0] sm:$0xff]  ;;  %v8619_v1 = vcombine.high %v3633_v62, %v3637_v0  ;;  %v8618_v25 = vcombine.low %v3633_v62, %v3637_v0 }
 0x3a6   :  { %v8746_v26 = vcombine.low %v3761_v63, %v3765_v2  ;;  %v3837_v62 = vld [vmem:[#allocation6 + $0x730] sm:$0xff] }
 0x3a7   :  { %5286 = vmatpush2.bf16.msra.mxu0 %v8680_v6  ;;  %5329 = vmatpush2.bf16.msra.mxu1 %v8808_v8  ;;  %v8747_v6 = vcombine.high %v3761_v63, %v3765_v2  ;;  %v3625_v8 = vld [vmem:[#allocation6 + $0x90] sm:$0xff] }
 0x3a8   :  { %5287 = vmatprep.subr.bf16.mxu0 %v8673_v5  ;;  %5330 = vmatprep.subr.bf16.mxu1 %v8801_v56  ;;  %v3629_v5 = vld [vmem:[#allocation6 + $0xb0] sm:$0xff] }
 0x3a9   :  { %v3753_v56 = vld [vmem:[#allocation6 + $0x490] sm:$0xff]  ;;  %v8611_v41 = vcombine.high %v3625_v8, %v3629_v5  ;;  %v8610_v15 = vcombine.low %v3625_v8, %v3629_v5 }
 0x3aa   :  { %v8738_v7 = vcombine.low %v3753_v56, %v3757_v57  ;;  %v3829_v8 = vld [vmem:[#allocation6 + $0x6f0] sm:$0xff] }
 0x3ab   :  { %5288 = vmatpush2.bf16.msra.mxu0 %v8672_v58  ;;  %5331 = vmatpush2.bf16.msra.mxu1 %v8800_v12  ;;  %v8739_v58 = vcombine.high %v3753_v56, %v3757_v57  ;;  %v3617_v12 = vld [vmem:[#allocation6 + $0x50] sm:$0xff] }
 0x3ac   :  { %5289 = vmatprep.subr.bf16.mxu0 %v8665_v9  ;;  %5332 = vmatprep.subr.bf16.mxu1 %v8793_v14  ;;  %v3621_v9 = vld [vmem:[#allocation6 + $0x70] sm:$0xff] }
 0x3ad   :  { %v3745_v14 = vld [vmem:[#allocation6 + $0x450] sm:$0xff]  ;;  %v8603_v16 = vcombine.high %v3617_v12, %v3621_v9  ;;  %v8602_v32 = vcombine.low %v3617_v12, %v3621_v9 }
 0x3ae   :  { %v8730_v17 = vcombine.low %v3745_v14, %v3749_v19  ;;  %v3821_v12 = vld [vmem:[#allocation6 + $0x6b0] sm:$0xff] }
 0x3af   :  { %5290 = vmatpush2.bf16.msra.mxu0 %v8664_v18  ;;  %5333 = vmatpush2.bf16.msra.mxu1 %v8792_v13  ;;  %v8731_v18 = vcombine.high %v3745_v14, %v3749_v19  ;;  %v3609_v13 = vld [vmem:[#allocation6 + $0x10] sm:$0xff] }
 0x3b0   :  { %5291 = vmatprep.subr.bf16.mxu0 %v8657_v20  ;;  %5334 = vmatprep.subr.bf16.mxu1 %v8785_v10  ;;  %v3613_v20 = vld [vmem:[#allocation6 + $0x30] sm:$0xff] }
 0x3b1   :  { %v3737_v10 = vld [vmem:[#allocation6 + $0x410] sm:$0xff]  ;;  %v8595_v34 = vcombine.high %v3609_v13, %v3613_v20  ;;  %v8594_v40 = vcombine.low %v3609_v13, %v3613_v20 }
 0x3b2   :  { %v8722_v42 = vcombine.low %v3737_v10, %v3741_v21  ;;  %v3813_v13 = vld [vmem:[#allocation6 + $0x670] sm:$0xff] }
 0x3b3   :  { %5292 = vmatpush2.bf16.msra.mxu0 %v8656_v38  ;;  %5335 = vmatpush2.bf16.msra.mxu1 %v8784_v37  ;;  %v8723_v38 = vcombine.high %v3737_v10, %v3741_v21  ;;  %v3729_v37 = vld [vmem:[#allocation6 + $0x3d0] sm:$0xff] }
 0x3b4   :  { %5347 = vmatprep.subr.bf16.mxu0 %v8651_v24  ;;  %5390 = vmatprep.subr.bf16.mxu1 %v8779_v31  ;;  %v3733_v24 = vld [vmem:[#allocation6 + $0x3f0] sm:$0xff] }
 0x3b5   :  { %v3857_v31 = vld [vmem:[#allocation6 + $0x7d0] sm:$0xff]  ;;  %v8715_v43 = vcombine.high %v3729_v37, %v3733_v24  ;;  %v8714_v49 = vcombine.low %v3729_v37, %v3733_v24 }
 0x3b6   :  { %5294 = vmatmul.mubr.bf16.vlgmr.msra.gmra.mxu0 %v10820_v35  ;;  %5337 = vmatmul.mubr.bf16.vlgmr.msra.gmra.mxu1 %v10822_v36  ;;  %v8842_v50 = vcombine.low %v3857_v31, %v3861_v39  ;;  %v3805_v37 = vld [vmem:[#allocation6 + $0x630] sm:$0xff] }
 0x3b7   :  { %5348 = vmatpush1.bf16.msra.mxu0 %v8650_v44  ;;  %5379 = vmatprep.mubr.bf16.mxu0 %v10816_v23  ;;  %v8843_v44 = vcombine.high %v3857_v31, %v3861_v39 }
 0x3b8   :  { %5391 = vmatpush1.bf16.msra.mxu1 %v8778_v45  ;;  %5422 = vmatprep.mubr.bf16.mxu1 %v10818_v22  ;;  %v3721_v45 = vld [vmem:[#allocation6 + $0x390] sm:$0xff] }
 0x3b9   :  { %5349 = vmatprep.subr.bf16.mxu0 %v8643_v46  ;;  %5392 = vmatprep.subr.bf16.mxu1 %v8771_v28  ;;  %v3725_v46 = vld [vmem:[#allocation6 + $0x3b0] sm:$0xff] }
 0x3ba   :  { %v3849_v28 = vld [vmem:[#allocation6 + $0x790] sm:$0xff]  ;;  %v8707_v51 = vcombine.high %v3721_v45, %v3725_v46  ;;  %v8706_v29 = vcombine.low %v3721_v45, %v3725_v46  ;;  %v3798_v45 = vld [vmem:[#allocation6 + $0x5f8] sm:$0xff] }
 0x3bb   :  { %5350 = vmatpush1.bf16.msra.mxu0 %v8642_v52  ;;  %v8835_v52 = vcombine.high %v3849_v28, %v3853_v48  ;;  %v8834_v30 = vcombine.low %v3849_v28, %v3853_v48 }
 0x3bc   :  { %5393 = vmatpush1.bf16.msra.mxu1 %v8770_v53  ;;  %5351 = vmatprep.subr.bf16.mxu0 %v8635_v54  ;;  %v3713_v53 = vld [vmem:[#allocation6 + $0x350] sm:$0xff] }
 0x3bd   :  { %5394 = vmatprep.subr.bf16.mxu1 %v8763_v55  ;;  %v3717_v54 = vld [vmem:[#allocation6 + $0x370] sm:$0xff] }
 0x3be   :  { %v3841_v55 = vld [vmem:[#allocation6 + $0x750] sm:$0xff]  ;;  %v8699_v47 = vcombine.high %v3713_v53, %v3717_v54  ;;  %v8698_v0 = vcombine.low %v3713_v53, %v3717_v54  ;;  %v3786_v53 = vld [vmem:[#allocation6 + $0x598] sm:$0xff] }
 0x3bf   :  { %5352 = vmatpush1.bf16.msra.mxu0 %v8634_v33  ;;  %v8827_v33 = vcombine.high %v3841_v55, %v3845_v27  ;;  %v8826_v63 = vcombine.low %v3841_v55, %v3845_v27  ;;  %v3790_v54 = vld [vmem:[#allocation6 + $0x5b8] sm:$0xff] }
 0x3c0   :  { %5395 = vmatpush1.bf16.msra.mxu1 %v8762_v59  ;;  %5353 = vmatprep.subr.bf16.mxu0 %v8627_v60  ;;  %v3705_v59 = vld [vmem:[#allocation6 + $0x310] sm:$0xff] }
 0x3c1   :  { %5396 = vmatprep.subr.bf16.mxu1 %v8755_v61  ;;  %v3709_v60 = vld [vmem:[#allocation6 + $0x330] sm:$0xff] }
 0x3c2   :  { %v3833_v61 = vld [vmem:[#allocation6 + $0x710] sm:$0xff]  ;;  %v8691_v2 = vcombine.high %v3705_v59, %v3709_v60  ;;  %v8690_v5 = vcombine.low %v3705_v59, %v3709_v60  ;;  %v3782_v59 = vld [vmem:[#allocation6 + $0x578] sm:$0xff] }
 0x3c3   :  { %5354 = vmatpush1.bf16.msra.mxu0 %v8626_v3  ;;  %v8819_v3 = vcombine.high %v3833_v61, %v3837_v62  ;;  %v8818_v56 = vcombine.low %v3833_v61, %v3837_v62  ;;  %v8772_v61 = vcombine.low %v3786_v53, %v3790_v54 }
 0x3c4   :  { %5397 = vmatpush1.bf16.msra.mxu1 %v8754_v4  ;;  %5355 = vmatprep.subr.bf16.mxu0 %v8619_v1  ;;  %v3697_v4 = vld [vmem:[#allocation6 + $0x2d0] sm:$0xff] }
 0x3c5   :  { %5398 = vmatprep.subr.bf16.mxu1 %v8747_v6  ;;  %v3701_v1 = vld [vmem:[#allocation6 + $0x2f0] sm:$0xff] }
 0x3c6   :  { %v3825_v6 = vld [vmem:[#allocation6 + $0x6d0] sm:$0xff]  ;;  %v8683_v57 = vcombine.high %v3697_v4, %v3701_v1  ;;  %v8682_v9 = vcombine.low %v3697_v4, %v3701_v1  ;;  %v3774_v4 = vld [vmem:[#allocation6 + $0x538] sm:$0xff] }
 0x3c7   :  { %5356 = vmatpush1.bf16.msra.mxu0 %v8618_v25  ;;  %v8811_v25 = vcombine.high %v3825_v6, %v3829_v8  ;;  %v8810_v14 = vcombine.low %v3825_v6, %v3829_v8 }
 0x3c8   :  { %5399 = vmatpush1.bf16.msra.mxu1 %v8746_v26  ;;  %5357 = vmatprep.subr.bf16.mxu0 %v8611_v41  ;;  %v3689_v26 = vld [vmem:[#allocation6 + $0x290] sm:$0xff] }
 0x3c9   :  { %5400 = vmatprep.subr.bf16.mxu1 %v8739_v58  ;;  %v3693_v41 = vld [vmem:[#allocation6 + $0x2b0] sm:$0xff] }
 0x3ca   :  { %v3817_v58 = vld [vmem:[#allocation6 + $0x690] sm:$0xff]  ;;  %v8675_v19 = vcombine.high %v3689_v26, %v3693_v41  ;;  %v8674_v20 = vcombine.low %v3689_v26, %v3693_v41 }
 0x3cb   :  { %5358 = vmatpush1.bf16.msra.mxu0 %v8610_v15  ;;  %v8803_v15 = vcombine.high %v3817_v58, %v3821_v12  ;;  %v8802_v10 = vcombine.low %v3817_v58, %v3821_v12  ;;  %v3626_v12 = vld [vmem:[#allocation6 + $0x98] sm:$0xff] }
 0x3cc   :  { %5401 = vmatpush1.bf16.msra.mxu1 %v8738_v7  ;;  %5359 = vmatprep.subr.bf16.mxu0 %v8603_v16  ;;  %v3681_v7 = vld [vmem:[#allocation6 + $0x250] sm:$0xff] }
 0x3cd   :  { %5402 = vmatprep.subr.bf16.mxu1 %v8731_v18  ;;  %v3685_v16 = vld [vmem:[#allocation6 + $0x270] sm:$0xff] }
 0x3ce   :  { %v3809_v18 = vld [vmem:[#allocation6 + $0x650] sm:$0xff]  ;;  %v8667_v21 = vcombine.high %v3681_v7, %v3685_v16  ;;  %v8666_v24 = vcombine.low %v3681_v7, %v3685_v16 }
 0x3cf   :  { %5360 = vmatpush1.bf16.msra.mxu0 %v8602_v32  ;;  %v8795_v32 = vcombine.high %v3809_v18, %v3813_v13  ;;  %v8794_v31 = vcombine.low %v3809_v18, %v3813_v13  ;;  %v3618_v13 = vld [vmem:[#allocation6 + $0x58] sm:$0xff] }
 0x3d0   :  { %5403 = vmatpush1.bf16.msra.mxu1 %v8730_v17  ;;  %5361 = vmatprep.subr.bf16.mxu0 %v8595_v34  ;;  %v3673_v17 = vld [vmem:[#allocation6 + $0x210] sm:$0xff] }
 0x3d1   :  { %5404 = vmatprep.subr.bf16.mxu1 %v8723_v38  ;;  %v3677_v34 = vld [vmem:[#allocation6 + $0x230] sm:$0xff] }
 0x3d2   :  { %v3801_v38 = vld [vmem:[#allocation6 + $0x610] sm:$0xff]  ;;  %v8659_v39 = vcombine.high %v3673_v17, %v3677_v34  ;;  %v8658_v46 = vcombine.low %v3673_v17, %v3677_v34 }
 0x3d3   :  { %5362 = vmatpush1.bf16.msra.mxu0 %v8594_v40  ;;  %v8787_v40 = vcombine.high %v3801_v38, %v3805_v37  ;;  %v8786_v28 = vcombine.low %v3801_v38, %v3805_v37  ;;  %v3610_v37 = vld [vmem:[#allocation6 + $0x18] sm:$0xff] }
 0x3d4   :  { %5405 = vmatpush1.bf16.msra.mxu1 %v8722_v42  ;;  %5363 = vmatprep.subr.bf16.mxu0 %v8715_v43  ;;  %v3666_v42 = vld [vmem:[#allocation6 + $0x1d8] sm:$0xff] }
 0x3d5   :  { %5406 = vmatprep.subr.bf16.mxu1 %v8843_v44  ;;  %v3670_v43 = vld [vmem:[#allocation6 + $0x1f8] sm:$0xff] }
 0x3d6   :  { %v3794_v44 = vld [vmem:[#allocation6 + $0x5d8] sm:$0xff]  ;;  %v8653_v48 = vcombine.high %v3666_v42, %v3670_v43 }
 0x3d7   :  { %5364 = vmatpush2.bf16.msra.mxu0 %v8714_v49  ;;  %v8781_v49 = vcombine.high %v3794_v44, %v3798_v45  ;;  %v8780_v55 = vcombine.low %v3794_v44, %v3798_v45  ;;  %v3730_v45 = vld [vmem:[#allocation6 + $0x3d8] sm:$0xff] }
 0x3d8   :  { %5407 = vmatpush2.bf16.msra.mxu1 %v8842_v50  ;;  %5365 = vmatprep.subr.bf16.mxu0 %v8707_v51  ;;  %v3658_v50 = vld [vmem:[#allocation6 + $0x198] sm:$0xff] }
 0x3d9   :  { %5408 = vmatprep.subr.bf16.mxu1 %v8835_v52  ;;  %v3662_v51 = vld [vmem:[#allocation6 + $0x1b8] sm:$0xff]  ;;  %v8652_v52 = vcombine.low %v3666_v42, %v3670_v43 }
 0x3da   :  { %v8645_v27 = vcombine.high %v3658_v50, %v3662_v51  ;;  %v8644_v60 = vcombine.low %v3658_v50, %v3662_v51 }
 0x3db   :  { %5366 = vmatpush2.bf16.msra.mxu0 %v8706_v29  ;;  %v3650_v29 = vld [vmem:[#allocation6 + $0x158] sm:$0xff] }
 0x3dc   :  { %5409 = vmatpush2.bf16.msra.mxu1 %v8834_v30  ;;  %5367 = vmatprep.subr.bf16.mxu0 %v8699_v47  ;;  %v3654_v30 = vld [vmem:[#allocation6 + $0x178] sm:$0xff]  ;;  %v8773_v47 = vcombine.high %v3786_v53, %v3790_v54 }
 0x3dd   :  { %5410 = vmatprep.subr.bf16.mxu1 %v8827_v33  ;;  %v3778_v33 = vld [vmem:[#allocation6 + $0x558] sm:$0xff]  ;;  %v8637_v62 = vcombine.high %v3650_v29, %v3654_v30  ;;  %v8636_v1 = vcombine.low %v3650_v29, %v3654_v30 }
 0x3de   :  { %v8764_v6 = vcombine.low %v3778_v33, %v3782_v59  ;;  %v3722_v53 = vld [vmem:[#allocation6 + $0x398] sm:$0xff] }
 0x3df   :  { %5368 = vmatpush2.bf16.msra.mxu0 %v8698_v0  ;;  %v8765_v0 = vcombine.high %v3778_v33, %v3782_v59  ;;  %v3726_v54 = vld [vmem:[#allocation6 + $0x3b8] sm:$0xff] }
 0x3e0   :  { %5411 = vmatpush2.bf16.msra.mxu1 %v8826_v63  ;;  %5369 = vmatprep.subr.bf16.mxu0 %v8691_v2  ;;  %v3642_v63 = vld [vmem:[#allocation6 + $0x118] sm:$0xff] }
 0x3e1   :  { %5412 = vmatprep.subr.bf16.mxu1 %v8819_v3  ;;  %v3646_v2 = vld [vmem:[#allocation6 + $0x138] sm:$0xff] }
 0x3e2   :  { %v3770_v3 = vld [vmem:[#allocation6 + $0x518] sm:$0xff]  ;;  %v8629_v8 = vcombine.high %v3642_v63, %v3646_v2 }
 0x3e3   :  { %5370 = vmatpush2.bf16.msra.mxu0 %v8690_v5  ;;  %v3634_v5 = vld [vmem:[#allocation6 + $0xd8] sm:$0xff]  ;;  %v8756_v26 = vcombine.low %v3770_v3, %v3774_v4 }
 0x3e4   :  { %5413 = vmatpush2.bf16.msra.mxu1 %v8818_v56  ;;  %5371 = vmatprep.subr.bf16.mxu0 %v8683_v57  ;;  %v3638_v56 = vld [vmem:[#allocation6 + $0xf8] sm:$0xff] }
 0x3e5   :  { %5414 = vmatprep.subr.bf16.mxu1 %v8811_v25  ;;  %v3762_v57 = vld [vmem:[#allocation6 + $0x4d8] sm:$0xff]  ;;  %v8621_v41 = vcombine.high %v3634_v5, %v3638_v56 }
 0x3e6   :  { %v3766_v25 = vld [vmem:[#allocation6 + $0x4f8] sm:$0xff] }
 0x3e7   :  { %5372 = vmatpush2.bf16.msra.mxu0 %v8682_v9  ;;  %v8749_v58 = vcombine.high %v3762_v57, %v3766_v25  ;;  %v3630_v9 = vld [vmem:[#allocation6 + $0xb8] sm:$0xff]  ;;  %v8748_v7 = vcombine.low %v3762_v57, %v3766_v25 }
 0x3e8   :  { %5415 = vmatpush2.bf16.msra.mxu1 %v8810_v14  ;;  %5373 = vmatprep.subr.bf16.mxu0 %v8675_v19  ;;  %v3754_v14 = vld [vmem:[#allocation6 + $0x498] sm:$0xff]  ;;  %v8613_v16 = vcombine.high %v3626_v12, %v3630_v9 }
 0x3e9   :  { %5416 = vmatprep.subr.bf16.mxu1 %v8803_v15  ;;  %v3758_v19 = vld [vmem:[#allocation6 + $0x4b8] sm:$0xff]  ;;  %v8620_v15 = vcombine.low %v3634_v5, %v3638_v56 }
 0x3ea   :  { %v8741_v18 = vcombine.high %v3754_v14, %v3758_v19  ;;  %v8740_v17 = vcombine.low %v3754_v14, %v3758_v19  ;;  %v3714_v59 = vld [vmem:[#allocation6 + $0x358] sm:$0xff] }
 0x3eb   :  { %5374 = vmatpush2.bf16.msra.mxu0 %v8674_v20  ;;  %v3622_v20 = vld [vmem:[#allocation6 + $0x78] sm:$0xff] }
 0x3ec   :  { %5417 = vmatpush2.bf16.msra.mxu1 %v8802_v10  ;;  %5375 = vmatprep.subr.bf16.mxu0 %v8667_v21  ;;  %v3746_v10 = vld [vmem:[#allocation6 + $0x458] sm:$0xff]  ;;  %v8605_v34 = vcombine.high %v3618_v13, %v3622_v20 }
 0x3ed   :  { %5418 = vmatprep.subr.bf16.mxu1 %v8795_v32  ;;  %v3750_v21 = vld [vmem:[#allocation6 + $0x478] sm:$0xff]  ;;  %v8612_v32 = vcombine.low %v3626_v12, %v3630_v9 }
 0x3ee   :  { %v8733_v38 = vcombine.high %v3746_v10, %v3750_v21  ;;  %v8732_v42 = vcombine.low %v3746_v10, %v3750_v21  ;;  %v3698_v25 = vld [vmem:[#allocation6 + $0x2d8] sm:$0xff] }
 0x3ef   :  { %5376 = vmatpush2.bf16.msra.mxu0 %v8666_v24  ;;  %v3614_v24 = vld [vmem:[#allocation6 + $0x38] sm:$0xff] }
 0x3f0   :  { %5419 = vmatpush2.bf16.msra.mxu1 %v8794_v31  ;;  %5377 = vmatprep.subr.bf16.mxu0 %v8659_v39  ;;  %v3738_v31 = vld [vmem:[#allocation6 + $0x418] sm:$0xff]  ;;  %v8597_v43 = vcombine.high %v3610_v37, %v3614_v24 }
 0x3f1   :  { %5420 = vmatprep.subr.bf16.mxu1 %v8787_v40  ;;  %v3742_v39 = vld [vmem:[#allocation6 + $0x438] sm:$0xff]  ;;  %v8604_v40 = vcombine.low %v3618_v13, %v3622_v20 }
 0x3f2   :  { %v8725_v44 = vcombine.high %v3738_v31, %v3742_v39  ;;  %v8724_v50 = vcombine.low %v3738_v31, %v3742_v39  ;;  %v3690_v19 = vld [vmem:[#allocation6 + $0x298] sm:$0xff] }
 0x3f3   :  { %5378 = vmatpush2.bf16.msra.mxu0 %v8658_v46  ;;  %v3734_v46 = vld [vmem:[#allocation6 + $0x3f8] sm:$0xff] }
 0x3f4   :  { %5421 = vmatpush2.bf16.msra.mxu1 %v8786_v28  ;;  %5433 = vmatprep.subr.bf16.mxu0 %v8653_v48  ;;  %v3858_v28 = vld [vmem:[#allocation6 + $0x7d8] sm:$0xff]  ;;  %v8717_v51 = vcombine.high %v3730_v45, %v3734_v46  ;;  %v8716_v29 = vcombine.low %v3730_v45, %v3734_v46 }
 0x3f5   :  { %5476 = vmatprep.subr.bf16.mxu1 %v8781_v49  ;;  %v3862_v48 = vld [vmem:[#allocation6 + $0x7f8] sm:$0xff]  ;;  %v8596_v49 = vcombine.low %v3610_v37, %v3614_v24 }
 0x3f6   :  { %5380 = vmatmul.mubr.bf16.vlgmr.msra.gmra.mxu0 %v10820_v35  ;;  %v8844_v30 = vcombine.low %v3858_v28, %v3862_v48  ;;  %v3682_v21 = vld [vmem:[#allocation6 + $0x258] sm:$0xff] }
 0x3f7   :  { %5423 = vmatmul.mubr.bf16.vlgmr.msra.gmra.mxu1 %v10822_v36  ;;  %5434 = vmatpush1.bf16.msra.mxu0 %v8652_v52  ;;  %v8845_v52 = vcombine.high %v3858_v28, %v3862_v48  ;;  %v3674_v39 = vld [vmem:[#allocation6 + $0x218] sm:$0xff] }
 0x3f8   :  { %5465 = vmatprep.mubr.bf16.mxu0 %v10816_v23  ;;  %5477 = vmatpush1.bf16.msra.mxu1 %v8780_v55  ;;  %v8757_v23 = vcombine.high %v3770_v3, %v3774_v4  ;;  %v3850_v55 = vld [vmem:[#allocation6 + $0x798] sm:$0xff] }
 0x3f9   :  { %5508 = vmatprep.mubr.bf16.mxu1 %v10818_v22  ;;  %5435 = vmatprep.subr.bf16.mxu0 %v8645_v27  ;;  %v8628_v22 = vcombine.low %v3642_v63, %v3646_v2  ;;  %v3854_v27 = vld [vmem:[#allocation6 + $0x7b8] sm:$0xff] }
 0x3fa   :  { %5478 = vmatprep.subr.bf16.mxu1 %v8773_v47  ;;  %v8709_v47 = vcombine.high %v3722_v53, %v3726_v54  ;;  %v8837_v33 = vcombine.high %v3850_v55, %v3854_v27  ;;  %v8836_v63 = vcombine.low %v3850_v55, %v3854_v27  ;;  %v3706_v4 = vld [vmem:[#allocation6 + $0x318] sm:$0xff]  ;;  %v9906_v55 = vld [vmem:[#allocation7 + $0x2e0] ss:$16 sps:$4 sm:$0xff]   ;;  %v10387_v27 = vld [vmem:[#allocation12 + $0x8] sm:$0xff] }
 0x3fb   :  { %5436 = vmatpush1.bf16.msra.mxu0 %v8644_v60  ;;  %v3718_v60 = vld [vmem:[#allocation6 + $0x378] sm:$0xff] }
 0x3fc   :  { %5479 = vmatpush1.bf16.msra.mxu1 %v8772_v61  ;;  %5437 = vmatprep.subr.bf16.mxu0 %v8637_v62  ;;  %v3842_v61 = vld [vmem:[#allocation6 + $0x758] sm:$0xff]  ;;  %v8701_v2 = vcombine.high %v3714_v59, %v3718_v60 }
 0x3fd   :  { %5480 = vmatprep.subr.bf16.mxu1 %v8765_v0  ;;  %v3846_v62 = vld [vmem:[#allocation6 + $0x778] sm:$0xff]  ;;  %v8708_v0 = vcombine.low %v3722_v53, %v3726_v54  ;;  %v10839_v53 = vsub.s32 2, %v10798_v11  ;;  %v9896_v54 = vld [vmem:[#allocation7 + $0xc4] ss:$16 sps:$4 sm:$0xff]  }
 0x3fe   :  { %v8829_v3 = vcombine.high %v3842_v61, %v3846_v62  ;;  %v8828_v5 = vcombine.low %v3842_v61, %v3846_v62  ;;  %v9899_v62 = vld [vmem:[#allocation7 + $0xa4] ss:$16 sps:$4 sm:$0xff]  }
 0x3ff   :  { %5438 = vmatpush1.bf16.msra.mxu0 %v8636_v1  ;;  %v3710_v1 = vld [vmem:[#allocation6 + $0x338] sm:$0xff] }
 0x400   :  { %5481 = vmatpush1.bf16.msra.mxu1 %v8764_v6  ;;  %5439 = vmatprep.subr.bf16.mxu0 %v8629_v8  ;;  %v3834_v6 = vld [vmem:[#allocation6 + $0x718] sm:$0xff]  ;;  %v8693_v56 = vcombine.high %v3706_v4, %v3710_v1 }
 0x401   :  { %5482 = vmatprep.subr.bf16.mxu1 %v8757_v23  ;;  %v3838_v8 = vld [vmem:[#allocation6 + $0x738] sm:$0xff]  ;;  %v8700_v23 = vcombine.low %v3714_v59, %v3718_v60  ;;  %v9894_v59 = vld [vmem:[#allocation7 + $0xc0] ss:$16 sps:$4 sm:$0xff]  }
 0x402   :  { %v8821_v57 = vcombine.high %v3834_v6, %v3838_v8  ;;  %v8820_v12 = vcombine.low %v3834_v6, %v3838_v8  ;;  %v9918_v6 = vld [vmem:[#allocation7 + $0x2a0] ss:$16 sps:$4 sm:$0xff]  }
 0x403   :  { %5440 = vmatpush1.bf16.msra.mxu0 %v8628_v22  ;;  %v3702_v22 = vld [vmem:[#allocation6 + $0x2f8] sm:$0xff] }
 0x404   :  { %5483 = vmatpush1.bf16.msra.mxu1 %v8756_v26  ;;  %5441 = vmatprep.subr.bf16.mxu0 %v8621_v41  ;;  %v3826_v26 = vld [vmem:[#allocation6 + $0x6d8] sm:$0xff]  ;;  %v8685_v9 = vcombine.high %v3698_v25, %v3702_v22 }
 0x405   :  { %5484 = vmatprep.subr.bf16.mxu1 %v8749_v58  ;;  %v3830_v41 = vld [vmem:[#allocation6 + $0x6f8] sm:$0xff]  ;;  %v8692_v58 = vcombine.low %v3706_v4, %v3710_v1  ;;  %v9897_v4 = vld [vmem:[#allocation7 + $0xa0] ss:$16 sps:$4 sm:$0xff]  }
 0x406   :  { %v8813_v14 = vcombine.high %v3826_v26, %v3830_v41  ;;  %v8812_v13 = vcombine.low %v3826_v26, %v3830_v41  ;;  %v9924_v26 = vld [vmem:[#allocation7 + $0x280] ss:$16 sps:$4 sm:$0xff]  }
 0x407   :  { %5442 = vmatpush1.bf16.msra.mxu0 %v8620_v15  ;;  %v3694_v15 = vld [vmem:[#allocation6 + $0x2b8] sm:$0xff] }
 0x408   :  { %5485 = vmatpush1.bf16.msra.mxu1 %v8748_v7  ;;  %5443 = vmatprep.subr.bf16.mxu0 %v8613_v16  ;;  %v3818_v7 = vld [vmem:[#allocation6 + $0x698] sm:$0xff]  ;;  %v8677_v20 = vcombine.high %v3690_v19, %v3694_v15 }
 0x409   :  { %5486 = vmatprep.subr.bf16.mxu1 %v8741_v18  ;;  %v3822_v16 = vld [vmem:[#allocation6 + $0x6b8] sm:$0xff]  ;;  %v8684_v18 = vcombine.low %v3698_v25, %v3702_v22  ;;  %v9900_v25 = vld [vmem:[#allocation7 + $0x80] ss:$16 sps:$4 sm:$0xff]   ;;  %v9905_v22 = vld [vmem:[#allocation7 + $0x64] ss:$16 sps:$4 sm:$0xff]  }
 0x40a   :  { %v8805_v10 = vcombine.high %v3818_v7, %v3822_v16  ;;  %v8804_v37 = vcombine.low %v3818_v7, %v3822_v16  ;;  %v9938_v7 = vld [vmem:[#allocation7 + $0x244] ss:$16 sps:$4 sm:$0xff]   ;;  %v9909_v16 = vld [vmem:[#allocation7 + $0x40] ss:$16 sps:$4 sm:$0xff]  }
 0x40b   :  { %5444 = vmatpush1.bf16.msra.mxu0 %v8612_v32  ;;  %v3686_v32 = vld [vmem:[#allocation6 + $0x278] sm:$0xff] }
 0x40c   :  { %5487 = vmatpush1.bf16.msra.mxu1 %v8740_v17  ;;  %5445 = vmatprep.subr.bf16.mxu0 %v8605_v34  ;;  %v3810_v17 = vld [vmem:[#allocation6 + $0x658] sm:$0xff]  ;;  %v8669_v24 = vcombine.high %v3682_v21, %v3686_v32 }
 0x40d   :  { %5488 = vmatprep.subr.bf16.mxu1 %v8733_v38  ;;  %v3814_v34 = vld [vmem:[#allocation6 + $0x678] sm:$0xff]  ;;  %v8676_v38 = vcombine.low %v3690_v19, %v3694_v15  ;;  %v9911_v19 = vld [vmem:[#allocation7 + $0x44] ss:$16 sps:$4 sm:$0xff]   ;;  %v9930_v15 = vld [vmem:[#allocation7 + $0x260] ss:$16 sps:$4 sm:$0xff]  }
 0x40e   :  { %v8797_v31 = vcombine.high %v3810_v17, %v3814_v34  ;;  %v8796_v45 = vcombine.low %v3810_v17, %v3814_v34  ;;  %v9950_v17 = vld [vmem:[#allocation7 + $0x204] ss:$16 sps:$4 sm:$0xff]   ;;  %v9921_v34 = vld [vmem:[#allocation7] ss:$16 sps:$4 sm:$0xff]  }
 0x40f   :  { %5446 = vmatpush1.bf16.msra.mxu0 %v8604_v40  ;;  %v3678_v40 = vld [vmem:[#allocation6 + $0x238] sm:$0xff] }
 0x410   :  { %5489 = vmatpush1.bf16.msra.mxu1 %v8732_v42  ;;  %5447 = vmatprep.subr.bf16.mxu0 %v8597_v43  ;;  %v3802_v42 = vld [vmem:[#allocation6 + $0x618] sm:$0xff]  ;;  %v8661_v46 = vcombine.high %v3674_v39, %v3678_v40  ;;  %v8660_v48 = vcombine.low %v3674_v39, %v3678_v40  ;;  %v9935_v39 = vld [vmem:[#allocation7 + $0x1c4] ss:$16 sps:$4 sm:$0xff]   ;;  %v9954_v40 = vld [vmem:[#allocation7 + $0x3e0] ss:$16 sps:$4 sm:$0xff]  }
 0x411   :  { %5490 = vmatprep.subr.bf16.mxu1 %v8725_v44  ;;  %v3806_v43 = vld [vmem:[#allocation6 + $0x638] sm:$0xff]  ;;  %v8668_v44 = vcombine.low %v3682_v21, %v3686_v32  ;;  %v9923_v21 = vld [vmem:[#allocation7 + $0x4] ss:$16 sps:$4 sm:$0xff]   ;;  %v9942_v32 = vld [vmem:[#allocation7 + $0x220] ss:$16 sps:$4 sm:$0xff]  }
 0x412   :  { %v8789_v28 = vcombine.high %v3802_v42, %v3806_v43 }
 0x413   :  { %5448 = vmatpush1.bf16.msra.mxu0 %v8596_v49  ;;  %v8788_v49 = vcombine.low %v3802_v42, %v3806_v43  ;;  %v9962_v42 = vld [vmem:[#allocation7 + $0x3c4] ss:$16 sps:$4 sm:$0xff]   ;;  %v9933_v43 = vld [vmem:[#allocation7 + $0x1c0] ss:$16 sps:$4 sm:$0xff]  }
 0x414   :  { %5491 = vmatpush1.bf16.msra.mxu1 %v8724_v50  ;;  %5449 = vmatprep.subr.bf16.mxu0 %v8717_v51  ;;  %v9893_v50 = vld [vmem:[#allocation7 + $0xe4] ss:$16 sps:$4 sm:$0xff]  }
 0x415   :  { %5492 = vmatprep.subr.bf16.mxu1 %v8845_v52  ;;  %v9908_v51 = vld [vmem:[#allocation7 + $0x2e4] ss:$16 sps:$4 sm:$0xff]   ;;  %v9891_v52 = vld [vmem:[#allocation7 + $0xe0] ss:$16 sps:$4 sm:$0xff]  }
 0x417   :  { %5450 = vmatpush2.bf16.msra.mxu0 %v8716_v29  ;;  %v3870_v29 = vrot.slane %v10387_v27, %v10839_v53  ;;  %v9951_v27 = vld [vmem:[#allocation7 + $0x160] ss:$16 sps:$4 sm:$0xff]  }
 0x418   :  { %5493 = vmatpush2.bf16.msra.mxu1 %v8844_v30  ;;  %5451 = vmatprep.subr.bf16.mxu0 %v8709_v47  ;;  %v9914_v30 = vld [vmem:[#allocation7 + $0x2c4] ss:$16 sps:$4 sm:$0xff]  }
 0x419   :  { %5494 = vmatprep.subr.bf16.mxu1 %v8837_v33 }
 0x41b   :  { %5452 = vmatpush2.bf16.msra.mxu0 %v8708_v0  ;;  %v9912_v0 = vld [vmem:[#allocation7 + $0x2c0] ss:$16 sps:$4 sm:$0xff]  }
 0x41c   :  { %5495 = vmatpush2.bf16.msra.mxu1 %v8836_v63  ;;  %5453 = vmatprep.subr.bf16.mxu0 %v8701_v2  ;;  %v9920_v2 = vld [vmem:[#allocation7 + $0x2a4] ss:$16 sps:$4 sm:$0xff]  }
 0x41d   :  { %5496 = vmatprep.subr.bf16.mxu1 %v8829_v3 }
 0x41f   :  { %5454 = vmatpush2.bf16.msra.mxu0 %v8700_v23 }
 0x420   :  { %5497 = vmatpush2.bf16.msra.mxu1 %v8828_v5  ;;  %5455 = vmatprep.subr.bf16.mxu0 %v8693_v56  ;;  %v9926_v5 = vld [vmem:[#allocation7 + $0x284] ss:$16 sps:$4 sm:$0xff]  }
 0x421   :  { %5498 = vmatprep.subr.bf16.mxu1 %v8821_v57 }
 0x423   :  { %5456 = vmatpush2.bf16.msra.mxu0 %v8692_v58 }
 0x424   :  { %5499 = vmatpush2.bf16.msra.mxu1 %v8820_v12  ;;  %5457 = vmatprep.subr.bf16.mxu0 %v8685_v9  ;;  %v9932_v12 = vld [vmem:[#allocation7 + $0x264] ss:$16 sps:$4 sm:$0xff]  }
 0x425   :  { %5500 = vmatprep.subr.bf16.mxu1 %v8813_v14  ;;  %v9903_v14 = vld [vmem:[#allocation7 + $0x60] ss:$16 sps:$4 sm:$0xff]  }
 0x427   :  { %5458 = vmatpush2.bf16.msra.mxu0 %v8684_v18  ;;  %v9917_v18 = vld [vmem:[#allocation7 + $0x24] ss:$16 sps:$4 sm:$0xff]  }
 0x428   :  { %5501 = vmatpush2.bf16.msra.mxu1 %v8812_v13  ;;  %5459 = vmatprep.subr.bf16.mxu0 %v8677_v20  ;;  %v9936_v13 = vld [vmem:[#allocation7 + $0x240] ss:$16 sps:$4 sm:$0xff]   ;;  %v9944_v20 = vld [vmem:[#allocation7 + $0x224] ss:$16 sps:$4 sm:$0xff]  }
 0x429   :  { %5502 = vmatprep.subr.bf16.mxu1 %v8805_v10  ;;  %v9915_v10 = vld [vmem:[#allocation7 + $0x20] ss:$16 sps:$4 sm:$0xff]  }
 0x42b   :  { %5460 = vmatpush2.bf16.msra.mxu0 %v8676_v38  ;;  %v9929_v38 = vld [vmem:[#allocation7 + $0x1e4] ss:$16 sps:$4 sm:$0xff]  }
 0x42c   :  { %5503 = vmatpush2.bf16.msra.mxu1 %v8804_v37  ;;  %5461 = vmatprep.subr.bf16.mxu0 %v8669_v24  ;;  %v9948_v37 = vld [vmem:[#allocation7 + $0x200] ss:$16 sps:$4 sm:$0xff]   ;;  %v9956_v24 = vld [vmem:[#allocation7 + $0x3e4] ss:$16 sps:$4 sm:$0xff]  }
 0x42d   :  { %5504 = vmatprep.subr.bf16.mxu1 %v8797_v31  ;;  %v9927_v31 = vld [vmem:[#allocation7 + $0x1e0] ss:$16 sps:$4 sm:$0xff]  }
 0x42f   :  { %5462 = vmatpush2.bf16.msra.mxu0 %v8668_v44  ;;  %v9941_v44 = vld [vmem:[#allocation7 + $0x1a4] ss:$16 sps:$4 sm:$0xff]  }
 0x430   :  { %5505 = vmatpush2.bf16.msra.mxu1 %v8796_v45  ;;  %5463 = vmatprep.subr.bf16.mxu0 %v8661_v46  ;;  %v9960_v45 = vld [vmem:[#allocation7 + $0x3c0] ss:$16 sps:$4 sm:$0xff]   ;;  %v9968_v46 = vld [vmem:[#allocation7 + $0x3a4] ss:$16 sps:$4 sm:$0xff]  }
 0x431   :  { %5506 = vmatprep.subr.bf16.mxu1 %v8789_v28  ;;  %v9939_v28 = vld [vmem:[#allocation7 + $0x1a0] ss:$16 sps:$4 sm:$0xff]  }
 0x433   :  { %5464 = vmatpush2.bf16.msra.mxu0 %v8660_v48  ;;  %v9947_v48 = vld [vmem:[#allocation7 + $0x184] ss:$16 sps:$4 sm:$0xff]  }
 0x434   :  { %5507 = vmatpush2.bf16.msra.mxu1 %v8788_v49  ;;  %7095 = vmatprep.subr.bf16.mxu0 %v9893_v50  ;;  %v9966_v49 = vld [vmem:[#allocation7 + $0x3a0] ss:$16 sps:$4 sm:$0xff]   ;;  %v9974_v50 = vld [vmem:[#allocation7 + $0x384] ss:$16 sps:$4 sm:$0xff]  }
 0x435   :  { %7138 = vmatprep.subr.bf16.mxu1 %v9908_v51  ;;  %v9945_v51 = vld [vmem:[#allocation7 + $0x180] ss:$16 sps:$4 sm:$0xff]  }
 0x436   :  { %5466 = vmatmul.mubr.bf16.vlgmr.msra.gmra.mxu0 %v10820_v35  ;;  %v10843_v47 = vpop.f32.mrf.mxu0  ;;  %v10845_v33 = vpop.f32.mrf.mxu1 }
 0x437   :  { %5509 = vmatmul.mubr.bf16.vlgmr.msra.gmra.mxu1 %v10822_v36  ;;  %7096 = vmatpush1.bf16.msra.mxu0 %v9891_v52  ;;  %v9902_v36 = vld [vmem:[#allocation7 + $0x84] ss:$16 sps:$4 sm:$0xff]  }
 0x438   :  { %v5211_v60 = vpop.f32.mrf.mxu0  ;;  %v5254_v61 = vpop.f32.mrf.mxu1  ;;  %7097 = vmatprep.subr.bf16.mxu0 %v9896_v54  ;;  %7139 = vmatpush1.bf16.msra.mxu1 %v9906_v55  ;;  %v9953_v52 = vld [vmem:[#allocation7 + $0x164] ss:$16 sps:$4 sm:$0xff]   ;;  %v9972_v54 = vld [vmem:[#allocation7 + $0x380] ss:$16 sps:$4 sm:$0xff]  }
 0x439   :  { %v5212_v63 = vadd.f32 %v5211_v60, %v3870_v29  ;;  %7140 = vmatprep.subr.bf16.mxu1 %v9914_v30  ;;  %v9977_v55 = vld [vmem:[#allocation7 + $0x364] ss:$16 sps:$4 sm:$0xff]   ;;  %v9975_v30 = vld [vmem:[#allocation7 + $0x360] ss:$16 sps:$4 sm:$0xff]  }
 0x43a   :  { %v10848_v3 = vpop.f32.mrf.mxu0  ;;  %v10850_v35 = vpop.f32.mrf.mxu1  ;;  %v10388_v60 = vld [vmem:[#allocation12] sm:$0xff] }
 0x43b   :  { %7098 = vmatpush1.bf16.msra.mxu0 %v9894_v59  ;;  %v5255_v8 = vadd.f32 %v5254_v61, %v5212_v63  ;;  %v9980_v59 = vld [vmem:[#allocation7 + $0x344] ss:$16 sps:$4 sm:$0xff]   ;;  %v3866_v61 = vrot.slane %v10388_v60, %v10839_v53 }
 0x43c   :  { %v5215_v1 = vpop.f32.mrf.mxu0  ;;  %7099 = vmatprep.subr.bf16.mxu0 %v9899_v62  ;;  %7141 = vmatpush1.bf16.msra.mxu1 %v9912_v0  ;;  %v5258_v56 = vpop.f32.mrf.mxu1  ;;  %v9957_v62 = vld [vmem:[#allocation7 + $0x140] ss:$16 sps:$4 sm:$0xff]   ;;  %v9965_v63 = vld [vmem:[#allocation7 + $0x124] ss:$16 sps:$4 sm:$0xff]  }
 0x43d   :  { %v5216_v23 = vadd.f32 %v5215_v1, %v3870_v29  ;;  %7142 = vmatprep.subr.bf16.mxu1 %v9920_v2  ;;  %v5520_v41 = vmax.f32 %v5255_v8, 0.0  ;;  %v9959_v29 = vld [vmem:[#allocation7 + $0x144] ss:$16 sps:$4 sm:$0xff]   ;;  %v5214_v0 = vadd.f32 %v10848_v3, %v3866_v61  ;;  %v9978_v2 = vld [vmem:[#allocation7 + $0x340] ss:$16 sps:$4 sm:$0xff]   ;;  %v5210_v1 = vadd.f32 %v10843_v47, %v3866_v61 }
 0x43e   :  { %v9971_v8 = vld [vmem:[#allocation7 + $0x104] ss:$16 sps:$4 sm:$0xff]  }
 0x43f   :  { %v5259_v57 = vadd.f32 %v5258_v56, %v5216_v23  ;;  %7100 = vmatpush1.bf16.msra.mxu0 %v9897_v4  ;;  %v9983_v4 = vld [vmem:[#allocation7 + $0x324] ss:$16 sps:$4 sm:$0xff]   ;;  %v9981_v23 = vld [vmem:[#allocation7 + $0x320] ss:$16 sps:$4 sm:$0xff]   ;;  %v5253_v3 = vadd.f32 %v10845_v33, %v5210_v1 }
 0x440   :  { %7101 = vmatprep.subr.bf16.mxu0 %v9902_v36  ;;  %7143 = vmatpush1.bf16.msra.mxu1 %v9918_v6  ;;  %v9963_v36 = vld [vmem:[#allocation7 + $0x120] ss:$16 sps:$4 sm:$0xff]   ;;  %v5257_v6 = vadd.f32 %v10850_v35, %v5214_v0  ;;  %v10037_v47 = vld [vmem:[#allocation7 + $0x6e4] ss:$16 sps:$4 sm:$0xff]  }
 0x441   :  { %v5528_v58 = vmax.f32 %v5259_v57, 0.0  ;;  %7144 = vmatprep.subr.bf16.mxu1 %v9926_v5  ;;  %v9986_v5 = vld [vmem:[#allocation7 + $0x304] ss:$16 sps:$4 sm:$0xff]   ;;  %v9969_v56 = vld [vmem:[#allocation7 + $0x100] ss:$16 sps:$4 sm:$0xff]  }
 0x442   :  { %v5527_v57 = vmax.f32 %v5257_v6, 0.0  ;;  %v9987_v35 = vld [vmem:[#allocation7 + $0x4e0] ss:$16 sps:$4 sm:$0xff]   ;;  %v10007_v60 = vld [vmem:[#allocation7 + $0x424] ss:$16 sps:$4 sm:$0xff]  }
 0x443   :  { %v10852_v9 = vpack.c.bf16 %v5528_v58, %v5520_v41  ;;  %7102 = vmatpush1.bf16.msra.mxu0 %v9900_v25  ;;  %v9984_v25 = vld [vmem:[#allocation7 + $0x300] ss:$16 sps:$4 sm:$0xff]   ;;  %v9992_v58 = vld [vmem:[#allocation7 + $0x4c4] ss:$16 sps:$4 sm:$0xff]  }
 0x444   :  { %7103 = vmatprep.subr.bf16.mxu0 %v9905_v22  ;;  %7145 = vmatpush1.bf16.msra.mxu1 %v9924_v26  ;;  %v9989_v22 = vld [vmem:[#allocation7 + $0x4e4] ss:$16 sps:$4 sm:$0xff]   ;;  %v5519_v26 = vmax.f32 %v5253_v3, 0.0  ;;  %v10047_v0 = vld [vmem:[#allocation7 + $0x6a0] ss:$16 sps:$4 sm:$0xff]  }
 0x445   :  { %7127 = vmatprep.mubr.bf16.mxu0 %v10852_v9  ;;  %7146 = vmatprep.subr.bf16.mxu1 %v9932_v12  ;;  %v10389_v12 = vld [vmem:[#allocation12 + $0x18] sm:$0xff]  ;;  %v10049_v61 = vld [vmem:[#allocation7 + $0x6a4] ss:$16 sps:$4 sm:$0xff]   ;;  %v10053_v1 = vld [vmem:[#allocation7 + $0x680] ss:$16 sps:$4 sm:$0xff]  }
 0x446   :  { %v10860_v41 = vpack.c.bf16 %v5527_v57, %v5519_v26  ;;  %v3878_v33 = vrot.slane %v10389_v12, %v10839_v53  ;;  %v10061_v6 = vld [vmem:[#allocation7 + $0x664] ss:$16 sps:$4 sm:$0xff]   ;;  %v10065_v57 = vld [vmem:[#allocation7 + $0x640] ss:$16 sps:$4 sm:$0xff]  }
 0x447   :  { %7104 = vmatpush1.bf16.msra.mxu0 %v9903_v14  ;;  %v10390_v14 = vld [vmem:[#allocation12 + $0x10] sm:$0xff] }
 0x448   :  { %7105 = vmatprep.subr.bf16.mxu0 %v9911_v19  ;;  %7147 = vmatpush1.bf16.msra.mxu1 %v9930_v15  ;;  %v3874_v19 = vrot.slane %v10390_v14, %v10839_v53  ;;  %v10067_v3 = vld [vmem:[#allocation7 + $0x644] ss:$16 sps:$4 sm:$0xff]   ;;  %v10071_v26 = vld [vmem:[#allocation7 + $0x620] ss:$16 sps:$4 sm:$0xff]  }
 0x449   :  { %7148 = vmatprep.subr.bf16.mxu1 %v9938_v7  ;;  %v10020_v12 = vld [vmem:[#allocation7 + $0x580] ss:$16 sps:$4 sm:$0xff]   ;;  %v10025_v14 = vld [vmem:[#allocation7 + $0x564] ss:$16 sps:$4 sm:$0xff]  }
 0x44b   :  { %7106 = vmatpush1.bf16.msra.mxu0 %v9909_v16  ;;  %v9990_v16 = vld [vmem:[#allocation7 + $0x4c0] ss:$16 sps:$4 sm:$0xff]  }
 0x44c   :  { %7107 = vmatprep.subr.bf16.mxu0 %v9917_v18  ;;  %7149 = vmatpush1.bf16.msra.mxu1 %v9936_v13 }
 0x44d   :  { %7150 = vmatprep.subr.bf16.mxu1 %v9944_v20  ;;  %v9995_v20 = vld [vmem:[#allocation7 + $0x4a4] ss:$16 sps:$4 sm:$0xff]  }
 0x44f   :  { %7108 = vmatpush1.bf16.msra.mxu0 %v9915_v10 }
 0x450   :  { %7109 = vmatprep.subr.bf16.mxu0 %v9923_v21  ;;  %7151 = vmatpush1.bf16.msra.mxu1 %v9942_v32 }
 0x451   :  { %7152 = vmatprep.subr.bf16.mxu1 %v9950_v17 }
 0x453   :  { %7110 = vmatpush1.bf16.msra.mxu0 %v9921_v34 }
 0x454   :  { %7111 = vmatprep.subr.bf16.mxu0 %v9929_v38  ;;  %7153 = vmatpush1.bf16.msra.mxu1 %v9948_v37  ;;  %v9993_v38 = vld [vmem:[#allocation7 + $0x4a0] ss:$16 sps:$4 sm:$0xff]  }
 0x455   :  { %7154 = vmatprep.subr.bf16.mxu1 %v9956_v24  ;;  %v9998_v24 = vld [vmem:[#allocation7 + $0x484] ss:$16 sps:$4 sm:$0xff]  }
 0x457   :  { %7112 = vmatpush2.bf16.msra.mxu0 %v9927_v31 }
 0x458   :  { %7113 = vmatprep.subr.bf16.mxu0 %v9935_v39  ;;  %7155 = vmatpush2.bf16.msra.mxu1 %v9954_v40 }
 0x459   :  { %7156 = vmatprep.subr.bf16.mxu1 %v9962_v42 }
 0x45b   :  { %7114 = vmatpush2.bf16.msra.mxu0 %v9933_v43 }
 0x45c   :  { %7115 = vmatprep.subr.bf16.mxu0 %v9941_v44  ;;  %7157 = vmatpush2.bf16.msra.mxu1 %v9960_v45  ;;  %v9996_v45 = vld [vmem:[#allocation7 + $0x480] ss:$16 sps:$4 sm:$0xff]  }
 0x45d   :  { %7158 = vmatprep.subr.bf16.mxu1 %v9968_v46 }
 0x45f   :  { %7116 = vmatpush2.bf16.msra.mxu0 %v9939_v28  ;;  %v10001_v28 = vld [vmem:[#allocation7 + $0x464] ss:$16 sps:$4 sm:$0xff]  }
 0x460   :  { %7117 = vmatprep.subr.bf16.mxu0 %v9947_v48  ;;  %7159 = vmatpush2.bf16.msra.mxu1 %v9966_v49 }
 0x461   :  { %7160 = vmatprep.subr.bf16.mxu1 %v9974_v50 }
 0x463   :  { %7118 = vmatpush2.bf16.msra.mxu0 %v9945_v51 }
 0x464   :  { %7119 = vmatprep.subr.bf16.mxu0 %v9953_v52  ;;  %7161 = vmatpush2.bf16.msra.mxu1 %v9972_v54  ;;  %v9999_v52 = vld [vmem:[#allocation7 + $0x460] ss:$16 sps:$4 sm:$0xff]  }
 0x465   :  { %7162 = vmatprep.subr.bf16.mxu1 %v9977_v55  ;;  %v10035_v54 = vld [vmem:[#allocation7 + $0x6e0] ss:$16 sps:$4 sm:$0xff]  }
 0x467   :  { %7120 = vmatpush2.bf16.msra.mxu0 %v9951_v27  ;;  %v10004_v27 = vld [vmem:[#allocation7 + $0x444] ss:$16 sps:$4 sm:$0xff]  }
 0x468   :  { %7121 = vmatprep.subr.bf16.mxu0 %v9959_v29  ;;  %7163 = vmatpush2.bf16.msra.mxu1 %v9975_v30  ;;  %v10043_v29 = vld [vmem:[#allocation7 + $0x6c4] ss:$16 sps:$4 sm:$0xff]   ;;  %v10002_v30 = vld [vmem:[#allocation7 + $0x440] ss:$16 sps:$4 sm:$0xff]  }
 0x469   :  { %7164 = vmatprep.subr.bf16.mxu1 %v9980_v59  ;;  %v10041_v59 = vld [vmem:[#allocation7 + $0x6c0] ss:$16 sps:$4 sm:$0xff]  }
 0x46b   :  { %7122 = vmatpush2.bf16.msra.mxu0 %v9957_v62  ;;  %v10005_v62 = vld [vmem:[#allocation7 + $0x420] ss:$16 sps:$4 sm:$0xff]  }
 0x46c   :  { %7123 = vmatprep.subr.bf16.mxu0 %v9965_v63  ;;  %7165 = vmatpush2.bf16.msra.mxu1 %v9978_v2  ;;  %v10010_v63 = vld [vmem:[#allocation7 + $0x404] ss:$16 sps:$4 sm:$0xff]  }
 0x46d   :  { %7166 = vmatprep.subr.bf16.mxu1 %v9983_v4  ;;  %v10055_v2 = vld [vmem:[#allocation7 + $0x684] ss:$16 sps:$4 sm:$0xff]   ;;  %v10008_v4 = vld [vmem:[#allocation7 + $0x400] ss:$16 sps:$4 sm:$0xff]  }
 0x46f   :  { %7124 = vmatpush2.bf16.msra.mxu0 %v9963_v36  ;;  %v10013_v36 = vld [vmem:[#allocation7 + $0x5e4] ss:$16 sps:$4 sm:$0xff]  }
 0x470   :  { %7125 = vmatprep.subr.bf16.mxu0 %v9971_v8  ;;  %7167 = vmatpush2.bf16.msra.mxu1 %v9981_v23  ;;  %v10011_v8 = vld [vmem:[#allocation7 + $0x5e0] ss:$16 sps:$4 sm:$0xff]  }
 0x471   :  { %7168 = vmatprep.subr.bf16.mxu1 %v9986_v5  ;;  %v10059_v23 = vld [vmem:[#allocation7 + $0x660] ss:$16 sps:$4 sm:$0xff]   ;;  %v10016_v5 = vld [vmem:[#allocation7 + $0x5c4] ss:$16 sps:$4 sm:$0xff]  }
 0x473   :  { %7126 = vmatpush2.bf16.msra.mxu0 %v9969_v56  ;;  %v10014_v56 = vld [vmem:[#allocation7 + $0x5c0] ss:$16 sps:$4 sm:$0xff]  }
 0x474   :  { %7169 = vmatpush2.bf16.msra.mxu1 %v9984_v25  ;;  %7181 = vmatprep.subr.bf16.mxu0 %v9989_v22  ;;  %v10019_v25 = vld [vmem:[#allocation7 + $0x5a4] ss:$16 sps:$4 sm:$0xff]  }
 0x475   :  { %7224 = vmatprep.subr.bf16.mxu1 %v10037_v47  ;;  %v10073_v22 = vld [vmem:[#allocation7 + $0x624] ss:$16 sps:$4 sm:$0xff]   ;;  %v10017_v47 = vld [vmem:[#allocation7 + $0x5a0] ss:$16 sps:$4 sm:$0xff]  }
 0x476   :  { %v5295_v15 = vpop.f32.mrf.mxu0  ;;  %v5338_v7 = vpop.f32.mrf.mxu1  ;;  %7128 = vmatmul.mubr.bf16.vlgmr.msra.gmra.mxu0 %v10860_v41 }
 0x477   :  { %7182 = vmatpush1.bf16.msra.mxu0 %v9987_v35  ;;  %v5296_v21 = vadd.f32 %v5295_v15, %v3874_v19  ;;  %v10022_v35 = vld [vmem:[#allocation7 + $0x584] ss:$16 sps:$4 sm:$0xff]   ;;  %v10023_v15 = vld [vmem:[#allocation7 + $0x560] ss:$16 sps:$4 sm:$0xff]  }
 0x478   :  { %v5297_v18 = vpop.f32.mrf.mxu0  ;;  %v5340_v13 = vpop.f32.mrf.mxu1  ;;  %7183 = vmatprep.subr.bf16.mxu0 %v9992_v58  ;;  %v10079_v58 = vld [vmem:[#allocation7 + $0x604] ss:$16 sps:$4 sm:$0xff]  }
 0x479   :  { %v5298_v10 = vadd.f32 %v5297_v18, %v3878_v33  ;;  %v5339_v42 = vadd.f32 %v5338_v7, %v5296_v21  ;;  %v10083_v7 = vld [vmem:[#allocation7 + $0x7e0] ss:$16 sps:$4 sm:$0xff]   ;;  %v10091_v18 = vld [vmem:[#allocation7 + $0x7c4] ss:$16 sps:$4 sm:$0xff]  }
 0x47a   :  { %v5299_v32 = vpop.f32.mrf.mxu0  ;;  %v5342_v17 = vpop.f32.mrf.mxu1  ;;  %v10097_v21 = vld [vmem:[#allocation7 + $0x7a4] ss:$16 sps:$4 sm:$0xff]  }
 0x47b   :  { %v5300_v34 = vadd.f32 %v5299_v32, %v3874_v19  ;;  %7184 = vmatpush1.bf16.msra.mxu0 %v9990_v16  ;;  %v5341_v31 = vadd.f32 %v5340_v13, %v5298_v10  ;;  %v5521_v50 = vmax.f32 %v5339_v42, 0.0  ;;  %v10085_v19 = vld [vmem:[#allocation7 + $0x7e4] ss:$16 sps:$4 sm:$0xff]   ;;  %v10026_v13 = vld [vmem:[#allocation7 + $0x540] ss:$16 sps:$4 sm:$0xff]  }
 0x47c   :  { %v5301_v37 = vpop.f32.mrf.mxu0  ;;  %7185 = vmatprep.subr.bf16.mxu0 %v9995_v20  ;;  %v5344_v43 = vpop.f32.mrf.mxu1  ;;  %v10028_v16 = vld [vmem:[#allocation7 + $0x544] ss:$16 sps:$4 sm:$0xff]   ;;  %v10089_v20 = vld [vmem:[#allocation7 + $0x7c0] ss:$16 sps:$4 sm:$0xff]  }
 0x47d   :  { %v5343_v39 = vadd.f32 %v5342_v17, %v5300_v34  ;;  %v5302_v40 = vadd.f32 %v5301_v37, %v3878_v33  ;;  %v5522_v48 = vmax.f32 %v5341_v31, 0.0  ;;  %v10077_v33 = vld [vmem:[#allocation7 + $0x600] ss:$16 sps:$4 sm:$0xff]   ;;  %v10031_v10 = vld [vmem:[#allocation7 + $0x524] ss:$16 sps:$4 sm:$0xff]  }
 0x47e   :  { %v10029_v32 = vld [vmem:[#allocation7 + $0x520] ss:$16 sps:$4 sm:$0xff]   ;;  %v10034_v34 = vld [vmem:[#allocation7 + $0x504] ss:$16 sps:$4 sm:$0xff]   ;;  %v10040_v31 = vld [vmem:[#allocation7 + $0xec] ss:$16 sps:$4 sm:$0xff]  }
 0x47f   :  { %v5345_v44 = vadd.f32 %v5344_v43, %v5302_v40  ;;  %7186 = vmatpush1.bf16.msra.mxu0 %v9993_v38  ;;  %v5529_v46 = vmax.f32 %v5343_v39, 0.0  ;;  %v10095_v17 = vld [vmem:[#allocation7 + $0x7a0] ss:$16 sps:$4 sm:$0xff]   ;;  %v10103_v38 = vld [vmem:[#allocation7 + $0x784] ss:$16 sps:$4 sm:$0xff]   ;;  %v128_v40 = vld [vmem:[#allocation12 + $0x28] sm:$0xff] }
 0x480   :  { %7187 = vmatprep.subr.bf16.mxu0 %v9998_v24  ;;  %v10032_v37 = vld [vmem:[#allocation7 + $0x500] ss:$16 sps:$4 sm:$0xff]   ;;  %v10109_v39 = vld [vmem:[#allocation7 + $0x764] ss:$16 sps:$4 sm:$0xff]  }
 0x481   :  { %v5530_v49 = vmax.f32 %v5345_v44, 0.0  ;;  %v10867_v55 = vpack.c.bf16 %v5529_v46, %v5521_v50  ;;  %v10101_v24 = vld [vmem:[#allocation7 + $0x780] ss:$16 sps:$4 sm:$0xff]   ;;  %v10115_v44 = vld [vmem:[#allocation7 + $0x744] ss:$16 sps:$4 sm:$0xff]  }
 0x482   :  { %v127_v42 = vld [vmem:[#allocation12 + $0x20] sm:$0xff] }
 0x483   :  { %v10865_v51 = vpack.c.bf16 %v5530_v49, %v5522_v48  ;;  %7188 = vmatpush1.bf16.msra.mxu0 %v9996_v45  ;;  %v10107_v43 = vld [vmem:[#allocation7 + $0x760] ss:$16 sps:$4 sm:$0xff]   ;;  %v3886_v45 = vrot.slane %v128_v40, %v10839_v53  ;;  %v3882_v46 = vrot.slane %v127_v42, %v10839_v53  ;;  %v10110_v40 = vld [vmem:[#allocation7 + $0x168] ss:$16 sps:$4 sm:$0xff]  }
 0x484   :  { %7189 = vmatprep.subr.bf16.mxu0 %v10001_v28  ;;  %v10113_v49 = vld [vmem:[#allocation7 + $0x740] ss:$16 sps:$4 sm:$0xff]  }
 0x485   :  { %7170 = vmatprep.mubr.bf16.mxu1 %v10865_v51  ;;  %v129_v42 = vld [vmem:[#allocation12 + $0x30] sm:$0xff] }
 0x486   :  { %7171 = vmatmul.mubr.bf16.vlgmr.msra.gmra.mxu1 %v10867_v55 }
 0x487   :  { %7190 = vmatpush1.bf16.msra.mxu0 %v9999_v52  ;;  %7225 = vmatpush1.bf16.msra.mxu1 %v10035_v54  ;;  %v10121_v52 = vld [vmem:[#allocation7 + $0x724] ss:$16 sps:$4 sm:$0xff]  }
 0x488   :  { %7191 = vmatprep.subr.bf16.mxu0 %v10004_v27  ;;  %7226 = vmatprep.subr.bf16.mxu1 %v10043_v29 }
 0x48b   :  { %7192 = vmatpush1.bf16.msra.mxu0 %v10002_v30  ;;  %7227 = vmatpush1.bf16.msra.mxu1 %v10041_v59 }
 0x48c   :  { %7193 = vmatprep.subr.bf16.mxu0 %v10007_v60  ;;  %7228 = vmatprep.subr.bf16.mxu1 %v10049_v61  ;;  %v10119_v61 = vld [vmem:[#allocation7 + $0x720] ss:$16 sps:$4 sm:$0xff]  }
 0x48f   :  { %7194 = vmatpush1.bf16.msra.mxu0 %v10005_v62  ;;  %7229 = vmatpush1.bf16.msra.mxu1 %v10047_v0  ;;  %v10127_v0 = vld [vmem:[#allocation7 + $0x704] ss:$16 sps:$4 sm:$0xff]  }
 0x490   :  { %7195 = vmatprep.subr.bf16.mxu0 %v10010_v63  ;;  %7230 = vmatprep.subr.bf16.mxu1 %v10055_v2 }
 0x493   :  { %7196 = vmatpush1.bf16.msra.mxu0 %v10008_v4  ;;  %7231 = vmatpush1.bf16.msra.mxu1 %v10053_v1 }
 0x494   :  { %7197 = vmatprep.subr.bf16.mxu0 %v10013_v36  ;;  %7232 = vmatprep.subr.bf16.mxu1 %v10061_v6 }
 0x497   :  { %7198 = vmatpush2.bf16.msra.mxu0 %v10011_v8  ;;  %7233 = vmatpush1.bf16.msra.mxu1 %v10059_v23  ;;  %v10125_v8 = vld [vmem:[#allocation7 + $0x700] ss:$16 sps:$4 sm:$0xff]  }
 0x498   :  { %7199 = vmatprep.subr.bf16.mxu0 %v10016_v5  ;;  %7234 = vmatprep.subr.bf16.mxu1 %v10067_v3  ;;  %v10133_v5 = vld [vmem:[#allocation7 + $0x2ec] ss:$16 sps:$4 sm:$0xff]  }
 0x49b   :  { %7200 = vmatpush2.bf16.msra.mxu0 %v10014_v56  ;;  %7235 = vmatpush1.bf16.msra.mxu1 %v10065_v57 }
 0x49c   :  { %7201 = vmatprep.subr.bf16.mxu0 %v10019_v25  ;;  %7236 = vmatprep.subr.bf16.mxu1 %v10073_v22  ;;  %v10038_v22 = vld [vmem:[#allocation7 + $0xe8] ss:$16 sps:$4 sm:$0xff]  }
 0x49f   :  { %7202 = vmatpush2.bf16.msra.mxu0 %v10017_v47  ;;  %7237 = vmatpush1.bf16.msra.mxu1 %v10071_v26  ;;  %v10046_v26 = vld [vmem:[#allocation7 + $0xcc] ss:$16 sps:$4 sm:$0xff]  }
 0x4a0   :  { %7203 = vmatprep.subr.bf16.mxu0 %v10022_v35  ;;  %7238 = vmatprep.subr.bf16.mxu1 %v10079_v58  ;;  %v10044_v35 = vld [vmem:[#allocation7 + $0xc8] ss:$16 sps:$4 sm:$0xff]   ;;  %v10052_v58 = vld [vmem:[#allocation7 + $0xac] ss:$16 sps:$4 sm:$0xff]  }
 0x4a3   :  { %7204 = vmatpush2.bf16.msra.mxu0 %v10020_v12  ;;  %7239 = vmatpush1.bf16.msra.mxu1 %v10077_v33  ;;  %v10050_v12 = vld [vmem:[#allocation7 + $0xa8] ss:$16 sps:$4 sm:$0xff]   ;;  %v10058_v33 = vld [vmem:[#allocation7 + $0x8c] ss:$16 sps:$4 sm:$0xff]  }
 0x4a4   :  { %7205 = vmatprep.subr.bf16.mxu0 %v10025_v14  ;;  %7240 = vmatprep.subr.bf16.mxu1 %v10085_v19  ;;  %v10056_v14 = vld [vmem:[#allocation7 + $0x88] ss:$16 sps:$4 sm:$0xff]   ;;  %v10064_v19 = vld [vmem:[#allocation7 + $0x6c] ss:$16 sps:$4 sm:$0xff]  }
 0x4a7   :  { %7206 = vmatpush2.bf16.msra.mxu0 %v10023_v15  ;;  %7241 = vmatpush2.bf16.msra.mxu1 %v10083_v7  ;;  %v10062_v15 = vld [vmem:[#allocation7 + $0x68] ss:$16 sps:$4 sm:$0xff]   ;;  %v10070_v7 = vld [vmem:[#allocation7 + $0x4c] ss:$16 sps:$4 sm:$0xff]  }
 0x4a8   :  { %7207 = vmatprep.subr.bf16.mxu0 %v10028_v16  ;;  %7242 = vmatprep.subr.bf16.mxu1 %v10091_v18  ;;  %v10068_v16 = vld [vmem:[#allocation7 + $0x48] ss:$16 sps:$4 sm:$0xff]   ;;  %v10076_v18 = vld [vmem:[#allocation7 + $0x2c] ss:$16 sps:$4 sm:$0xff]  }
 0x4ab   :  { %7208 = vmatpush2.bf16.msra.mxu0 %v10026_v13  ;;  %7243 = vmatpush2.bf16.msra.mxu1 %v10089_v20  ;;  %v10082_v13 = vld [vmem:[#allocation7 + $0xc] ss:$16 sps:$4 sm:$0xff]   ;;  %v10080_v20 = vld [vmem:[#allocation7 + $0x8] ss:$16 sps:$4 sm:$0xff]  }
 0x4ac   :  { %7209 = vmatprep.subr.bf16.mxu0 %v10031_v10  ;;  %7244 = vmatprep.subr.bf16.mxu1 %v10097_v21  ;;  %v10088_v10 = vld [vmem:[#allocation7 + $0x1ec] ss:$16 sps:$4 sm:$0xff]   ;;  %v10086_v21 = vld [vmem:[#allocation7 + $0x1e8] ss:$16 sps:$4 sm:$0xff]  }
 0x4af   :  { %7210 = vmatpush2.bf16.msra.mxu0 %v10029_v32  ;;  %7245 = vmatpush2.bf16.msra.mxu1 %v10095_v17  ;;  %v10094_v32 = vld [vmem:[#allocation7 + $0x1cc] ss:$16 sps:$4 sm:$0xff]   ;;  %v10092_v17 = vld [vmem:[#allocation7 + $0x1c8] ss:$16 sps:$4 sm:$0xff]  }
 0x4b0   :  { %7211 = vmatprep.subr.bf16.mxu0 %v10034_v34  ;;  %7246 = vmatprep.subr.bf16.mxu1 %v10103_v38  ;;  %v10100_v34 = vld [vmem:[#allocation7 + $0x1ac] ss:$16 sps:$4 sm:$0xff]   ;;  %v10098_v38 = vld [vmem:[#allocation7 + $0x1a8] ss:$16 sps:$4 sm:$0xff]  }
 0x4b3   :  { %7212 = vmatpush2.bf16.msra.mxu0 %v10032_v37  ;;  %7247 = vmatpush2.bf16.msra.mxu1 %v10101_v24  ;;  %v10106_v37 = vld [vmem:[#allocation7 + $0x18c] ss:$16 sps:$4 sm:$0xff]   ;;  %v10104_v24 = vld [vmem:[#allocation7 + $0x188] ss:$16 sps:$4 sm:$0xff]  }
 0x4b4   :  { %7267 = vmatprep.subr.bf16.mxu0 %v10040_v31  ;;  %7248 = vmatprep.subr.bf16.mxu1 %v10109_v39  ;;  %v10112_v31 = vld [vmem:[#allocation7 + $0x16c] ss:$16 sps:$4 sm:$0xff]  }
 0x4b5   :  { %v130_v39 = vld [vmem:[#allocation12 + $0x38] sm:$0xff] }
 0x4b6   :  { %v5381_v28 = vpop.f32.mrf.mxu0 }
 0x4b7   :  { %v5424_v48 = vpop.f32.mrf.mxu1  ;;  %7249 = vmatpush2.bf16.msra.mxu1 %v10107_v43  ;;  %v5382_v29 = vadd.f32 %v5381_v28, %v3882_v46  ;;  %v10118_v43 = vld [vmem:[#allocation7 + $0x14c] ss:$16 sps:$4 sm:$0xff]  }
 0x4b8   :  { %v5383_v50 = vpop.f32.mrf.mxu0  ;;  %7250 = vmatprep.subr.bf16.mxu1 %v10115_v44  ;;  %v3894_v44 = vrot.slane %v130_v39, %v10839_v53  ;;  %v10178_v39 = vld [vmem:[#allocation7 + $0x40c] ss:$16 sps:$4 sm:$0xff]  }
 0x4b9   :  { %v5384_v54 = vadd.f32 %v5383_v50, %v3886_v45  ;;  %v5426_v27 = vpop.f32.mrf.mxu1  ;;  %v5425_v1 = vadd.f32 %v5424_v48, %v5382_v29  ;;  %v10116_v48 = vld [vmem:[#allocation7 + $0x148] ss:$16 sps:$4 sm:$0xff]   ;;  %v10124_v50 = vld [vmem:[#allocation7 + $0x12c] ss:$16 sps:$4 sm:$0xff]  }
 0x4ba   :  { %v5385_v30 = vpop.f32.mrf.mxu0 }
 0x4bb   :  { %v5386_v59 = vadd.f32 %v5385_v30, %v3882_v46  ;;  %v5428_v60 = vpop.f32.mrf.mxu1  ;;  %7251 = vmatpush2.bf16.msra.mxu1 %v10113_v49  ;;  %v5427_v63 = vadd.f32 %v5426_v27, %v5384_v54  ;;  %v5523_v57 = vmax.f32 %v5425_v1, 0.0 }
 0x4bc   :  { %v5387_v62 = vpop.f32.mrf.mxu0  ;;  %7252 = vmatprep.subr.bf16.mxu1 %v10121_v52 }
 0x4bd   :  { %v5429_v2 = vadd.f32 %v5428_v60, %v5386_v59  ;;  %v5388_v4 = vadd.f32 %v5387_v62, %v3886_v45  ;;  %v5430_v36 = vpop.f32.mrf.mxu1  ;;  %v5524_v3 = vmax.f32 %v5427_v63, 0.0  ;;  %v3890_v45 = vrot.slane %v129_v42, %v10839_v53  ;;  %v10122_v60 = vld [vmem:[#allocation7 + $0x128] ss:$16 sps:$4 sm:$0xff]   ;;  %v10130_v62 = vld [vmem:[#allocation7 + $0x10c] ss:$16 sps:$4 sm:$0xff]  }
 0x4be   :  { %v10176_v42 = vld [vmem:[#allocation7 + $0x408] ss:$16 sps:$4 sm:$0xff]  }
 0x4bf   :  { %v5431_v6 = vadd.f32 %v5430_v36, %v5388_v4  ;;  %7253 = vmatpush2.bf16.msra.mxu1 %v10119_v61  ;;  %v5531_v23 = vmax.f32 %v5429_v2, 0.0  ;;  %v10128_v36 = vld [vmem:[#allocation7 + $0x108] ss:$16 sps:$4 sm:$0xff]  }
 0x4c0   :  { %7254 = vmatprep.subr.bf16.mxu1 %v10127_v0 }
 0x4c1   :  { %v5532_v56 = vmax.f32 %v5431_v6, 0.0  ;;  %v10875_v47 = vpack.c.bf16 %v5531_v23, %v5523_v57  ;;  %v10131_v57 = vld [vmem:[#allocation7 + $0x2e8] ss:$16 sps:$4 sm:$0xff]  }
 0x4c3   :  { %v10873_v25 = vpack.c.bf16 %v5532_v56, %v5524_v3  ;;  %7255 = vmatpush2.bf16.msra.mxu1 %v10125_v8  ;;  %v10136_v8 = vld [vmem:[#allocation7 + $0x4ec] ss:$16 sps:$4 sm:$0xff]  }
 0x4c4   :  { %7310 = vmatprep.subr.bf16.mxu1 %v10133_v5 }
 0x4c5   :  { %7213 = vmatprep.mubr.bf16.mxu0 %v10873_v25 }
 0x4c6   :  { %7214 = vmatmul.mubr.bf16.vlgmr.msra.gmra.mxu0 %v10875_v47 }
 0x4c7   :  { %7268 = vmatpush1.bf16.msra.mxu0 %v10038_v22  ;;  %7299 = vmatprep.mubr.bf16.mxu0 %v10852_v9  ;;  %v10074_v9 = vld [vmem:[#allocation7 + $0x28] ss:$16 sps:$4 sm:$0xff]  }
 0x4c8   :  { %7269 = vmatprep.subr.bf16.mxu0 %v10046_v26  ;;  %v10134_v22 = vld [vmem:[#allocation7 + $0x4e8] ss:$16 sps:$4 sm:$0xff]  }
 0x4cb   :  { %7270 = vmatpush1.bf16.msra.mxu0 %v10044_v35  ;;  %v10139_v35 = vld [vmem:[#allocation7 + $0x2cc] ss:$16 sps:$4 sm:$0xff]  }
 0x4cc   :  { %7271 = vmatprep.subr.bf16.mxu0 %v10052_v58  ;;  %v10142_v58 = vld [vmem:[#allocation7 + $0x4cc] ss:$16 sps:$4 sm:$0xff]  }
 0x4cf   :  { %7272 = vmatpush1.bf16.msra.mxu0 %v10050_v12  ;;  %v10137_v12 = vld [vmem:[#allocation7 + $0x2c8] ss:$16 sps:$4 sm:$0xff]  }
 0x4d0   :  { %7273 = vmatprep.subr.bf16.mxu0 %v10058_v33  ;;  %v10140_v33 = vld [vmem:[#allocation7 + $0x4c8] ss:$16 sps:$4 sm:$0xff]  }
 0x4d3   :  { %7274 = vmatpush1.bf16.msra.mxu0 %v10056_v14  ;;  %v10145_v14 = vld [vmem:[#allocation7 + $0x2ac] ss:$16 sps:$4 sm:$0xff]  }
 0x4d4   :  { %7275 = vmatprep.subr.bf16.mxu0 %v10064_v19  ;;  %v10148_v19 = vld [vmem:[#allocation7 + $0x4ac] ss:$16 sps:$4 sm:$0xff]  }
 0x4d7   :  { %7276 = vmatpush1.bf16.msra.mxu0 %v10062_v15  ;;  %v10143_v15 = vld [vmem:[#allocation7 + $0x2a8] ss:$16 sps:$4 sm:$0xff]  }
 0x4d8   :  { %7277 = vmatprep.subr.bf16.mxu0 %v10070_v7  ;;  %v10146_v7 = vld [vmem:[#allocation7 + $0x4a8] ss:$16 sps:$4 sm:$0xff]  }
 0x4db   :  { %7278 = vmatpush1.bf16.msra.mxu0 %v10068_v16  ;;  %v10154_v16 = vld [vmem:[#allocation7 + $0x48c] ss:$16 sps:$4 sm:$0xff]  }
 0x4dc   :  { %7279 = vmatprep.subr.bf16.mxu0 %v10076_v18  ;;  %v10149_v18 = vld [vmem:[#allocation7 + $0x288] ss:$16 sps:$4 sm:$0xff]  }
 0x4df   :  { %7280 = vmatpush1.bf16.msra.mxu0 %v10074_v9  ;;  %v10152_v9 = vld [vmem:[#allocation7 + $0x488] ss:$16 sps:$4 sm:$0xff]  }
 0x4e0   :  { %7281 = vmatprep.subr.bf16.mxu0 %v10082_v13  ;;  %v10155_v13 = vld [vmem:[#allocation7 + $0x268] ss:$16 sps:$4 sm:$0xff]  }
 0x4e3   :  { %7282 = vmatpush1.bf16.msra.mxu0 %v10080_v20  ;;  %v10158_v20 = vld [vmem:[#allocation7 + $0x468] ss:$16 sps:$4 sm:$0xff]  }
 0x4e4   :  { %7283 = vmatprep.subr.bf16.mxu0 %v10088_v10  ;;  %v10163_v10 = vld [vmem:[#allocation7 + $0x24c] ss:$16 sps:$4 sm:$0xff]  }
 0x4e7   :  { %7284 = vmatpush2.bf16.msra.mxu0 %v10086_v21  ;;  %v10166_v21 = vld [vmem:[#allocation7 + $0x44c] ss:$16 sps:$4 sm:$0xff]  }
 0x4e8   :  { %7285 = vmatprep.subr.bf16.mxu0 %v10094_v32  ;;  %v10161_v32 = vld [vmem:[#allocation7 + $0x248] ss:$16 sps:$4 sm:$0xff]  }
 0x4eb   :  { %7286 = vmatpush2.bf16.msra.mxu0 %v10092_v17  ;;  %v10164_v17 = vld [vmem:[#allocation7 + $0x448] ss:$16 sps:$4 sm:$0xff]  }
 0x4ec   :  { %7287 = vmatprep.subr.bf16.mxu0 %v10100_v34  ;;  %v10169_v34 = vld [vmem:[#allocation7 + $0x22c] ss:$16 sps:$4 sm:$0xff]  }
 0x4ef   :  { %7288 = vmatpush2.bf16.msra.mxu0 %v10098_v38  ;;  %v10172_v38 = vld [vmem:[#allocation7 + $0x42c] ss:$16 sps:$4 sm:$0xff]  }
 0x4f0   :  { %7289 = vmatprep.subr.bf16.mxu0 %v10106_v37  ;;  %v10167_v37 = vld [vmem:[#allocation7 + $0x228] ss:$16 sps:$4 sm:$0xff]  }
 0x4f3   :  { %7290 = vmatpush2.bf16.msra.mxu0 %v10104_v24  ;;  %v10170_v24 = vld [vmem:[#allocation7 + $0x428] ss:$16 sps:$4 sm:$0xff]  }
 0x4f4   :  { %7291 = vmatprep.subr.bf16.mxu0 %v10112_v31  ;;  %v10175_v31 = vld [vmem:[#allocation7 + $0x20c] ss:$16 sps:$4 sm:$0xff]  }
 0x4f6   :  { %v5467_v46 = vpop.f32.mrf.mxu0 }
 0x4f7   :  { %v5510_v28 = vpop.f32.mrf.mxu1  ;;  %7292 = vmatpush2.bf16.msra.mxu0 %v10110_v40  ;;  %v5468_v27 = vadd.f32 %v5467_v46, %v3890_v45  ;;  %v10173_v40 = vld [vmem:[#allocation7 + $0x208] ss:$16 sps:$4 sm:$0xff]  }
 0x4f8   :  { %v5469_v49 = vpop.f32.mrf.mxu0  ;;  %7293 = vmatprep.subr.bf16.mxu0 %v10118_v43  ;;  %v10181_v43 = vld [vmem:[#allocation7 + $0x3ec] ss:$16 sps:$4 sm:$0xff]   ;;  %v10182_v46 = vld [vmem:[#allocation7 + $0x5e8] ss:$16 sps:$4 sm:$0xff]  }
 0x4f9   :  { %v5470_v52 = vadd.f32 %v5469_v49, %v3894_v44  ;;  %v5512_v54 = vpop.f32.mrf.mxu1  ;;  %v5511_v2 = vadd.f32 %v5510_v28, %v5468_v27  ;;  %v10187_v28 = vld [vmem:[#allocation7 + $0x3cc] ss:$16 sps:$4 sm:$0xff]   ;;  %v10185_v49 = vld [vmem:[#allocation7 + $0x3c8] ss:$16 sps:$4 sm:$0xff]  }
 0x4fa   :  { %v5471_v29 = vpop.f32.mrf.mxu0  ;;  %v10191_v27 = vld [vmem:[#allocation7 + $0x3a8] ss:$16 sps:$4 sm:$0xff]  }
 0x4fb   :  { %v5472_v30 = vadd.f32 %v5471_v29, %v3890_v45  ;;  %v5514_v59 = vpop.f32.mrf.mxu1  ;;  %7294 = vmatpush2.bf16.msra.mxu0 %v10116_v48  ;;  %v5513_v0 = vadd.f32 %v5512_v54, %v5470_v52  ;;  %v5525_v3 = vmax.f32 %v5511_v2, 0.0  ;;  %v10179_v45 = vld [vmem:[#allocation7 + $0x3e8] ss:$16 sps:$4 sm:$0xff]   ;;  %v10190_v48 = vld [vmem:[#allocation7 + $0x5cc] ss:$16 sps:$4 sm:$0xff]  }
 0x4fc   :  { %v5473_v61 = vpop.f32.mrf.mxu0  ;;  %7295 = vmatprep.subr.bf16.mxu0 %v10124_v50  ;;  %v10188_v50 = vld [vmem:[#allocation7 + $0x5c8] ss:$16 sps:$4 sm:$0xff]   ;;  %v10193_v52 = vld [vmem:[#allocation7 + $0x3ac] ss:$16 sps:$4 sm:$0xff]  }
 0x4fd   :  { %v5515_v53 = vadd.f32 %v5514_v59, %v5472_v30  ;;  %v5474_v63 = vadd.f32 %v5473_v61, %v3894_v44  ;;  %v5516_v4 = vpop.f32.mrf.mxu1  ;;  %v5526_v23 = vmax.f32 %v5513_v0, 0.0  ;;  %v10184_v44 = vld [vmem:[#allocation7 + $0x5ec] ss:$16 sps:$4 sm:$0xff]   ;;  %v10194_v29 = vld [vmem:[#allocation7 + $0x5a8] ss:$16 sps:$4 sm:$0xff]  }
 0x4fe   :  { %v10196_v54 = vld [vmem:[#allocation7 + $0x5ac] ss:$16 sps:$4 sm:$0xff]   ;;  %v10200_v61 = vld [vmem:[#allocation7 + $0x588] ss:$16 sps:$4 sm:$0xff]  }
 0x4ff   :  { %v5517_v1 = vadd.f32 %v5516_v4, %v5474_v63  ;;  %7296 = vmatpush2.bf16.msra.mxu0 %v10122_v60  ;;  %v5533_v6 = vmax.f32 %v5515_v53, 0.0  ;;  %v10199_v30 = vld [vmem:[#allocation7 + $0x38c] ss:$16 sps:$4 sm:$0xff]   ;;  %v10197_v60 = vld [vmem:[#allocation7 + $0x388] ss:$16 sps:$4 sm:$0xff]  }
 0x500   :  { %7297 = vmatprep.subr.bf16.mxu0 %v10130_v62  ;;  %v10202_v59 = vld [vmem:[#allocation7 + $0x58c] ss:$16 sps:$4 sm:$0xff]   ;;  %v10203_v53 = vld [vmem:[#allocation7 + $0x368] ss:$16 sps:$4 sm:$0xff]  }
 0x501   :  { %v5534_v5 = vmax.f32 %v5517_v1, 0.0  ;;  %v10884_v26 = vpack.c.bf16 %v5533_v6, %v5525_v3  ;;  %v10205_v62 = vld [vmem:[#allocation7 + $0x36c] ss:$16 sps:$4 sm:$0xff]   ;;  %v10206_v63 = vld [vmem:[#allocation7 + $0x568] ss:$16 sps:$4 sm:$0xff]  }
 0x502   :  { %v10208_v0 = vld [vmem:[#allocation7 + $0x56c] ss:$16 sps:$4 sm:$0xff]   ;;  %v10209_v1 = vld [vmem:[#allocation7 + $0x348] ss:$16 sps:$4 sm:$0xff]  }
 0x503   :  { %v10882_v56 = vpack.c.bf16 %v5534_v5, %v5526_v23  ;;  %7298 = vmatpush2.bf16.msra.mxu0 %v10128_v36  ;;  %v10211_v2 = vld [vmem:[#allocation7 + $0x34c] ss:$16 sps:$4 sm:$0xff]   ;;  %v10212_v36 = vld [vmem:[#allocation7 + $0x548] ss:$16 sps:$4 sm:$0xff]  }
 0x504   :  { %7353 = vmatprep.subr.bf16.mxu0 %v10136_v8  ;;  %v10214_v4 = vld [vmem:[#allocation7 + $0x54c] ss:$16 sps:$4 sm:$0xff]   ;;  %v10215_v23 = vld [vmem:[#allocation7 + $0x328] ss:$16 sps:$4 sm:$0xff]  }
 0x505   :  { %7256 = vmatprep.mubr.bf16.mxu1 %v10882_v56  ;;  %v10217_v6 = vld [vmem:[#allocation7 + $0x32c] ss:$16 sps:$4 sm:$0xff]   ;;  %v10218_v5 = vld [vmem:[#allocation7 + $0x528] ss:$16 sps:$4 sm:$0xff]  }
 0x506   :  { %7300 = vmatmul.mubr.bf16.vlgmr.msra.gmra.mxu0 %v10860_v41  ;;  %7257 = vmatmul.mubr.bf16.vlgmr.msra.gmra.mxu1 %v10884_v26  ;;  %v10151_v41 = vld [vmem:[#allocation7 + $0x28c] ss:$16 sps:$4 sm:$0xff]  }
 0x507   :  { %7311 = vmatpush1.bf16.msra.mxu1 %v10131_v57  ;;  %7354 = vmatpush1.bf16.msra.mxu0 %v10134_v22  ;;  %v10220_v8 = vld [vmem:[#allocation7 + $0x52c] ss:$16 sps:$4 sm:$0xff]   ;;  %v10221_v22 = vld [vmem:[#allocation7 + $0x308] ss:$16 sps:$4 sm:$0xff]  }
 0x508   :  { %7385 = vmatprep.mubr.bf16.mxu0 %v10873_v25  ;;  %7342 = vmatprep.mubr.bf16.mxu1 %v10865_v51  ;;  %v10157_v25 = vld [vmem:[#allocation7 + $0x26c] ss:$16 sps:$4 sm:$0xff]  }
 0x509   :  { %7312 = vmatprep.subr.bf16.mxu1 %v10139_v35  ;;  %7355 = vmatprep.subr.bf16.mxu0 %v10142_v58  ;;  %v10160_v51 = vld [vmem:[#allocation7 + $0x46c] ss:$16 sps:$4 sm:$0xff]   ;;  %v10224_v35 = vld [vmem:[#allocation7 + $0x508] ss:$16 sps:$4 sm:$0xff]  }
 0x50a   :  { %v10223_v3 = vld [vmem:[#allocation7 + $0x30c] ss:$16 sps:$4 sm:$0xff]  }
 0x50b   :  { %7313 = vmatpush1.bf16.msra.mxu1 %v10137_v12  ;;  %7356 = vmatpush1.bf16.msra.mxu0 %v10140_v33  ;;  %v10226_v57 = vld [vmem:[#allocation7 + $0x50c] ss:$16 sps:$4 sm:$0xff]   ;;  %v10227_v33 = vld [vmem:[#allocation7 + $0x6e8] ss:$16 sps:$4 sm:$0xff]  }
 0x50c   :  { %7314 = vmatprep.subr.bf16.mxu1 %v10145_v14  ;;  %7357 = vmatprep.subr.bf16.mxu0 %v10148_v19  ;;  %v10229_v58 = vld [vmem:[#allocation7 + $0x6ec] ss:$16 sps:$4 sm:$0xff]   ;;  %v10275_v19 = vld [vmem:[#allocation9 + $0x70] ss:$8 sps:$4 sm:$0xff]  }
 0x50d   :  { %v10277_v12 = vld [vmem:[#allocation9 + $0x74] ss:$8 sps:$4 sm:$0xff]  }
 0x50e   :  { %v10232_v14 = vld [vmem:[#allocation7 + $0x6cc] ss:$16 sps:$4 sm:$0xff]  }
 0x50f   :  { %7315 = vmatpush1.bf16.msra.mxu1 %v10143_v15  ;;  %7358 = vmatpush1.bf16.msra.mxu0 %v10146_v7  ;;  %v10280_v15 = vld [vmem:[#allocation9 + $0x64] ss:$8 sps:$4 sm:$0xff]   ;;  %v10230_v7 = vld [vmem:[#allocation7 + $0x6c8] ss:$16 sps:$4 sm:$0xff]  }
 0x510   :  { %7316 = vmatprep.subr.bf16.mxu1 %v10151_v41  ;;  %7359 = vmatprep.subr.bf16.mxu0 %v10154_v16  ;;  %v10235_v41 = vld [vmem:[#allocation7 + $0x6ac] ss:$16 sps:$4 sm:$0xff]   ;;  %v10278_v16 = vld [vmem:[#allocation9 + $0x60] ss:$8 sps:$4 sm:$0xff]  }
 0x513   :  { %7317 = vmatpush1.bf16.msra.mxu1 %v10149_v18  ;;  %7360 = vmatpush1.bf16.msra.mxu0 %v10152_v9  ;;  %v10283_v18 = vld [vmem:[#allocation9 + $0x54] ss:$8 sps:$4 sm:$0xff]   ;;  %v10233_v9 = vld [vmem:[#allocation7 + $0x6a8] ss:$16 sps:$4 sm:$0xff]  }
 0x514   :  { %7318 = vmatprep.subr.bf16.mxu1 %v10157_v25  ;;  %7361 = vmatprep.subr.bf16.mxu0 %v10160_v51  ;;  %v10238_v25 = vld [vmem:[#allocation7 + $0x68c] ss:$16 sps:$4 sm:$0xff]   ;;  %v10281_v51 = vld [vmem:[#allocation9 + $0x50] ss:$8 sps:$4 sm:$0xff]  }
 0x517   :  { %7319 = vmatpush1.bf16.msra.mxu1 %v10155_v13  ;;  %7362 = vmatpush1.bf16.msra.mxu0 %v10158_v20  ;;  %v10241_v13 = vld [vmem:[#allocation7 + $0x66c] ss:$16 sps:$4 sm:$0xff]  }
 0x518   :  { %7320 = vmatprep.subr.bf16.mxu1 %v10163_v10  ;;  %7363 = vmatprep.subr.bf16.mxu0 %v10166_v21  ;;  %v10289_v20 = vld [vmem:[#allocation9 + $0x34] ss:$8 sps:$4 sm:$0xff]   ;;  %v10239_v10 = vld [vmem:[#allocation7 + $0x668] ss:$16 sps:$4 sm:$0xff]  }
 0x519   :  { %v10244_v21 = vld [vmem:[#allocation7 + $0x64c] ss:$16 sps:$4 sm:$0xff]  }
 0x51b   :  { %7321 = vmatpush1.bf16.msra.mxu1 %v10161_v32  ;;  %7364 = vmatpush1.bf16.msra.mxu0 %v10164_v17  ;;  %v10287_v32 = vld [vmem:[#allocation9 + $0x30] ss:$8 sps:$4 sm:$0xff]   ;;  %v10292_v17 = vld [vmem:[#allocation9 + $0x24] ss:$8 sps:$4 sm:$0xff]  }
 0x51c   :  { %7322 = vmatprep.subr.bf16.mxu1 %v10169_v34  ;;  %7365 = vmatprep.subr.bf16.mxu0 %v10172_v38  ;;  %v10242_v34 = vld [vmem:[#allocation7 + $0x648] ss:$16 sps:$4 sm:$0xff]   ;;  %v10247_v38 = vld [vmem:[#allocation7 + $0x62c] ss:$16 sps:$4 sm:$0xff]  }
 0x51f   :  { %7323 = vmatpush1.bf16.msra.mxu1 %v10167_v37  ;;  %7366 = vmatpush1.bf16.msra.mxu0 %v10170_v24  ;;  %v10290_v37 = vld [vmem:[#allocation9 + $0x20] ss:$8 sps:$4 sm:$0xff]   ;;  %v10295_v24 = vld [vmem:[#allocation9 + $0x14] ss:$8 sps:$4 sm:$0xff]  }
 0x520   :  { %7324 = vmatprep.subr.bf16.mxu1 %v10175_v31  ;;  %7367 = vmatprep.subr.bf16.mxu0 %v10178_v39  ;;  %v10245_v31 = vld [vmem:[#allocation7 + $0x628] ss:$16 sps:$4 sm:$0xff]   ;;  %v10250_v39 = vld [vmem:[#allocation7 + $0x60c] ss:$16 sps:$4 sm:$0xff]  }
 0x523   :  { %7325 = vmatpush1.bf16.msra.mxu1 %v10173_v40  ;;  %7368 = vmatpush1.bf16.msra.mxu0 %v10176_v42  ;;  %v10293_v40 = vld [vmem:[#allocation9 + $0x10] ss:$8 sps:$4 sm:$0xff]   ;;  %v10298_v42 = vld [vmem:[#allocation9 + $0x4] ss:$8 sps:$4 sm:$0xff]  }
 0x524   :  { %7326 = vmatprep.subr.bf16.mxu1 %v10181_v43  ;;  %7369 = vmatprep.subr.bf16.mxu0 %v10184_v44  ;;  %v10248_v43 = vld [vmem:[#allocation7 + $0x608] ss:$16 sps:$4 sm:$0xff]   ;;  %v10253_v44 = vld [vmem:[#allocation7 + $0x7ec] ss:$16 sps:$4 sm:$0xff]  }
 0x527   :  { %7327 = vmatpush2.bf16.msra.mxu1 %v10179_v45  ;;  %7370 = vmatpush2.bf16.msra.mxu0 %v10182_v46  ;;  %v10296_v45 = vld [vmem:[#allocation9] ss:$8 sps:$4 sm:$0xff]   ;;  %v10301_v46 = vld [vmem:[#allocation9 + $0xf4] ss:$8 sps:$4 sm:$0xff]  }
 0x528   :  { %7328 = vmatprep.subr.bf16.mxu1 %v10187_v28  ;;  %7371 = vmatprep.subr.bf16.mxu0 %v10190_v48  ;;  %v10251_v28 = vld [vmem:[#allocation7 + $0x7e8] ss:$16 sps:$4 sm:$0xff]   ;;  %v10256_v48 = vld [vmem:[#allocation7 + $0x7cc] ss:$16 sps:$4 sm:$0xff]  }
 0x52b   :  { %7329 = vmatpush2.bf16.msra.mxu1 %v10185_v49  ;;  %7372 = vmatpush2.bf16.msra.mxu0 %v10188_v50  ;;  %v10299_v49 = vld [vmem:[#allocation9 + $0xf0] ss:$8 sps:$4 sm:$0xff]   ;;  %v10304_v50 = vld [vmem:[#allocation9 + $0xe4] ss:$8 sps:$4 sm:$0xff]  }
 0x52c   :  { %7330 = vmatprep.subr.bf16.mxu1 %v10193_v52  ;;  %7373 = vmatprep.subr.bf16.mxu0 %v10196_v54  ;;  %v10254_v52 = vld [vmem:[#allocation7 + $0x7c8] ss:$16 sps:$4 sm:$0xff]   ;;  %v10259_v54 = vld [vmem:[#allocation7 + $0x7ac] ss:$16 sps:$4 sm:$0xff]  }
 0x52f   :  { %7331 = vmatpush2.bf16.msra.mxu1 %v10191_v27  ;;  %7374 = vmatpush2.bf16.msra.mxu0 %v10194_v29  ;;  %v10302_v27 = vld [vmem:[#allocation9 + $0xe0] ss:$8 sps:$4 sm:$0xff]   ;;  %v10307_v29 = vld [vmem:[#allocation9 + $0xd4] ss:$8 sps:$4 sm:$0xff]  }
 0x530   :  { %7332 = vmatprep.subr.bf16.mxu1 %v10199_v30  ;;  %7375 = vmatprep.subr.bf16.mxu0 %v10202_v59  ;;  %v10257_v30 = vld [vmem:[#allocation7 + $0x7a8] ss:$16 sps:$4 sm:$0xff]   ;;  %v10262_v59 = vld [vmem:[#allocation7 + $0x78c] ss:$16 sps:$4 sm:$0xff]  }
 0x533   :  { %7333 = vmatpush2.bf16.msra.mxu1 %v10197_v60  ;;  %7376 = vmatpush2.bf16.msra.mxu0 %v10200_v61  ;;  %v10305_v60 = vld [vmem:[#allocation9 + $0xd0] ss:$8 sps:$4 sm:$0xff]   ;;  %v10310_v61 = vld [vmem:[#allocation9 + $0xc4] ss:$8 sps:$4 sm:$0xff]  }
 0x534   :  { %7334 = vmatprep.subr.bf16.mxu1 %v10205_v62  ;;  %7377 = vmatprep.subr.bf16.mxu0 %v10208_v0  ;;  %v10260_v62 = vld [vmem:[#allocation7 + $0x788] ss:$16 sps:$4 sm:$0xff]   ;;  %v10265_v0 = vld [vmem:[#allocation7 + $0x76c] ss:$16 sps:$4 sm:$0xff]  }
 0x537   :  { %7335 = vmatpush2.bf16.msra.mxu1 %v10203_v53  ;;  %7378 = vmatpush2.bf16.msra.mxu0 %v10206_v63  ;;  %v10308_v53 = vld [vmem:[#allocation9 + $0xc0] ss:$8 sps:$4 sm:$0xff]   ;;  %v10313_v63 = vld [vmem:[#allocation9 + $0xb4] ss:$8 sps:$4 sm:$0xff]  }
 0x538   :  { %7336 = vmatprep.subr.bf16.mxu1 %v10211_v2  ;;  %7379 = vmatprep.subr.bf16.mxu0 %v10214_v4  ;;  %v10263_v2 = vld [vmem:[#allocation7 + $0x768] ss:$16 sps:$4 sm:$0xff]   ;;  %v10268_v4 = vld [vmem:[#allocation7 + $0x74c] ss:$16 sps:$4 sm:$0xff]  }
 0x53b   :  { %7337 = vmatpush2.bf16.msra.mxu1 %v10209_v1  ;;  %7380 = vmatpush2.bf16.msra.mxu0 %v10212_v36  ;;  %v10311_v1 = vld [vmem:[#allocation9 + $0xb0] ss:$8 sps:$4 sm:$0xff]   ;;  %v10316_v36 = vld [vmem:[#allocation9 + $0xa4] ss:$8 sps:$4 sm:$0xff]  }
 0x53c   :  { %7338 = vmatprep.subr.bf16.mxu1 %v10217_v6  ;;  %7381 = vmatprep.subr.bf16.mxu0 %v10220_v8  ;;  %v10266_v6 = vld [vmem:[#allocation7 + $0x748] ss:$16 sps:$4 sm:$0xff]   ;;  %v10271_v8 = vld [vmem:[#allocation7 + $0x72c] ss:$16 sps:$4 sm:$0xff]  }
 0x53f   :  { %7339 = vmatpush2.bf16.msra.mxu1 %v10215_v23  ;;  %7382 = vmatpush2.bf16.msra.mxu0 %v10218_v5  ;;  %v10314_v23 = vld [vmem:[#allocation9 + $0xa0] ss:$8 sps:$4 sm:$0xff]   ;;  %v10319_v5 = vld [vmem:[#allocation9 + $0x94] ss:$8 sps:$4 sm:$0xff]  }
 0x540   :  { %7340 = vmatprep.subr.bf16.mxu1 %v10223_v3  ;;  %7383 = vmatprep.subr.bf16.mxu0 %v10226_v57  ;;  %v10269_v3 = vld [vmem:[#allocation7 + $0x728] ss:$16 sps:$4 sm:$0xff]   ;;  %v10274_v57 = vld [vmem:[#allocation7 + $0x70c] ss:$16 sps:$4 sm:$0xff]  }
 0x543   :  { %7341 = vmatpush2.bf16.msra.mxu1 %v10221_v22  ;;  %7384 = vmatpush2.bf16.msra.mxu0 %v10224_v35  ;;  %v10317_v22 = vld [vmem:[#allocation9 + $0x90] ss:$8 sps:$4 sm:$0xff]   ;;  %v10322_v35 = vld [vmem:[#allocation9 + $0x84] ss:$8 sps:$4 sm:$0xff]  }
 0x544   :  { %7396 = vmatprep.subr.bf16.mxu1 %v10229_v58  ;;  %7843 = vmatprep.subr.bf16.mxu0 %v10277_v12  ;;  %v10272_v58 = vld [vmem:[#allocation7 + $0x708] ss:$16 sps:$4 sm:$0xff]  }
 0x545   :  { %v10320_v12 = vld [vmem:[#allocation9 + $0x80] ss:$8 sps:$4 sm:$0xff]  }
 0x546   :  { %7343 = vmatmul.mubr.bf16.vlgmr.msra.gmra.mxu1 %v10867_v55  ;;  %7386 = vmatmul.mubr.bf16.vlgmr.msra.gmra.mxu0 %v10875_v47  ;;  %v10286_v55 = vld [vmem:[#allocation9 + $0x44] ss:$8 sps:$4 sm:$0xff]   ;;  %v10236_v47 = vld [vmem:[#allocation7 + $0x688] ss:$16 sps:$4 sm:$0xff]  }
 0x547   :  { %7397 = vmatpush1.bf16.msra.mxu1 %v10227_v33  ;;  %7428 = vmatprep.mubr.bf16.mxu1 %v10882_v56  ;;  %v10284_v56 = vld [vmem:[#allocation9 + $0x40] ss:$8 sps:$4 sm:$0xff]   ;;  %v10323_v33 = vld [vmem:[#allocation9 + $0x170] ss:$8 sps:$4 sm:$0xff]  }
 0x548   :  { %7398 = vmatprep.subr.bf16.mxu1 %v10232_v14  ;;  %7844 = vmatpush1.bf16.msra.mxu0 %v10275_v19  ;;  %v10325_v14 = vld [vmem:[#allocation9 + $0x174] ss:$8 sps:$4 sm:$0xff]   ;;  %v10328_v19 = vld [vmem:[#allocation9 + $0x164] ss:$8 sps:$4 sm:$0xff]  }
 0x549   :  { %7845 = vmatprep.subr.bf16.mxu0 %v10280_v15  ;;  %v10326_v15 = vld [vmem:[#allocation9 + $0x160] ss:$8 sps:$4 sm:$0xff]  }
 0x54b   :  { %7399 = vmatpush1.bf16.msra.mxu1 %v10230_v7  ;;  %v10331_v7 = vld [vmem:[#allocation9 + $0x154] ss:$8 sps:$4 sm:$0xff]  }
 0x54c   :  { %7400 = vmatprep.subr.bf16.mxu1 %v10235_v41  ;;  %7846 = vmatpush1.bf16.msra.mxu0 %v10278_v16  ;;  %v10329_v41 = vld [vmem:[#allocation9 + $0x150] ss:$8 sps:$4 sm:$0xff]   ;;  %v10334_v16 = vld [vmem:[#allocation9 + $0x144] ss:$8 sps:$4 sm:$0xff]  }
 0x54d   :  { %7847 = vmatprep.subr.bf16.mxu0 %v10283_v18  ;;  %v10332_v18 = vld [vmem:[#allocation9 + $0x140] ss:$8 sps:$4 sm:$0xff]  }
 0x54f   :  { %7401 = vmatpush1.bf16.msra.mxu1 %v10233_v9  ;;  %v10337_v9 = vld [vmem:[#allocation9 + $0x134] ss:$8 sps:$4 sm:$0xff]  }
 0x550   :  { %7402 = vmatprep.subr.bf16.mxu1 %v10238_v25  ;;  %7848 = vmatpush1.bf16.msra.mxu0 %v10281_v51  ;;  %v10335_v25 = vld [vmem:[#allocation9 + $0x130] ss:$8 sps:$4 sm:$0xff]   ;;  %v10338_v51 = vld [vmem:[#allocation9 + $0x120] ss:$8 sps:$4 sm:$0xff]  }
 0x551   :  { %7849 = vmatprep.subr.bf16.mxu0 %v10286_v55  ;;  %v10343_v55 = vld [vmem:[#allocation9 + $0x114] ss:$8 sps:$4 sm:$0xff]  }
 0x553   :  { %7403 = vmatpush1.bf16.msra.mxu1 %v10236_v47  ;;  %v10341_v47 = vld [vmem:[#allocation9 + $0x110] ss:$8 sps:$4 sm:$0xff]  }
 0x554   :  { %7404 = vmatprep.subr.bf16.mxu1 %v10241_v13  ;;  %7850 = vmatpush1.bf16.msra.mxu0 %v10284_v56  ;;  %v10346_v13 = vld [vmem:[#allocation9 + $0x104] ss:$8 sps:$4 sm:$0xff]   ;;  %v10344_v56 = vld [vmem:[#allocation9 + $0x100] ss:$8 sps:$4 sm:$0xff]  }
 0x555   :  { %7851 = vmatprep.subr.bf16.mxu0 %v10289_v20  ;;  %v10349_v20 = vld [vmem:[#allocation9 + $0x1f4] ss:$8 sps:$4 sm:$0xff]  }
 0x557   :  { %7405 = vmatpush1.bf16.msra.mxu1 %v10239_v10  ;;  %v7129_v10 = vpop.f32.mrf.mxu0 }
 0x558   :  { %7406 = vmatprep.subr.bf16.mxu1 %v10244_v21  ;;  %7852 = vmatpush1.bf16.msra.mxu0 %v10287_v32  ;;  %v10347_v21 = vld [vmem:[#allocation9 + $0x1f0] ss:$8 sps:$4 sm:$0xff]   ;;  %v10352_v32 = vld [vmem:[#allocation9 + $0x1e4] ss:$8 sps:$4 sm:$0xff]  }
 0x559   :  { %7853 = vmatprep.subr.bf16.mxu0 %v10292_v17  ;;  %v7131_v17 = vpop.f32.mrf.mxu0 }
 0x55b   :  { %7407 = vmatpush1.bf16.msra.mxu1 %v10242_v34  ;;  %v10350_v34 = vld [vmem:[#allocation9 + $0x1e0] ss:$8 sps:$4 sm:$0xff]  }
 0x55c   :  { %7408 = vmatprep.subr.bf16.mxu1 %v10247_v38  ;;  %7854 = vmatpush1.bf16.msra.mxu0 %v10290_v37  ;;  %v10355_v38 = vld [vmem:[#allocation9 + $0x1d4] ss:$8 sps:$4 sm:$0xff]   ;;  %v7133_v37 = vpop.f32.mrf.mxu0 }
 0x55d   :  { %7855 = vmatprep.subr.bf16.mxu0 %v10295_v24  ;;  %v10353_v24 = vld [vmem:[#allocation9 + $0x1d0] ss:$8 sps:$4 sm:$0xff]  }
 0x55f   :  { %7409 = vmatpush1.bf16.msra.mxu1 %v10245_v31  ;;  %v10358_v31 = vld [vmem:[#allocation9 + $0x1c4] ss:$8 sps:$4 sm:$0xff]  }
 0x560   :  { %7410 = vmatprep.subr.bf16.mxu1 %v10250_v39  ;;  %7856 = vmatpush1.bf16.msra.mxu0 %v10293_v40  ;;  %v7172_v39 = vpop.f32.mrf.mxu1  ;;  %v7135_v40 = vpop.f32.mrf.mxu0 }
 0x561   :  { %7857 = vmatprep.subr.bf16.mxu0 %v10298_v42  ;;  %v10356_v42 = vld [vmem:[#allocation9 + $0x1c0] ss:$8 sps:$4 sm:$0xff]  }
 0x563   :  { %7411 = vmatpush1.bf16.msra.mxu1 %v10248_v43  ;;  %v10361_v43 = vld [vmem:[#allocation9 + $0x1b4] ss:$8 sps:$4 sm:$0xff]  }
 0x564   :  { %7412 = vmatprep.subr.bf16.mxu1 %v10253_v44  ;;  %7858 = vmatpush1.bf16.msra.mxu0 %v10296_v45  ;;  %v7174_v44 = vpop.f32.mrf.mxu1 }
 0x565   :  { %7859 = vmatprep.subr.bf16.mxu0 %v10301_v46  ;;  %v10896_v46 = vsub.s32 3, %v10798_v11 }
 0x567   :  { %7413 = vmatpush2.bf16.msra.mxu1 %v10251_v28  ;;  %v10359_v28 = vld [vmem:[#allocation9 + $0x1b0] ss:$8 sps:$4 sm:$0xff]  }
 0x568   :  { %7414 = vmatprep.subr.bf16.mxu1 %v10256_v48  ;;  %7860 = vmatpush2.bf16.msra.mxu0 %v10299_v49  ;;  %v7176_v48 = vpop.f32.mrf.mxu1 }
 0x569   :  { %7861 = vmatprep.subr.bf16.mxu0 %v10304_v50  ;;  %v10898_v50 = vld [vmem:[#allocation12 + $0x8] sm:$0xff] }
 0x56b   :  { %7415 = vmatpush2.bf16.msra.mxu1 %v10254_v52  ;;  %v5806_v52 = vrot.slane %v10898_v50, %v10896_v46 }
 0x56c   :  { %7416 = vmatprep.subr.bf16.mxu1 %v10259_v54  ;;  %7862 = vmatpush2.bf16.msra.mxu0 %v10302_v27  ;;  %v10902_v54 = vld [vmem:[#allocation12] sm:$0xff] }
 0x56d   :  { %7863 = vmatprep.subr.bf16.mxu0 %v10307_v29  ;;  %v5802_v27 = vrot.slane %v10902_v54, %v10896_v46  ;;  %v7178_v29 = vpop.f32.mrf.mxu1 }
 0x56f   :  { %7417 = vmatpush2.bf16.msra.mxu1 %v10257_v30 }
 0x570   :  { %7418 = vmatprep.subr.bf16.mxu1 %v10262_v59  ;;  %7864 = vmatpush2.bf16.msra.mxu0 %v10305_v60  ;;  %v7132_v59 = vadd.f32 %v7131_v17, %v5806_v52  ;;  %v7134_v60 = vadd.f32 %v7133_v37, %v5802_v27  ;;  %v10379_v17 = vld [vmem:[#allocation10 + $0x58] sm:$0xff]  }
 0x571   :  { %7865 = vmatprep.subr.bf16.mxu0 %v10310_v61  ;;  %v7130_v61 = vadd.f32 %v7129_v10, %v5802_v27  ;;  %v10376_v10 = vld [vmem:[#allocation10 + $0x28] sm:$0xff]  }
 0x573   :  { %7419 = vmatpush2.bf16.msra.mxu1 %v10260_v62 }
 0x574   :  { %7420 = vmatprep.subr.bf16.mxu1 %v10265_v0  ;;  %7866 = vmatpush2.bf16.msra.mxu0 %v10308_v53  ;;  %v7136_v0 = vadd.f32 %v7135_v40, %v5806_v52  ;;  %v7175_v53 = vadd.f32 %v7174_v44, %v7132_v59 }
 0x575   :  { %7867 = vmatprep.subr.bf16.mxu0 %v10313_v63  ;;  %v7177_v63 = vadd.f32 %v7176_v48, %v7134_v60 }
 0x577   :  { %7421 = vmatpush2.bf16.msra.mxu1 %v10263_v2  ;;  %v10364_v2 = vld [vmem:[#allocation9 + $0x1a4] ss:$8 sps:$4 sm:$0xff]  }
 0x578   :  { %7422 = vmatprep.subr.bf16.mxu1 %v10268_v4  ;;  %7868 = vmatpush2.bf16.msra.mxu0 %v10311_v1  ;;  %v7173_v4 = vadd.f32 %v7172_v39, %v7130_v61 }
 0x579   :  { %7869 = vmatprep.subr.bf16.mxu0 %v10316_v36 }
 0x57b   :  { %7423 = vmatpush2.bf16.msra.mxu1 %v10266_v6  ;;  %v10362_v6 = vld [vmem:[#allocation9 + $0x1a0] ss:$8 sps:$4 sm:$0xff]  }
 0x57c   :  { %7424 = vmatprep.subr.bf16.mxu1 %v10271_v8  ;;  %7870 = vmatpush2.bf16.msra.mxu0 %v10314_v23  ;;  %v7179_v8 = vadd.f32 %v7178_v29, %v7136_v0 }
 0x57d   :  { %7871 = vmatprep.subr.bf16.mxu0 %v10319_v5 }
 0x57f   :  { %7425 = vmatpush2.bf16.msra.mxu1 %v10269_v3 }
 0x580   :  { %7426 = vmatprep.subr.bf16.mxu1 %v10274_v57  ;;  %7872 = vmatpush2.bf16.msra.mxu0 %v10317_v22 }
 0x581   :  { %7873 = vmatprep.subr.bf16.mxu0 %v10322_v35 }
 0x583   :  { %7427 = vmatpush2.bf16.msra.mxu1 %v10272_v58 }
 0x584   :  { %7874 = vmatpush2.bf16.msra.mxu0 %v10320_v12  ;;  %7886 = vmatprep.subr.bf16.mxu1 %v10325_v14  ;;  %v10367_v12 = vld [vmem:[#allocation9 + $0x194] ss:$8 sps:$4 sm:$0xff]  }
 0x586   :  { %7429 = vmatmul.mubr.bf16.vlgmr.msra.gmra.mxu1 %v10884_v26  ;;  %v10340_v26 = vld [vmem:[#allocation9 + $0x124] ss:$8 sps:$4 sm:$0xff]   ;;  %v7215_v45 = vpop.f32.mrf.mxu0 }
 0x587   :  { %7887 = vmatpush1.bf16.msra.mxu1 %v10323_v33  ;;  %v7216_v3 = vadd.f32 %v7215_v45, %v7173_v4  ;;  %v10394_v45 = vld [vmem:[#allocation12 + $0x10] sm:$0xff] }
 0x588   :  { %7888 = vmatprep.subr.bf16.mxu1 %v10328_v19  ;;  %v7217_v49 = vpop.f32.mrf.mxu0  ;;  %v10365_v19 = vld [vmem:[#allocation9 + $0x190] ss:$8 sps:$4 sm:$0xff]  }
 0x589   :  { %v7218_v23 = vadd.f32 %v7217_v49, %v7175_v53 }
 0x58a   :  { %v7219_v30 = vpop.f32.mrf.mxu0 }
 0x58b   :  { %7889 = vmatpush1.bf16.msra.mxu1 %v10326_v15  ;;  %v7220_v5 = vadd.f32 %v7219_v30, %v7177_v63 }
 0x58c   :  { %7890 = vmatprep.subr.bf16.mxu1 %v10331_v7  ;;  %v7221_v1 = vpop.f32.mrf.mxu0 }
 0x58d   :  { %v7222_v22 = vadd.f32 %v7221_v1, %v7179_v8 }
 0x58f   :  { %7891 = vmatpush1.bf16.msra.mxu1 %v10329_v41 }
 0x590   :  { %7892 = vmatprep.subr.bf16.mxu1 %v10334_v16 }
 0x593   :  { %7893 = vmatpush1.bf16.msra.mxu1 %v10332_v18  ;;  %v10370_v18 = vld [vmem:[#allocation9 + $0x184] ss:$8 sps:$4 sm:$0xff]  }
 0x594   :  { %7894 = vmatprep.subr.bf16.mxu1 %v10337_v9 }
 0x597   :  { %7895 = vmatpush1.bf16.msra.mxu1 %v10335_v25  ;;  %v10368_v25 = vld [vmem:[#allocation9 + $0x180] ss:$8 sps:$4 sm:$0xff]  }
 0x598   :  { %7896 = vmatprep.subr.bf16.mxu1 %v10340_v26 }
 0x59b   :  { %7897 = vmatpush1.bf16.msra.mxu1 %v10338_v51 }
 0x59c   :  { %7898 = vmatprep.subr.bf16.mxu1 %v10343_v55  ;;  %v10371_v55 = vld [vmem:[#allocation10 + $0x78] sm:$0xff]  }
 0x59d   :  { %9182 = vmatprep.subr.bf16.mxu0 %v10371_v55 }
 0x59f   :  { %7899 = vmatpush1.bf16.msra.mxu1 %v10341_v47  ;;  %v10372_v47 = vld [vmem:[#allocation10 + $0x38] sm:$0xff]  }
 0x5a0   :  { %7900 = vmatprep.subr.bf16.mxu1 %v10346_v13  ;;  %v10373_v13 = vld [vmem:[#allocation10 + $0x70] sm:$0xff]  }
 0x5a3   :  { %7901 = vmatpush1.bf16.msra.mxu1 %v10344_v56  ;;  %v10374_v56 = vld [vmem:[#allocation10 + $0x30] sm:$0xff]  }
 0x5a4   :  { %7902 = vmatprep.subr.bf16.mxu1 %v10349_v20  ;;  %v10375_v20 = vld [vmem:[#allocation10 + $0x68] sm:$0xff]  }
 0x5a7   :  { %7903 = vmatpush2.bf16.msra.mxu1 %v10347_v21  ;;  %v10377_v21 = vld [vmem:[#allocation10 + $0x60] sm:$0xff]  }
 0x5a8   :  { %7904 = vmatprep.subr.bf16.mxu1 %v10352_v32  ;;  %v10378_v32 = vld [vmem:[#allocation10 + $0x20] sm:$0xff]  }
 0x5ab   :  { %7905 = vmatpush2.bf16.msra.mxu1 %v10350_v34  ;;  %v10380_v34 = vld [vmem:[#allocation10 + $0x18] sm:$0xff]  }
 0x5ac   :  { %7906 = vmatprep.subr.bf16.mxu1 %v10355_v38 }
 0x5af   :  { %7907 = vmatpush2.bf16.msra.mxu1 %v10353_v24 }
 0x5b0   :  { %7908 = vmatprep.subr.bf16.mxu1 %v10358_v31 }
 0x5b3   :  { %7909 = vmatpush2.bf16.msra.mxu1 %v10356_v42 }
 0x5b4   :  { %7910 = vmatprep.subr.bf16.mxu1 %v10361_v43  ;;  %v10393_v43 = vld [vmem:[#allocation12 + $0x18] sm:$0xff] }
 0x5b5   :  { %v5814_v44 = vrot.slane %v10393_v43, %v10896_v46 }
 0x5b7   :  { %7911 = vmatpush2.bf16.msra.mxu1 %v10359_v28  ;;  %v5810_v28 = vrot.slane %v10394_v45, %v10896_v46 }
 0x5b8   :  { %7912 = vmatprep.subr.bf16.mxu1 %v10364_v2 }
 0x5bb   :  { %7913 = vmatpush2.bf16.msra.mxu1 %v10362_v6 }
 0x5bc   :  { %7914 = vmatprep.subr.bf16.mxu1 %v10367_v12 }
 0x5bf   :  { %7915 = vmatpush2.bf16.msra.mxu1 %v10365_v19 }
 0x5c0   :  { %7916 = vmatprep.subr.bf16.mxu1 %v10370_v18  ;;  %v10385_v18 = vld [vmem:[#allocation10 + $0x40] sm:$0xff]  }
 0x5c3   :  { %7917 = vmatpush2.bf16.msra.mxu1 %v10368_v25 }
 0x5c6   :  { %v7258_v62 = vpop.f32.mrf.mxu1  ;;  %v7301_v38 = vpop.f32.mrf.mxu0 }
 0x5c7   :  { %v7259_v33 = vadd.f32 %v7258_v62, %v7216_v3  ;;  %v7302_v29 = vadd.f32 %v7301_v38, %v5810_v28 }
 0x5c8   :  { %v7260_v36 = vpop.f32.mrf.mxu1  ;;  %v7303_v37 = vpop.f32.mrf.mxu0 }
 0x5c9   :  { %v7261_v35 = vadd.f32 %v7260_v36, %v7218_v23  ;;  %v7439_v9 = vmax.f32 %v7259_v33, 0.0  ;;  %v7304_v52 = vadd.f32 %v7303_v37, %v5814_v44 }
 0x5ca   :  { %v7262_v57 = vpop.f32.mrf.mxu1  ;;  %v7305_v24 = vpop.f32.mrf.mxu0 }
 0x5cb   :  { %v7263_v58 = vadd.f32 %v7262_v57, %v7220_v5  ;;  %v7440_v41 = vmax.f32 %v7261_v35, 0.0  ;;  %v7306_v27 = vadd.f32 %v7305_v24, %v5810_v28 }
 0x5cc   :  { %v7264_v14 = vpop.f32.mrf.mxu1  ;;  %v7307_v39 = vpop.f32.mrf.mxu0 }
 0x5cd   :  { %v7265_v15 = vadd.f32 %v7264_v14, %v7222_v22  ;;  %v7443_v7 = vmax.f32 %v7263_v58, 0.0  ;;  %v7308_v59 = vadd.f32 %v7307_v39, %v5814_v44 }
 0x5cf   :  { %v7444_v16 = vmax.f32 %v7265_v15, 0.0  ;;  %v7447_v51 = vpack.c.bf16 %v7443_v7, %v7439_v9  ;;  %v10381_v15 = vld [vmem:[#allocation10 + $0x50] sm:$0xff]   ;;  %v10386_v9 = vld [vmem:[#allocation10] sm:$0xff]  }
 0x5d0   :  { %v10382_v7 = vld [vmem:[#allocation10 + $0x10] sm:$0xff]  }
 0x5d1   :  { %v7448_v26 = vpack.c.bf16 %v7444_v16, %v7440_v41  ;;  %v10383_v41 = vld [vmem:[#allocation10 + $0x48] sm:$0xff]  }
 0x5d2   :  { %v10384_v16 = vld [vmem:[#allocation10 + $0x8] sm:$0xff]  }
 0x5d3   :  { %7875 = vmatprep.mubr.bf16.mxu0 %v7448_v26 }
 0x5d4   :  { %7876 = vmatmul.mubr.bf16.vlgmr.msra.gmra.mxu0 %v7447_v51  ;;  %v7517_v51 = vsub.s32 4, %v10798_v11 }
 0x5d5   :  { %9183 = vmatpush3.bf16.msra.mxu0 %v10372_v47 }
 0x5d6   :  { %9184 = vmatprep.subr.bf16.mxu0 %v10373_v13  ;;  %v7522_v47 = vrot.slane %v10898_v50, %v7517_v51  ;;  %v7518_v13 = vrot.slane %v10902_v54, %v7517_v51 }
 0x5d9   :  { %9185 = vmatpush3.bf16.msra.mxu0 %v10374_v56 }
 0x5da   :  { %9186 = vmatprep.subr.bf16.mxu0 %v10375_v20 }
 0x5dd   :  { %9187 = vmatpush3.bf16.msra.mxu0 %v10376_v10 }
 0x5de   :  { %9188 = vmatprep.subr.bf16.mxu0 %v10377_v21 }
 0x5e1   :  { %9189 = vmatpush3.bf16.msra.mxu0 %v10378_v32 }
 0x5e2   :  { %9190 = vmatprep.subr.bf16.mxu0 %v10379_v17 }
 0x5e5   :  { %9191 = vmatpush3.bf16.msra.mxu0 %v10380_v34 }
 0x5e6   :  { %9192 = vmatprep.subr.bf16.mxu0 %v10381_v15 }
 0x5e9   :  { %9193 = vmatpush3.bf16.msra.mxu0 %v10382_v7 }
 0x5ea   :  { %9194 = vmatprep.subr.bf16.mxu0 %v10383_v41 }
 0x5ed   :  { %9195 = vmatpush3.bf16.msra.mxu0 %v10384_v16 }
 0x5ee   :  { %9196 = vmatprep.subr.bf16.mxu0 %v10385_v18 }
 0x5f1   :  { %9197 = vmatpush3.bf16.msra.mxu0 %v10386_v9 }
 0x606   :  { %v7344_v31 = vpop.f32.mrf.mxu1  ;;  %v7387_v42 = vpop.f32.mrf.mxu0 }
 0x607   :  { %v7345_v62 = vadd.f32 %v7344_v31, %v7302_v29 }
 0x608   :  { %v7346_v40 = vpop.f32.mrf.mxu1  ;;  %v7389_v49 = vpop.f32.mrf.mxu0 }
 0x609   :  { %v7347_v60 = vadd.f32 %v7346_v40, %v7304_v52  ;;  %v7388_v36 = vadd.f32 %v7387_v42, %v7345_v62 }
 0x60a   :  { %v7348_v48 = vpop.f32.mrf.mxu1  ;;  %v7391_v0 = vpop.f32.mrf.mxu0 }
 0x60b   :  { %v7349_v61 = vadd.f32 %v7348_v48, %v7306_v27  ;;  %v7390_v4 = vadd.f32 %v7389_v49, %v7347_v60  ;;  %v7969_v48 = vsub.s32 5, %v10798_v11 }
 0x60c   :  { %v7350_v30 = vpop.f32.mrf.mxu1  ;;  %v7393_v6 = vpop.f32.mrf.mxu0 }
 0x60d   :  { %v7351_v63 = vadd.f32 %v7350_v30, %v7308_v59  ;;  %v7392_v1 = vadd.f32 %v7391_v0, %v7349_v61  ;;  %v7970_v52 = vrot.slane %v10902_v54, %v7969_v48 }
 0x60f   :  { %v7394_v46 = vadd.f32 %v7393_v6, %v7351_v63 }
 0x646   :  { %v7430_v53 = vpop.f32.mrf.mxu1 }
 0x647   :  { %v7431_v3 = vadd.f32 %v7430_v53, %v7388_v36 }
 0x648   :  { %v7432_v2 = vpop.f32.mrf.mxu1 }
 0x649   :  { %v7433_v23 = vadd.f32 %v7432_v2, %v7390_v4  ;;  %v7441_v33 = vmax.f32 %v7431_v3, 0.0 }
 0x64a   :  { %v7434_v8 = vpop.f32.mrf.mxu1 }
 0x64b   :  { %v7435_v5 = vadd.f32 %v7434_v8, %v7392_v1  ;;  %v7442_v58 = vmax.f32 %v7433_v23, 0.0 }
 0x64c   :  { %v7436_v57 = vpop.f32.mrf.mxu1 }
 0x64d   :  { %v7437_v22 = vadd.f32 %v7436_v57, %v7394_v46  ;;  %v7445_v35 = vmax.f32 %v7435_v5, 0.0 }
 0x64f   :  { %v7446_v12 = vmax.f32 %v7437_v22, 0.0  ;;  %v7449_v19 = vpack.c.bf16 %v7445_v35, %v7441_v33 }
 0x651   :  { %v7450_v14 = vpack.c.bf16 %v7446_v12, %v7442_v58 }
 0x653   :  { %7918 = vmatprep.mubr.bf16.mxu1 %v7450_v14 }
 0x654   :  { %7919 = vmatmul.mubr.bf16.vlgmr.msra.gmra.mxu1 %v7449_v19 }
 0x694   :  { %v7877_v25 = vpop.f32.mrf.mxu0 }
 0x695   :  { %v7878_v17 = vadd.f32 %v7877_v25, %v7518_v13 }
 0x696   :  { %v7879_v26 = vpop.f32.mrf.mxu0 }
 0x697   :  { %v7880_v21 = vadd.f32 %v7879_v26, %v7522_v47 }
 0x698   :  { %v7881_v55 = vpop.f32.mrf.mxu0 }
 0x699   :  { %v7882_v32 = vadd.f32 %v7881_v55, %v7518_v13 }
 0x69a   :  { %v7883_v20 = vpop.f32.mrf.mxu0 }
 0x69b   :  { %v7884_v38 = vadd.f32 %v7883_v20, %v7522_v47 }
 0x714   :  { %v7920_v56 = vpop.f32.mrf.mxu1 }
 0x715   :  { %v7921_v31 = vadd.f32 %v7920_v56, %v7878_v17 }
 0x716   :  { %v7922_v10 = vpop.f32.mrf.mxu1 }
 0x717   :  { %v7923_v37 = vadd.f32 %v7922_v10, %v7880_v21  ;;  %v7929_v45 = vmax.f32 %v7921_v31, 0.0 }
 0x718   :  { %v7924_v34 = vpop.f32.mrf.mxu1 }
 0x719   :  { %v7925_v24 = vadd.f32 %v7924_v34, %v7882_v32  ;;  %v7930_v43 = vmax.f32 %v7923_v37, 0.0 }
 0x71a   :  { %v7926_v39 = vpop.f32.mrf.mxu1 }
 0x71b   :  { %v7927_v40 = vadd.f32 %v7926_v39, %v7884_v38  ;;  %v7931_v42 = vmax.f32 %v7925_v24, 0.0 }
 0x71d   :  { %v7932_v44 = vmax.f32 %v7927_v40, 0.0  ;;  %v7933_v28 = vpack.c.bf16 %v7931_v42, %v7929_v45 }
 0x71f   :  { %v7934_v50 = vpack.c.bf16 %v7932_v44, %v7930_v43 }
 0x721   :  { %8099 = vmatprep.mubr.bf16.mxu0 %v7934_v50 }
 0x722   :  { %8100 = vmatmul.mubr.bf16.vlgmr.msra.gmra.mxu0 %v7933_v28 }
 0x7e2   :  { %v9198_v49 = vpop.f32.mrf.mxu0 }
 0x7e4   :  { %v9199_v27 = vpop.f32.mrf.mxu0 }
 0x7e5   :  { %v9200_v29 = vadd.f32 %v9199_v27, %v9198_v49 }
 0x7e6   :  { %v9201_v30 = vpop.f32.mrf.mxu0 }
 0x7e7   :  { %v8102_v59 = vadd.f32 %v9200_v29, %v7970_v52 }
 0x7e8   :  { %v9202_v60 = vpop.f32.mrf.mxu0 }
 0x7e9   :  { %8108 = vst [vmem:[%s10927_s8] sm:$0xff] %v8102_v59  ;;  %v9203_v61 = vadd.f32 %v9202_v60, %v9201_v30 }
 0x7eb   :  { %v8105_v62 = vadd.f32 %v9203_v61, %v7970_v52 }
 0x7ed   :  { %8109 = vst [vmem:[%s10927_s8 + $0x8] sm:$0xff] %v8105_v62 }
 0x7ee   :  { %8114 = vsyncpa [#allocation3], 1 }
 0x7ef   :  { %8115 = vsyncpa [#allocation5], 1 }
 0x7f0   :  { %8116 = vsyncpa [#allocation8], 1 }
 0x7f1   :  { %8117 = vsyncpa [#allocation11], 1 }

</bundles_post_ra>
